<compile_context>
chip_gen: v7x
topology: tpu7x:2x2x1
jax: 0.10.0
libtpu: 0.0.40
codegen_flags: <defaults>
</compile_context>

<pallas_src>
import math
import functools

import jax
import jax.numpy as jnp
from jax.experimental import pallas as pl
from jax.experimental.pallas import tpu as pltpu


# ----------------------------------------------------------------------------
# In-kernel helpers (traced inside the Pallas kernel body)
# ----------------------------------------------------------------------------
def _layer_norm(v, gamma, beta, eps=1e-5):
    # v: (S, D) f32, gamma/beta: (1, D). Matches torch.nn.LayerNorm (biased var).
    mu = jnp.mean(v, axis=-1, keepdims=True)
    var = jnp.mean((v - mu) * (v - mu), axis=-1, keepdims=True)
    return (v - mu) * jax.lax.rsqrt(var + eps) * gamma + beta


def _bdot(a, w_bf16):
    # bf16 MXU operands, f32 accumulation. `w_bf16` is already bf16 (pre-cast in wrapper).
    return jnp.dot(a.astype(jnp.bfloat16), w_bf16, preferred_element_type=jnp.float32)


def _mha_core(q, k, v, bias, num_heads):
    # q: (Sq, D) f32, k/v: (Sk, D) f32, bias: additive mask broadcastable to (Sq, Sk).
    # Per-head scores/softmax/context; contexts are concatenated and the caller does a
    # single (Sq, D) @ (D, D) output projection afterwards.
    Sq, D = q.shape
    dh = D // num_heads
    scale = 1.0 / math.sqrt(dh)
    heads = []
    for h in range(num_heads):                      # static loop over heads
        sl = slice(h * dh, (h + 1) * dh)
        qh = q[:, sl].astype(jnp.bfloat16)
        kh = k[:, sl].astype(jnp.bfloat16)
        vh = v[:, sl].astype(jnp.bfloat16)
        s = jnp.einsum("qd,kd->qk", qh, kh,
                       preferred_element_type=jnp.float32) * scale
        s = s + bias                                # bias precomputed in wrapper
        m = jnp.max(s, axis=-1, keepdims=True)
        p = jnp.exp(s - m)
        p = p * pl.reciprocal(jnp.sum(p, axis=-1, keepdims=True), approx=True)
        heads.append(jnp.dot(p.astype(jnp.bfloat16), vh,
                             preferred_element_type=jnp.float32))
    return jnp.concatenate(heads, axis=-1)          # (Sq, D) f32


def _decoder_block_compute(x, x_enc, la_bias, pad_bias, p, num_heads):
    (sa_wqkv, sa_bqkv, sa_wo, sa_bo,
     ca_wq, ca_bq, ca_wkv, ca_bkv, ca_wo, ca_bo,
     ff_w1, ff_b1, ff_w2, ff_b2,
     ln1_g, ln1_b, ln2_g, ln2_b, ln3_g, ln3_b) = p
    S, D = x.shape

    # ---- self attention (fused QKV) + residual + LN1 ----
    qkv = _bdot(x, sa_wqkv) + sa_bqkv                                   # (S, 3D)
    ctx = _mha_core(qkv[:, :D], qkv[:, D:2 * D], qkv[:, 2 * D:],
                    la_bias, num_heads)
    attn = _bdot(ctx, sa_wo) + sa_bo                                    # single Wo matmul
    x1 = _layer_norm(attn + x, ln1_g, ln1_b)

    # ---- cross attention (fused KV) + residual + LN2 ----
    q = _bdot(x1, ca_wq) + ca_bq
    kv = _bdot(x_enc, ca_wkv) + ca_bkv                                  # (Se, 2D)
    ctx = _mha_core(q, kv[:, :D], kv[:, D:], pad_bias, num_heads)
    attn = _bdot(ctx, ca_wo) + ca_bo
    x2 = _layer_norm(attn + x1, ln2_g, ln2_b)

    # ---- feed forward (Linear -> ReLU -> Linear) + residual + LN3 ----
    h = jnp.maximum(_bdot(x2, ff_w1) + ff_b1, 0.0)
    ff = _bdot(h, ff_w2) + ff_b2
    return _layer_norm(ff + x2, ln3_g, ln3_b)


# ----------------------------------------------------------------------------
# Kernel: grid = (batch, num_blocks); activations carried in VMEM scratch.
# ----------------------------------------------------------------------------
def _decoder_kernel(
    x_ref, xe_ref, la_bias_ref, pad_bias_ref,
    sa_wqkv, sa_bqkv, sa_wo, sa_bo,
    ca_wq, ca_bq, ca_wkv, ca_bkv, ca_wo, ca_bo,
    ff_w1, ff_b1, ff_w2, ff_b2,
    ln1_g, ln1_b, ln2_g, ln2_b, ln3_g, ln3_b,
    o_ref,
    x_carry,
    *, num_heads,
):
    blk = pl.program_id(1)

    @pl.when(blk == 0)
    def _():
        x_carry[...] = x_ref[0].astype(jnp.float32)   # seed the carried activations

    x = x_carry[...]                                  # (S, D) f32
    x_enc = xe_ref[0].astype(jnp.float32)             # (Se, D)
    la_bias = la_bias_ref[...]                        # (S, S) additive bias
    pad_bias = pad_bias_ref[0]                        # (1, Se) additive bias

    x3 = _decoder_block_compute(
        x, x_enc, la_bias, pad_bias,
        (sa_wqkv[0], sa_bqkv[0], sa_wo[0], sa_bo[0],
         ca_wq[0], ca_bq[0], ca_wkv[0], ca_bkv[0], ca_wo[0], ca_bo[0],
         ff_w1[0], ff_b1[0], ff_w2[0], ff_b2[0],
         ln1_g[0], ln1_b[0], ln2_g[0], ln2_b[0], ln3_g[0], ln3_b[0]),
        num_heads)

    x_carry[...] = x3
    o_ref[0] = x3.astype(o_ref.dtype)                 # lane-dense (S, D) store


# ----------------------------------------------------------------------------
# Wrapper: fuse/stack weights, precompute additive mask biases, build specs.
# ----------------------------------------------------------------------------
def _fuse_block_params(p):
    (sa_wq, sa_bq, sa_wk, sa_bk, sa_wv, sa_bv, sa_wo, sa_bo,
     ca_wq, ca_bq, ca_wk, ca_bk, ca_wv, ca_bv, ca_wo, ca_bo,
     ff_w1, ff_b1, ff_w2, ff_b2,
     ln1_g, ln1_b, ln2_g, ln2_b, ln3_g, ln3_b) = p
    bf, f32 = jnp.bfloat16, jnp.float32
    return [
        jnp.concatenate([sa_wq, sa_wk, sa_wv], axis=1).astype(bf),   # (D, 3D)
        jnp.concatenate([sa_bq, sa_bk, sa_bv], axis=1).astype(f32),  # (1, 3D)
        sa_wo.astype(bf), sa_bo.astype(f32),
        ca_wq.astype(bf), ca_bq.astype(f32),
        jnp.concatenate([ca_wk, ca_wv], axis=1).astype(bf),          # (D, 2D)
        jnp.concatenate([ca_bk, ca_bv], axis=1).astype(f32),         # (1, 2D)
        ca_wo.astype(bf), ca_bo.astype(f32),
        ff_w1.astype(bf), ff_b1.astype(f32),
        ff_w2.astype(bf), ff_b2.astype(f32),
        ln1_g.astype(f32), ln1_b.astype(f32),
        ln2_g.astype(f32), ln2_b.astype(f32),
        ln3_g.astype(f32), ln3_b.astype(f32),
    ]


def decoder(x, x_encoder, look_ahead_mask, padding_mask, block_params, num_heads):
    B, S, D = x.shape
    _, S_enc, _ = x_encoder.shape
    L = len(block_params)

    # Additive mask biases (0 keep / -1e9 mask) computed once outside the kernel.
    la_bias = jnp.where(look_ahead_mask > 0, 0.0, -1e9).astype(jnp.float32)      # (S, S)
    pad_bias = jnp.where(padding_mask > 0, 0.0, -1e9).astype(jnp.float32)
    pad_bias = pad_bias.reshape(B, 1, S_enc)                                     # (B, 1, Se)

    # Fuse QKV / KV weights per block, cast to bf16, stack along a leading block axis.
    fused = [_fuse_block_params(p) for p in block_params]
    stacked = [jnp.stack(parts, axis=0) for parts in zip(*fused)]                # (L, ...)

    def weight_spec(arr):
        # one block's worth of weights per grid step along the block axis.
        return pl.BlockSpec((1,) + arr.shape[1:], lambda b, l: (l, 0, 0))

    in_specs = [
        pl.BlockSpec((1, S, D), lambda b, l: (b, 0, 0)),        # x (per batch, resident over l)
        pl.BlockSpec((1, S_enc, D), lambda b, l: (b, 0, 0)),    # x_encoder
        pl.BlockSpec((S, S), lambda b, l: (0, 0)),              # causal additive bias
        pl.BlockSpec((1, 1, S_enc), lambda b, l: (b, 0, 0)),    # padding additive bias
    ] + [weight_spec(a) for a in stacked]

    kernel = functools.partial(_decoder_kernel, num_heads=num_heads)

    return pl.pallas_call(
        kernel,
        out_shape=jax.ShapeDtypeStruct((B, S, D), x.dtype),
        grid_spec=pltpu.PrefetchScalarGridSpec(
            num_scalar_prefetch=0,
            grid=(B, L),
            in_specs=in_specs,
            out_specs=pl.BlockSpec((1, S, D), lambda b, l: (b, 0, 0)),
            scratch_shapes=[pltpu.VMEM((S, D), jnp.float32)],   # carried activations
        ),
        compiler_params=pltpu.CompilerParams(
            dimension_semantics=("parallel", "arbitrary"),
        ),
    )(x, x_encoder, la_bias, pad_bias, *stacked)


# ----------------------------------------------------------------------------
# Pure-JAX f32 reference (faithful to the PyTorch module) for a sanity check.
# ----------------------------------------------------------------------------
def decoder_ref(x, x_enc, la_mask, pad_mask, block_params, num_heads):
    def ln(v, g, b, eps=1e-5):
        mu = jnp.mean(v, -1, keepdims=True)
        var = jnp.mean((v - mu) ** 2, -1, keepdims=True)
        return (v - mu) / jnp.sqrt(var + eps) * g + b

    def mha(q_in, k_in, v_in, mask, wq, bq, wk, bk, wv, bv, wo, bo):
        B, Sq, D = q_in.shape
        Sk = k_in.shape[1]
        dh = D // num_heads
        q = (q_in @ wq + bq).reshape(B, Sq, num_heads, dh).transpose(0, 2, 1, 3)
        k = (k_in @ wk + bk).reshape(B, Sk, num_heads, dh).transpose(0, 2, 1, 3)
        v = (v_in @ wv + bv).reshape(B, Sk, num_heads, dh).transpose(0, 2, 1, 3)
        s = jnp.einsum("bhqd,bhkd->bhqk", q, k) / math.sqrt(dh)
        s = jnp.where(mask > 0, s, -1e9)
        p = jax.nn.softmax(s, axis=-1)
        o = jnp.einsum("bhqk,bhkd->bhqd", p, v).transpose(0, 2, 1, 3).reshape(B, Sq, D)
        return o @ wo + bo

    for p in block_params:
        (sa_wq, sa_bq, sa_wk, sa_bk, sa_wv, sa_bv, sa_wo, sa_bo,
         ca_wq, ca_bq, ca_wk, ca_bk, ca_wv, ca_bv, ca_wo, ca_bo,
         ff_w1, ff_b1, ff_w2, ff_b2,
         ln1_g, ln1_b, ln2_g, ln2_b, ln3_g, ln3_b) = p
        a = mha(x, x, x, la_mask[None, None],
                sa_wq, sa_bq, sa_wk, sa_bk, sa_wv, sa_bv, sa_wo, sa_bo)
        x1 = ln(a + x, ln1_g, ln1_b)
        a = mha(x1, x_enc, x_enc, pad_mask[:, None, None, :],
                ca_wq, ca_bq, ca_wk, ca_bk, ca_wv, ca_bv, ca_wo, ca_bo)
        x2 = ln(a + x1, ln2_g, ln2_b)
        ff = jnp.maximum(x2 @ ff_w1 + ff_b1, 0.0) @ ff_w2 + ff_b2
        x = ln(ff + x2, ln3_g, ln3_b)
    return x


# ----------------------------------------------------------------------------
# Main
# ----------------------------------------------------------------------------
if __name__ == "__main__":
    B, S, S_ENC = 2, 8, 16
    D_MODEL, NUM_HEADS = 128, 4      # lane-dense d_model (multiple of 128)
    D_FF = 4 * D_MODEL
    NUM_BLOCKS = 2

    key = jax.random.PRNGKey(0)
    keys = iter(jax.random.split(key, 256))

    def w(shape, scale=0.05):
        return (scale * jax.random.normal(next(keys), shape)).astype(jnp.float32)

    x = w((B, S, D_MODEL), 1.0)
    x_encoder = w((B, S_ENC, D_MODEL), 1.0)

    # look-ahead (causal) mask: 1 = attend, 0 = masked
    look_ahead_mask = jnp.tril(jnp.ones((S, S), jnp.float32))
    # padding mask over encoder positions: batch 1 masks its last 4 positions
    padding_mask = jnp.ones((B, S_ENC), jnp.float32).at[1, -4:].set(0.0)

    def attn_params():
        return [w((D_MODEL, D_MODEL)), w((1, D_MODEL)),   # Wq, bq
                w((D_MODEL, D_MODEL)), w((1, D_MODEL)),   # Wk, bk
                w((D_MODEL, D_MODEL)), w((1, D_MODEL)),   # Wv, bv
                w((D_MODEL, D_MODEL)), w((1, D_MODEL))]   # Wo, bo

    def block_param_set():
        return tuple(
            attn_params() + attn_params() +                   # self-attn, cross-attn
            [w((D_MODEL, D_FF)), w((1, D_FF)),                # FFN W1, b1
             w((D_FF, D_MODEL)), w((1, D_MODEL))] +           # FFN W2, b2
            [jnp.ones((1, D_MODEL), jnp.float32),
             jnp.zeros((1, D_MODEL), jnp.float32)] * 3        # LN1/2/3 gamma, beta
        )

    block_params = [block_param_set() for _ in range(NUM_BLOCKS)]

    out = decoder(x, x_encoder, look_ahead_mask, padding_mask, block_params, NUM_HEADS)
    out = jax.block_until_ready(out)

    ref = decoder_ref(x, x_encoder, look_ahead_mask, padding_mask, block_params, NUM_HEADS)
    assert out.shape == (B, S, D_MODEL)
    # bf16 MXU operands + approx reciprocal => compare against the f32 reference with
    # a correspondingly relaxed tolerance (per the review guidance).
    assert jnp.allclose(out, ref, atol=5e-2, rtol=5e-2), "mismatch vs JAX reference"

    print("KERNEL_OK")
</pallas_src>

<mosaic_0001>
module attributes {stable_mosaic.version = 11 : i64} {
  func.func @_decoder_kernel(%arg0: i32, %arg1: i32, %arg2: memref<1x8x128xf32, #tpu.memory_space<vmem>>, %arg3: memref<1x16x128xf32, #tpu.memory_space<vmem>>, %arg4: memref<8x8xf32, #tpu.memory_space<vmem>>, %arg5: memref<1x1x16xf32, #tpu.memory_space<vmem>>, %arg6: memref<1x128x384xbf16, #tpu.memory_space<vmem>>, %arg7: memref<1x1x384xf32, #tpu.memory_space<vmem>>, %arg8: memref<1x128x128xbf16, #tpu.memory_space<vmem>>, %arg9: memref<1x1x128xf32, #tpu.memory_space<vmem>>, %arg10: memref<1x128x128xbf16, #tpu.memory_space<vmem>>, %arg11: memref<1x1x128xf32, #tpu.memory_space<vmem>>, %arg12: memref<1x128x256xbf16, #tpu.memory_space<vmem>>, %arg13: memref<1x1x256xf32, #tpu.memory_space<vmem>>, %arg14: memref<1x128x128xbf16, #tpu.memory_space<vmem>>, %arg15: memref<1x1x128xf32, #tpu.memory_space<vmem>>, %arg16: memref<1x128x512xbf16, #tpu.memory_space<vmem>>, %arg17: memref<1x1x512xf32, #tpu.memory_space<vmem>>, %arg18: memref<1x512x128xbf16, #tpu.memory_space<vmem>>, %arg19: memref<1x1x128xf32, #tpu.memory_space<vmem>>, %arg20: memref<1x1x128xf32, #tpu.memory_space<vmem>>, %arg21: memref<1x1x128xf32, #tpu.memory_space<vmem>>, %arg22: memref<1x1x128xf32, #tpu.memory_space<vmem>>, %arg23: memref<1x1x128xf32, #tpu.memory_space<vmem>>, %arg24: memref<1x1x128xf32, #tpu.memory_space<vmem>>, %arg25: memref<1x1x128xf32, #tpu.memory_space<vmem>>, %arg26: memref<1x8x128xf32, #tpu.memory_space<vmem>>, %arg27: memref<8x128xf32, #tpu.memory_space<vmem>>) attributes {dimension_semantics = [#tpu.dimension_semantics<parallel>, #tpu.dimension_semantics<arbitrary>], iteration_bounds = array<i64: 2, 2>, scalar_prefetch = 0 : i64, scratch_operands = 1 : i64, tpu.core_type = #tpu.core_type<tc>, window_params = [{transform_indices = @transform_0, window_bounds = array<i64: 1, 8, 128>}, {transform_indices = @transform_1, window_bounds = array<i64: 1, 16, 128>}, {pipeline_mode = #tpu.pipeline_mode<synchronous>, transform_indices = @transform_2, window_bounds = array<i64: 8, 8>}, {transform_indices = @transform_3, window_bounds = array<i64: 1, 1, 16>}, {transform_indices = @transform_4, window_bounds = array<i64: 1, 128, 384>}, {transform_indices = @transform_5, window_bounds = array<i64: 1, 1, 384>}, {transform_indices = @transform_6, window_bounds = array<i64: 1, 128, 128>}, {transform_indices = @transform_7, window_bounds = array<i64: 1, 1, 128>}, {transform_indices = @transform_8, window_bounds = array<i64: 1, 128, 128>}, {transform_indices = @transform_9, window_bounds = array<i64: 1, 1, 128>}, {transform_indices = @transform_10, window_bounds = array<i64: 1, 128, 256>}, {transform_indices = @transform_11, window_bounds = array<i64: 1, 1, 256>}, {transform_indices = @transform_12, window_bounds = array<i64: 1, 128, 128>}, {transform_indices = @transform_13, window_bounds = array<i64: 1, 1, 128>}, {transform_indices = @transform_14, window_bounds = array<i64: 1, 128, 512>}, {transform_indices = @transform_15, window_bounds = array<i64: 1, 1, 512>}, {transform_indices = @transform_16, window_bounds = array<i64: 1, 512, 128>}, {transform_indices = @transform_17, window_bounds = array<i64: 1, 1, 128>}, {transform_indices = @transform_18, window_bounds = array<i64: 1, 1, 128>}, {transform_indices = @transform_19, window_bounds = array<i64: 1, 1, 128>}, {transform_indices = @transform_20, window_bounds = array<i64: 1, 1, 128>}, {transform_indices = @transform_21, window_bounds = array<i64: 1, 1, 128>}, {transform_indices = @transform_22, window_bounds = array<i64: 1, 1, 128>}, {transform_indices = @transform_23, window_bounds = array<i64: 1, 1, 128>}, {transform_indices = @transform_24, window_bounds = array<i64: 1, 8, 128>}]} {
    %c0_i32 = arith.constant 0 : i32
    %0 = arith.cmpi eq, %arg1, %c0_i32 : i32
    %1 = arith.extui %0 : i1 to i32
    %c0_i32_0 = arith.constant 0 : i32
    %2 = arith.cmpi ne, %1, %c0_i32_0 : i32
    scf.if %2 {
      %c0_137 = arith.constant 0 : index
      %c0_138 = arith.constant 0 : index
      %c0_139 = arith.constant 0 : index
      %345 = vector.load %arg2[%c0_137, %c0_138, %c0_139] : memref<1x8x128xf32, #tpu.memory_space<vmem>>, vector<1x8x128xf32>
      %346 = vector.shape_cast %345 : vector<1x8x128xf32> to vector<8x128xf32>
      %c0_140 = arith.constant 0 : index
      %c0_141 = arith.constant 0 : index
      %347 = vector.load %arg27[%c0_140, %c0_141] : memref<8x128xf32, #tpu.memory_space<vmem>>, vector<8x128xf32>
      tpu.vector_store %arg27[%c0_140, %c0_141], %346 {strides = array<i32>} : memref<8x128xf32, #tpu.memory_space<vmem>>, vector<8x128xf32>,
    } else {
    }
    %c0 = arith.constant 0 : index
    %c0_1 = arith.constant 0 : index
    %3 = vector.load %arg27[%c0, %c0_1] : memref<8x128xf32, #tpu.memory_space<vmem>>, vector<8x128xf32>
    %c0_2 = arith.constant 0 : index
    %c0_3 = arith.constant 0 : index
    %c0_4 = arith.constant 0 : index
    %4 = vector.load %arg3[%c0_2, %c0_3, %c0_4] : memref<1x16x128xf32, #tpu.memory_space<vmem>>, vector<1x16x128xf32>
    %5 = vector.shape_cast %4 : vector<1x16x128xf32> to vector<16x128xf32>
    %c0_5 = arith.constant 0 : index
    %c0_6 = arith.constant 0 : index
    %6 = vector.load %arg4[%c0_5, %c0_6] : memref<8x8xf32, #tpu.memory_space<vmem>>, vector<8x8xf32>
    %c0_7 = arith.constant 0 : index
    %c0_8 = arith.constant 0 : index
    %c0_9 = arith.constant 0 : index
    %7 = vector.load %arg5[%c0_7, %c0_8, %c0_9] : memref<1x1x16xf32, #tpu.memory_space<vmem>>, vector<1x1x16xf32>
    %8 = vector.shape_cast %7 : vector<1x1x16xf32> to vector<1x16xf32>
    %c0_10 = arith.constant 0 : index
    %c0_11 = arith.constant 0 : index
    %c0_12 = arith.constant 0 : index
    %9 = vector.load %arg6[%c0_10, %c0_11, %c0_12] : memref<1x128x384xbf16, #tpu.memory_space<vmem>>, vector<1x128x384xbf16>
    %10 = vector.shape_cast %9 : vector<1x128x384xbf16> to vector<128x384xbf16>
    %c0_13 = arith.constant 0 : index
    %c0_14 = arith.constant 0 : index
    %c0_15 = arith.constant 0 : index
    %11 = vector.load %arg7[%c0_13, %c0_14, %c0_15] : memref<1x1x384xf32, #tpu.memory_space<vmem>>, vector<1x1x384xf32>
    %12 = vector.shape_cast %11 : vector<1x1x384xf32> to vector<1x384xf32>
    %c0_16 = arith.constant 0 : index
    %c0_17 = arith.constant 0 : index
    %c0_18 = arith.constant 0 : index
    %13 = vector.load %arg8[%c0_16, %c0_17, %c0_18] : memref<1x128x128xbf16, #tpu.memory_space<vmem>>, vector<1x128x128xbf16>
    %14 = vector.shape_cast %13 : vector<1x128x128xbf16> to vector<128x128xbf16>
    %c0_19 = arith.constant 0 : index
    %c0_20 = arith.constant 0 : index
    %c0_21 = arith.constant 0 : index
    %15 = vector.load %arg9[%c0_19, %c0_20, %c0_21] : memref<1x1x128xf32, #tpu.memory_space<vmem>>, vector<1x1x128xf32>
    %16 = vector.shape_cast %15 : vector<1x1x128xf32> to vector<1x128xf32>
    %c0_22 = arith.constant 0 : index
    %c0_23 = arith.constant 0 : index
    %c0_24 = arith.constant 0 : index
    %17 = vector.load %arg10[%c0_22, %c0_23, %c0_24] : memref<1x128x128xbf16, #tpu.memory_space<vmem>>, vector<1x128x128xbf16>
    %18 = vector.shape_cast %17 : vector<1x128x128xbf16> to vector<128x128xbf16>
    %c0_25 = arith.constant 0 : index
    %c0_26 = arith.constant 0 : index
    %c0_27 = arith.constant 0 : index
    %19 = vector.load %arg11[%c0_25, %c0_26, %c0_27] : memref<1x1x128xf32, #tpu.memory_space<vmem>>, vector<1x1x128xf32>
    %20 = vector.shape_cast %19 : vector<1x1x128xf32> to vector<1x128xf32>
    %c0_28 = arith.constant 0 : index
    %c0_29 = arith.constant 0 : index
    %c0_30 = arith.constant 0 : index
    %21 = vector.load %arg12[%c0_28, %c0_29, %c0_30] : memref<1x128x256xbf16, #tpu.memory_space<vmem>>, vector<1x128x256xbf16>
    %22 = vector.shape_cast %21 : vector<1x128x256xbf16> to vector<128x256xbf16>
    %c0_31 = arith.constant 0 : index
    %c0_32 = arith.constant 0 : index
    %c0_33 = arith.constant 0 : index
    %23 = vector.load %arg13[%c0_31, %c0_32, %c0_33] : memref<1x1x256xf32, #tpu.memory_space<vmem>>, vector<1x1x256xf32>
    %24 = vector.shape_cast %23 : vector<1x1x256xf32> to vector<1x256xf32>
    %c0_34 = arith.constant 0 : index
    %c0_35 = arith.constant 0 : index
    %c0_36 = arith.constant 0 : index
    %25 = vector.load %arg14[%c0_34, %c0_35, %c0_36] : memref<1x128x128xbf16, #tpu.memory_space<vmem>>, vector<1x128x128xbf16>
    %26 = vector.shape_cast %25 : vector<1x128x128xbf16> to vector<128x128xbf16>
    %c0_37 = arith.constant 0 : index
    %c0_38 = arith.constant 0 : index
    %c0_39 = arith.constant 0 : index
    %27 = vector.load %arg15[%c0_37, %c0_38, %c0_39] : memref<1x1x128xf32, #tpu.memory_space<vmem>>, vector<1x1x128xf32>
    %28 = vector.shape_cast %27 : vector<1x1x128xf32> to vector<1x128xf32>
    %c0_40 = arith.constant 0 : index
    %c0_41 = arith.constant 0 : index
    %c0_42 = arith.constant 0 : index
    %29 = vector.load %arg16[%c0_40, %c0_41, %c0_42] : memref<1x128x512xbf16, #tpu.memory_space<vmem>>, vector<1x128x512xbf16>
    %30 = vector.shape_cast %29 : vector<1x128x512xbf16> to vector<128x512xbf16>
    %c0_43 = arith.constant 0 : index
    %c0_44 = arith.constant 0 : index
    %c0_45 = arith.constant 0 : index
    %31 = vector.load %arg17[%c0_43, %c0_44, %c0_45] : memref<1x1x512xf32, #tpu.memory_space<vmem>>, vector<1x1x512xf32>
    %32 = vector.shape_cast %31 : vector<1x1x512xf32> to vector<1x512xf32>
    %c0_46 = arith.constant 0 : index
    %c0_47 = arith.constant 0 : index
    %c0_48 = arith.constant 0 : index
    %33 = vector.load %arg18[%c0_46, %c0_47, %c0_48] : memref<1x512x128xbf16, #tpu.memory_space<vmem>>, vector<1x512x128xbf16>
    %34 = vector.shape_cast %33 : vector<1x512x128xbf16> to vector<512x128xbf16>
    %c0_49 = arith.constant 0 : index
    %c0_50 = arith.constant 0 : index
    %c0_51 = arith.constant 0 : index
    %35 = vector.load %arg19[%c0_49, %c0_50, %c0_51] : memref<1x1x128xf32, #tpu.memory_space<vmem>>, vector<1x1x128xf32>
    %36 = vector.shape_cast %35 : vector<1x1x128xf32> to vector<1x128xf32>
    %c0_52 = arith.constant 0 : index
    %c0_53 = arith.constant 0 : index
    %c0_54 = arith.constant 0 : index
    %37 = vector.load %arg20[%c0_52, %c0_53, %c0_54] : memref<1x1x128xf32, #tpu.memory_space<vmem>>, vector<1x1x128xf32>
    %38 = vector.shape_cast %37 : vector<1x1x128xf32> to vector<1x128xf32>
    %c0_55 = arith.constant 0 : index
    %c0_56 = arith.constant 0 : index
    %c0_57 = arith.constant 0 : index
    %39 = vector.load %arg21[%c0_55, %c0_56, %c0_57] : memref<1x1x128xf32, #tpu.memory_space<vmem>>, vector<1x1x128xf32>
    %40 = vector.shape_cast %39 : vector<1x1x128xf32> to vector<1x128xf32>
    %c0_58 = arith.constant 0 : index
    %c0_59 = arith.constant 0 : index
    %c0_60 = arith.constant 0 : index
    %41 = vector.load %arg22[%c0_58, %c0_59, %c0_60] : memref<1x1x128xf32, #tpu.memory_space<vmem>>, vector<1x1x128xf32>
    %42 = vector.shape_cast %41 : vector<1x1x128xf32> to vector<1x128xf32>
    %c0_61 = arith.constant 0 : index
    %c0_62 = arith.constant 0 : index
    %c0_63 = arith.constant 0 : index
    %43 = vector.load %arg23[%c0_61, %c0_62, %c0_63] : memref<1x1x128xf32, #tpu.memory_space<vmem>>, vector<1x1x128xf32>
    %44 = vector.shape_cast %43 : vector<1x1x128xf32> to vector<1x128xf32>
    %c0_64 = arith.constant 0 : index
    %c0_65 = arith.constant 0 : index
    %c0_66 = arith.constant 0 : index
    %45 = vector.load %arg24[%c0_64, %c0_65, %c0_66] : memref<1x1x128xf32, #tpu.memory_space<vmem>>, vector<1x1x128xf32>
    %46 = vector.shape_cast %45 : vector<1x1x128xf32> to vector<1x128xf32>
    %c0_67 = arith.constant 0 : index
    %c0_68 = arith.constant 0 : index
    %c0_69 = arith.constant 0 : index
    %47 = vector.load %arg25[%c0_67, %c0_68, %c0_69] : memref<1x1x128xf32, #tpu.memory_space<vmem>>, vector<1x1x128xf32>
    %48 = vector.shape_cast %47 : vector<1x1x128xf32> to vector<1x128xf32>
    %49 = arith.truncf %3 : vector<8x128xf32> to vector<8x128xbf16>
    %cst = arith.constant dense<0.000000e+00> : vector<8x384xf32>
    %50 = tpu.matmul %49, %10, %cst {dimension_numbers = #tpu.dot_dimension_numbers<[1], [0], [0], [1], [0, 0, 1, 1], [], []>} : vector<8x128xbf16>, vector<128x384xbf16>, vector<8x384xf32> -> vector<8x384xf32>
    %51 = vector.broadcast %12 : vector<1x384xf32> to vector<8x384xf32>
    %52 = arith.addf %50, %51 : vector<8x384xf32>
    %53 = vector.extract_strided_slice %52 {offsets = [0, 0], sizes = [8, 128], strides = [1, 1]} : vector<8x384xf32> to vector<8x128xf32>
    %54 = vector.extract_strided_slice %52 {offsets = [0, 128], sizes = [8, 128], strides = [1, 1]} : vector<8x384xf32> to vector<8x128xf32>
    %55 = vector.extract_strided_slice %52 {offsets = [0, 256], sizes = [8, 128], strides = [1, 1]} : vector<8x384xf32> to vector<8x128xf32>
    %56 = vector.extract_strided_slice %53 {offsets = [0, 0], sizes = [8, 32], strides = [1, 1]} : vector<8x128xf32> to vector<8x32xf32>
    %57 = arith.truncf %56 : vector<8x32xf32> to vector<8x32xbf16>
    %58 = vector.extract_strided_slice %54 {offsets = [0, 0], sizes = [8, 32], strides = [1, 1]} : vector<8x128xf32> to vector<8x32xf32>
    %59 = arith.truncf %58 : vector<8x32xf32> to vector<8x32xbf16>
    %60 = vector.extract_strided_slice %55 {offsets = [0, 0], sizes = [8, 32], strides = [1, 1]} : vector<8x128xf32> to vector<8x32xf32>
    %61 = arith.truncf %60 : vector<8x32xf32> to vector<8x32xbf16>
    "tpu.trace_start"() <{level = 10 : i32, message = "qd,kd->qk"}> : () -> ()
    %cst_70 = arith.constant dense<0.000000e+00> : vector<8x8xf32>
    %62 = tpu.matmul %57, %59, %cst_70 {dimension_numbers = #tpu.dot_dimension_numbers<[1], [1], [0], [0], [0, 0, 1, 0], [], []>} : vector<8x32xbf16>, vector<8x32xbf16>, vector<8x8xf32> -> vector<8x8xf32>
    "tpu.trace_stop"() : () -> ()
    %cst_71 = arith.constant 0.176776692 : f32
    %63 = vector.broadcast %cst_71 : f32 to vector<8x8xf32>
    %64 = arith.mulf %62, %63 : vector<8x8xf32>
    %65 = arith.addf %64, %6 : vector<8x8xf32>
    %cst_72 = arith.constant dense<0xFF800000> : vector<8xf32>
    %66 = vector.multi_reduction <maximumf>, %65, %cst_72 [1] : vector<8x8xf32> to vector<8xf32>
    %67 = vector.shape_cast %66 : vector<8xf32> to vector<8x1xf32>
    %68 = vector.broadcast %67 : vector<8x1xf32> to vector<8x8xf32>
    %69 = arith.subf %65, %68 : vector<8x8xf32>
    %70 = math.exp %69 : vector<8x8xf32>
    %cst_73 = arith.constant dense<0.000000e+00> : vector<8xf32>
    %71 = vector.multi_reduction <add>, %70, %cst_73 [1] : vector<8x8xf32> to vector<8xf32>
    %72 = vector.shape_cast %71 : vector<8xf32> to vector<8x1xf32>
    %73 = tpu.reciprocal %72 {approx = true} : vector<8x1xf32> -> vector<8x1xf32>
    %74 = vector.broadcast %73 : vector<8x1xf32> to vector<8x8xf32>
    %75 = arith.mulf %70, %74 : vector<8x8xf32>
    %76 = arith.truncf %75 : vector<8x8xf32> to vector<8x8xbf16>
    %cst_74 = arith.constant dense<0.000000e+00> : vector<8x32xf32>
    %77 = tpu.matmul %76, %61, %cst_74 {dimension_numbers = #tpu.dot_dimension_numbers<[1], [0], [0], [1], [0, 0, 1, 1], [], []>} : vector<8x8xbf16>, vector<8x32xbf16>, vector<8x32xf32> -> vector<8x32xf32>
    %78 = vector.extract_strided_slice %53 {offsets = [0, 32], sizes = [8, 32], strides = [1, 1]} : vector<8x128xf32> to vector<8x32xf32>
    %79 = arith.truncf %78 : vector<8x32xf32> to vector<8x32xbf16>
    %80 = vector.extract_strided_slice %54 {offsets = [0, 32], sizes = [8, 32], strides = [1, 1]} : vector<8x128xf32> to vector<8x32xf32>
    %81 = arith.truncf %80 : vector<8x32xf32> to vector<8x32xbf16>
    %82 = vector.extract_strided_slice %55 {offsets = [0, 32], sizes = [8, 32], strides = [1, 1]} : vector<8x128xf32> to vector<8x32xf32>
    %83 = arith.truncf %82 : vector<8x32xf32> to vector<8x32xbf16>
    "tpu.trace_start"() <{level = 10 : i32, message = "qd,kd->qk"}> : () -> ()
    %cst_75 = arith.constant dense<0.000000e+00> : vector<8x8xf32>
    %84 = tpu.matmul %79, %81, %cst_75 {dimension_numbers = #tpu.dot_dimension_numbers<[1], [1], [0], [0], [0, 0, 1, 0], [], []>} : vector<8x32xbf16>, vector<8x32xbf16>, vector<8x8xf32> -> vector<8x8xf32>
    "tpu.trace_stop"() : () -> ()
    %cst_76 = arith.constant 0.176776692 : f32
    %85 = vector.broadcast %cst_76 : f32 to vector<8x8xf32>
    %86 = arith.mulf %84, %85 : vector<8x8xf32>
    %87 = arith.addf %86, %6 : vector<8x8xf32>
    %cst_77 = arith.constant dense<0xFF800000> : vector<8xf32>
    %88 = vector.multi_reduction <maximumf>, %87, %cst_77 [1] : vector<8x8xf32> to vector<8xf32>
    %89 = vector.shape_cast %88 : vector<8xf32> to vector<8x1xf32>
    %90 = vector.broadcast %89 : vector<8x1xf32> to vector<8x8xf32>
    %91 = arith.subf %87, %90 : vector<8x8xf32>
    %92 = math.exp %91 : vector<8x8xf32>
    %cst_78 = arith.constant dense<0.000000e+00> : vector<8xf32>
    %93 = vector.multi_reduction <add>, %92, %cst_78 [1] : vector<8x8xf32> to vector<8xf32>
    %94 = vector.shape_cast %93 : vector<8xf32> to vector<8x1xf32>
    %95 = tpu.reciprocal %94 {approx = true} : vector<8x1xf32> -> vector<8x1xf32>
    %96 = vector.broadcast %95 : vector<8x1xf32> to vector<8x8xf32>
    %97 = arith.mulf %92, %96 : vector<8x8xf32>
    %98 = arith.truncf %97 : vector<8x8xf32> to vector<8x8xbf16>
    %cst_79 = arith.constant dense<0.000000e+00> : vector<8x32xf32>
    %99 = tpu.matmul %98, %83, %cst_79 {dimension_numbers = #tpu.dot_dimension_numbers<[1], [0], [0], [1], [0, 0, 1, 1], [], []>} : vector<8x8xbf16>, vector<8x32xbf16>, vector<8x32xf32> -> vector<8x32xf32>
    %100 = vector.extract_strided_slice %53 {offsets = [0, 64], sizes = [8, 32], strides = [1, 1]} : vector<8x128xf32> to vector<8x32xf32>
    %101 = arith.truncf %100 : vector<8x32xf32> to vector<8x32xbf16>
    %102 = vector.extract_strided_slice %54 {offsets = [0, 64], sizes = [8, 32], strides = [1, 1]} : vector<8x128xf32> to vector<8x32xf32>
    %103 = arith.truncf %102 : vector<8x32xf32> to vector<8x32xbf16>
    %104 = vector.extract_strided_slice %55 {offsets = [0, 64], sizes = [8, 32], strides = [1, 1]} : vector<8x128xf32> to vector<8x32xf32>
    %105 = arith.truncf %104 : vector<8x32xf32> to vector<8x32xbf16>
    "tpu.trace_start"() <{level = 10 : i32, message = "qd,kd->qk"}> : () -> ()
    %cst_80 = arith.constant dense<0.000000e+00> : vector<8x8xf32>
    %106 = tpu.matmul %101, %103, %cst_80 {dimension_numbers = #tpu.dot_dimension_numbers<[1], [1], [0], [0], [0, 0, 1, 0], [], []>} : vector<8x32xbf16>, vector<8x32xbf16>, vector<8x8xf32> -> vector<8x8xf32>
    "tpu.trace_stop"() : () -> ()
    %cst_81 = arith.constant 0.176776692 : f32
    %107 = vector.broadcast %cst_81 : f32 to vector<8x8xf32>
    %108 = arith.mulf %106, %107 : vector<8x8xf32>
    %109 = arith.addf %108, %6 : vector<8x8xf32>
    %cst_82 = arith.constant dense<0xFF800000> : vector<8xf32>
    %110 = vector.multi_reduction <maximumf>, %109, %cst_82 [1] : vector<8x8xf32> to vector<8xf32>
    %111 = vector.shape_cast %110 : vector<8xf32> to vector<8x1xf32>
    %112 = vector.broadcast %111 : vector<8x1xf32> to vector<8x8xf32>
    %113 = arith.subf %109, %112 : vector<8x8xf32>
    %114 = math.exp %113 : vector<8x8xf32>
    %cst_83 = arith.constant dense<0.000000e+00> : vector<8xf32>
    %115 = vector.multi_reduction <add>, %114, %cst_83 [1] : vector<8x8xf32> to vector<8xf32>
    %116 = vector.shape_cast %115 : vector<8xf32> to vector<8x1xf32>
    %117 = tpu.reciprocal %116 {approx = true} : vector<8x1xf32> -> vector<8x1xf32>
    %118 = vector.broadcast %117 : vector<8x1xf32> to vector<8x8xf32>
    %119 = arith.mulf %114, %118 : vector<8x8xf32>
    %120 = arith.truncf %119 : vector<8x8xf32> to vector<8x8xbf16>
    %cst_84 = arith.constant dense<0.000000e+00> : vector<8x32xf32>
    %121 = tpu.matmul %120, %105, %cst_84 {dimension_numbers = #tpu.dot_dimension_numbers<[1], [0], [0], [1], [0, 0, 1, 1], [], []>} : vector<8x8xbf16>, vector<8x32xbf16>, vector<8x32xf32> -> vector<8x32xf32>
    %122 = vector.extract_strided_slice %53 {offsets = [0, 96], sizes = [8, 32], strides = [1, 1]} : vector<8x128xf32> to vector<8x32xf32>
    %123 = arith.truncf %122 : vector<8x32xf32> to vector<8x32xbf16>
    %124 = vector.extract_strided_slice %54 {offsets = [0, 96], sizes = [8, 32], strides = [1, 1]} : vector<8x128xf32> to vector<8x32xf32>
    %125 = arith.truncf %124 : vector<8x32xf32> to vector<8x32xbf16>
    %126 = vector.extract_strided_slice %55 {offsets = [0, 96], sizes = [8, 32], strides = [1, 1]} : vector<8x128xf32> to vector<8x32xf32>
    %127 = arith.truncf %126 : vector<8x32xf32> to vector<8x32xbf16>
    "tpu.trace_start"() <{level = 10 : i32, message = "qd,kd->qk"}> : () -> ()
    %cst_85 = arith.constant dense<0.000000e+00> : vector<8x8xf32>
    %128 = tpu.matmul %123, %125, %cst_85 {dimension_numbers = #tpu.dot_dimension_numbers<[1], [1], [0], [0], [0, 0, 1, 0], [], []>} : vector<8x32xbf16>, vector<8x32xbf16>, vector<8x8xf32> -> vector<8x8xf32>
    "tpu.trace_stop"() : () -> ()
    %cst_86 = arith.constant 0.176776692 : f32
    %129 = vector.broadcast %cst_86 : f32 to vector<8x8xf32>
    %130 = arith.mulf %128, %129 : vector<8x8xf32>
    %131 = arith.addf %130, %6 : vector<8x8xf32>
    %cst_87 = arith.constant dense<0xFF800000> : vector<8xf32>
    %132 = vector.multi_reduction <maximumf>, %131, %cst_87 [1] : vector<8x8xf32> to vector<8xf32>
    %133 = vector.shape_cast %132 : vector<8xf32> to vector<8x1xf32>
    %134 = vector.broadcast %133 : vector<8x1xf32> to vector<8x8xf32>
    %135 = arith.subf %131, %134 : vector<8x8xf32>
    %136 = math.exp %135 : vector<8x8xf32>
    %cst_88 = arith.constant dense<0.000000e+00> : vector<8xf32>
    %137 = vector.multi_reduction <add>, %136, %cst_88 [1] : vector<8x8xf32> to vector<8xf32>
    %138 = vector.shape_cast %137 : vector<8xf32> to vector<8x1xf32>
    %139 = tpu.reciprocal %138 {approx = true} : vector<8x1xf32> -> vector<8x1xf32>
    %140 = vector.broadcast %139 : vector<8x1xf32> to vector<8x8xf32>
    %141 = arith.mulf %136, %140 : vector<8x8xf32>
    %142 = arith.truncf %141 : vector<8x8xf32> to vector<8x8xbf16>
    %cst_89 = arith.constant dense<0.000000e+00> : vector<8x32xf32>
    %143 = tpu.matmul %142, %127, %cst_89 {dimension_numbers = #tpu.dot_dimension_numbers<[1], [0], [0], [1], [0, 0, 1, 1], [], []>} : vector<8x8xbf16>, vector<8x32xbf16>, vector<8x32xf32> -> vector<8x32xf32>
    %144 = tpu.concatenate %77, %99, %121, %143 in 1 : vector<8x32xf32>, vector<8x32xf32>, vector<8x32xf32>, vector<8x32xf32> -> vector<8x128xf32>
    %145 = arith.truncf %144 : vector<8x128xf32> to vector<8x128xbf16>
    %cst_90 = arith.constant dense<0.000000e+00> : vector<8x128xf32>
    %146 = tpu.matmul %145, %14, %cst_90 {dimension_numbers = #tpu.dot_dimension_numbers<[1], [0], [0], [1], [0, 0, 1, 1], [], []>} : vector<8x128xbf16>, vector<128x128xbf16>, vector<8x128xf32> -> vector<8x128xf32>
    %147 = vector.broadcast %16 : vector<1x128xf32> to vector<8x128xf32>
    %148 = arith.addf %146, %147 : vector<8x128xf32>
    %149 = arith.addf %148, %3 : vector<8x128xf32>
    %cst_91 = arith.constant dense<0.000000e+00> : vector<8xf32>
    %150 = vector.multi_reduction <add>, %149, %cst_91 [1] : vector<8x128xf32> to vector<8xf32>
    %151 = vector.shape_cast %150 : vector<8xf32> to vector<8x1xf32>
    %cst_92 = arith.constant 1.280000e+02 : f32
    %152 = vector.broadcast %cst_92 : f32 to vector<8x1xf32>
    %153 = arith.divf %151, %152 : vector<8x1xf32>
    %154 = vector.broadcast %153 : vector<8x1xf32> to vector<8x128xf32>
    %155 = arith.subf %149, %154 : vector<8x128xf32>
    %156 = vector.broadcast %153 : vector<8x1xf32> to vector<8x128xf32>
    %157 = arith.subf %149, %156 : vector<8x128xf32>
    %158 = arith.mulf %155, %157 : vector<8x128xf32>
    %cst_93 = arith.constant dense<0.000000e+00> : vector<8xf32>
    %159 = vector.multi_reduction <add>, %158, %cst_93 [1] : vector<8x128xf32> to vector<8xf32>
    %160 = vector.shape_cast %159 : vector<8xf32> to vector<8x1xf32>
    %cst_94 = arith.constant 1.280000e+02 : f32
    %161 = vector.broadcast %cst_94 : f32 to vector<8x1xf32>
    %162 = arith.divf %160, %161 : vector<8x1xf32>
    %163 = vector.broadcast %153 : vector<8x1xf32> to vector<8x128xf32>
    %164 = arith.subf %149, %163 : vector<8x128xf32>
    %cst_95 = arith.constant 9.99999974E-6 : f32
    %165 = vector.broadcast %cst_95 : f32 to vector<8x1xf32>
    %166 = arith.addf %162, %165 : vector<8x1xf32>
    %167 = math.rsqrt %166 : vector<8x1xf32>
    %168 = vector.broadcast %167 : vector<8x1xf32> to vector<8x128xf32>
    %169 = arith.mulf %164, %168 : vector<8x128xf32>
    %170 = vector.broadcast %38 : vector<1x128xf32> to vector<8x128xf32>
    %171 = arith.mulf %169, %170 : vector<8x128xf32>
    %172 = vector.broadcast %40 : vector<1x128xf32> to vector<8x128xf32>
    %173 = arith.addf %171, %172 : vector<8x128xf32>
    %174 = arith.truncf %173 : vector<8x128xf32> to vector<8x128xbf16>
    %cst_96 = arith.constant dense<0.000000e+00> : vector<8x128xf32>
    %175 = tpu.matmul %174, %18, %cst_96 {dimension_numbers = #tpu.dot_dimension_numbers<[1], [0], [0], [1], [0, 0, 1, 1], [], []>} : vector<8x128xbf16>, vector<128x128xbf16>, vector<8x128xf32> -> vector<8x128xf32>
    %176 = vector.broadcast %20 : vector<1x128xf32> to vector<8x128xf32>
    %177 = arith.addf %175, %176 : vector<8x128xf32>
    %178 = arith.truncf %5 : vector<16x128xf32> to vector<16x128xbf16>
    %cst_97 = arith.constant dense<0.000000e+00> : vector<16x256xf32>
    %179 = tpu.matmul %178, %22, %cst_97 {dimension_numbers = #tpu.dot_dimension_numbers<[1], [0], [0], [1], [0, 0, 1, 1], [], []>} : vector<16x128xbf16>, vector<128x256xbf16>, vector<16x256xf32> -> vector<16x256xf32>
    %180 = vector.broadcast %24 : vector<1x256xf32> to vector<16x256xf32>
    %181 = arith.addf %179, %180 : vector<16x256xf32>
    %182 = vector.extract_strided_slice %181 {offsets = [0, 0], sizes = [16, 128], strides = [1, 1]} : vector<16x256xf32> to vector<16x128xf32>
    %183 = vector.extract_strided_slice %181 {offsets = [0, 128], sizes = [16, 128], strides = [1, 1]} : vector<16x256xf32> to vector<16x128xf32>
    %184 = vector.extract_strided_slice %177 {offsets = [0, 0], sizes = [8, 32], strides = [1, 1]} : vector<8x128xf32> to vector<8x32xf32>
    %185 = arith.truncf %184 : vector<8x32xf32> to vector<8x32xbf16>
    %186 = vector.extract_strided_slice %182 {offsets = [0, 0], sizes = [16, 32], strides = [1, 1]} : vector<16x128xf32> to vector<16x32xf32>
    %187 = arith.truncf %186 : vector<16x32xf32> to vector<16x32xbf16>
    %188 = vector.extract_strided_slice %183 {offsets = [0, 0], sizes = [16, 32], strides = [1, 1]} : vector<16x128xf32> to vector<16x32xf32>
    %189 = arith.truncf %188 : vector<16x32xf32> to vector<16x32xbf16>
    "tpu.trace_start"() <{level = 10 : i32, message = "qd,kd->qk"}> : () -> ()
    %cst_98 = arith.constant dense<0.000000e+00> : vector<8x16xf32>
    %190 = tpu.matmul %185, %187, %cst_98 {dimension_numbers = #tpu.dot_dimension_numbers<[1], [1], [0], [0], [0, 0, 1, 0], [], []>} : vector<8x32xbf16>, vector<16x32xbf16>, vector<8x16xf32> -> vector<8x16xf32>
    "tpu.trace_stop"() : () -> ()
    %cst_99 = arith.constant 0.176776692 : f32
    %191 = vector.broadcast %cst_99 : f32 to vector<8x16xf32>
    %192 = arith.mulf %190, %191 : vector<8x16xf32>
    %193 = vector.broadcast %8 : vector<1x16xf32> to vector<8x16xf32>
    %194 = arith.addf %192, %193 : vector<8x16xf32>
    %cst_100 = arith.constant dense<0xFF800000> : vector<8xf32>
    %195 = vector.multi_reduction <maximumf>, %194, %cst_100 [1] : vector<8x16xf32> to vector<8xf32>
    %196 = vector.shape_cast %195 : vector<8xf32> to vector<8x1xf32>
    %197 = vector.broadcast %196 : vector<8x1xf32> to vector<8x16xf32>
    %198 = arith.subf %194, %197 : vector<8x16xf32>
    %199 = math.exp %198 : vector<8x16xf32>
    %cst_101 = arith.constant dense<0.000000e+00> : vector<8xf32>
    %200 = vector.multi_reduction <add>, %199, %cst_101 [1] : vector<8x16xf32> to vector<8xf32>
    %201 = vector.shape_cast %200 : vector<8xf32> to vector<8x1xf32>
    %202 = tpu.reciprocal %201 {approx = true} : vector<8x1xf32> -> vector<8x1xf32>
    %203 = vector.broadcast %202 : vector<8x1xf32> to vector<8x16xf32>
    %204 = arith.mulf %199, %203 : vector<8x16xf32>
    %205 = arith.truncf %204 : vector<8x16xf32> to vector<8x16xbf16>
    %cst_102 = arith.constant dense<0.000000e+00> : vector<8x32xf32>
    %206 = tpu.matmul %205, %189, %cst_102 {dimension_numbers = #tpu.dot_dimension_numbers<[1], [0], [0], [1], [0, 0, 1, 1], [], []>} : vector<8x16xbf16>, vector<16x32xbf16>, vector<8x32xf32> -> vector<8x32xf32>
    %207 = vector.extract_strided_slice %177 {offsets = [0, 32], sizes = [8, 32], strides = [1, 1]} : vector<8x128xf32> to vector<8x32xf32>
    %208 = arith.truncf %207 : vector<8x32xf32> to vector<8x32xbf16>
    %209 = vector.extract_strided_slice %182 {offsets = [0, 32], sizes = [16, 32], strides = [1, 1]} : vector<16x128xf32> to vector<16x32xf32>
    %210 = arith.truncf %209 : vector<16x32xf32> to vector<16x32xbf16>
    %211 = vector.extract_strided_slice %183 {offsets = [0, 32], sizes = [16, 32], strides = [1, 1]} : vector<16x128xf32> to vector<16x32xf32>
    %212 = arith.truncf %211 : vector<16x32xf32> to vector<16x32xbf16>
    "tpu.trace_start"() <{level = 10 : i32, message = "qd,kd->qk"}> : () -> ()
    %cst_103 = arith.constant dense<0.000000e+00> : vector<8x16xf32>
    %213 = tpu.matmul %208, %210, %cst_103 {dimension_numbers = #tpu.dot_dimension_numbers<[1], [1], [0], [0], [0, 0, 1, 0], [], []>} : vector<8x32xbf16>, vector<16x32xbf16>, vector<8x16xf32> -> vector<8x16xf32>
    "tpu.trace_stop"() : () -> ()
    %cst_104 = arith.constant 0.176776692 : f32
    %214 = vector.broadcast %cst_104 : f32 to vector<8x16xf32>
    %215 = arith.mulf %213, %214 : vector<8x16xf32>
    %216 = vector.broadcast %8 : vector<1x16xf32> to vector<8x16xf32>
    %217 = arith.addf %215, %216 : vector<8x16xf32>
    %cst_105 = arith.constant dense<0xFF800000> : vector<8xf32>
    %218 = vector.multi_reduction <maximumf>, %217, %cst_105 [1] : vector<8x16xf32> to vector<8xf32>
    %219 = vector.shape_cast %218 : vector<8xf32> to vector<8x1xf32>
    %220 = vector.broadcast %219 : vector<8x1xf32> to vector<8x16xf32>
    %221 = arith.subf %217, %220 : vector<8x16xf32>
    %222 = math.exp %221 : vector<8x16xf32>
    %cst_106 = arith.constant dense<0.000000e+00> : vector<8xf32>
    %223 = vector.multi_reduction <add>, %222, %cst_106 [1] : vector<8x16xf32> to vector<8xf32>
    %224 = vector.shape_cast %223 : vector<8xf32> to vector<8x1xf32>
    %225 = tpu.reciprocal %224 {approx = true} : vector<8x1xf32> -> vector<8x1xf32>
    %226 = vector.broadcast %225 : vector<8x1xf32> to vector<8x16xf32>
    %227 = arith.mulf %222, %226 : vector<8x16xf32>
    %228 = arith.truncf %227 : vector<8x16xf32> to vector<8x16xbf16>
    %cst_107 = arith.constant dense<0.000000e+00> : vector<8x32xf32>
    %229 = tpu.matmul %228, %212, %cst_107 {dimension_numbers = #tpu.dot_dimension_numbers<[1], [0], [0], [1], [0, 0, 1, 1], [], []>} : vector<8x16xbf16>, vector<16x32xbf16>, vector<8x32xf32> -> vector<8x32xf32>
    %230 = vector.extract_strided_slice %177 {offsets = [0, 64], sizes = [8, 32], strides = [1, 1]} : vector<8x128xf32> to vector<8x32xf32>
    %231 = arith.truncf %230 : vector<8x32xf32> to vector<8x32xbf16>
    %232 = vector.extract_strided_slice %182 {offsets = [0, 64], sizes = [16, 32], strides = [1, 1]} : vector<16x128xf32> to vector<16x32xf32>
    %233 = arith.truncf %232 : vector<16x32xf32> to vector<16x32xbf16>
    %234 = vector.extract_strided_slice %183 {offsets = [0, 64], sizes = [16, 32], strides = [1, 1]} : vector<16x128xf32> to vector<16x32xf32>
    %235 = arith.truncf %234 : vector<16x32xf32> to vector<16x32xbf16>
    "tpu.trace_start"() <{level = 10 : i32, message = "qd,kd->qk"}> : () -> ()
    %cst_108 = arith.constant dense<0.000000e+00> : vector<8x16xf32>
    %236 = tpu.matmul %231, %233, %cst_108 {dimension_numbers = #tpu.dot_dimension_numbers<[1], [1], [0], [0], [0, 0, 1, 0], [], []>} : vector<8x32xbf16>, vector<16x32xbf16>, vector<8x16xf32> -> vector<8x16xf32>
    "tpu.trace_stop"() : () -> ()
    %cst_109 = arith.constant 0.176776692 : f32
    %237 = vector.broadcast %cst_109 : f32 to vector<8x16xf32>
    %238 = arith.mulf %236, %237 : vector<8x16xf32>
    %239 = vector.broadcast %8 : vector<1x16xf32> to vector<8x16xf32>
    %240 = arith.addf %238, %239 : vector<8x16xf32>
    %cst_110 = arith.constant dense<0xFF800000> : vector<8xf32>
    %241 = vector.multi_reduction <maximumf>, %240, %cst_110 [1] : vector<8x16xf32> to vector<8xf32>
    %242 = vector.shape_cast %241 : vector<8xf32> to vector<8x1xf32>
    %243 = vector.broadcast %242 : vector<8x1xf32> to vector<8x16xf32>
    %244 = arith.subf %240, %243 : vector<8x16xf32>
    %245 = math.exp %244 : vector<8x16xf32>
    %cst_111 = arith.constant dense<0.000000e+00> : vector<8xf32>
    %246 = vector.multi_reduction <add>, %245, %cst_111 [1] : vector<8x16xf32> to vector<8xf32>
    %247 = vector.shape_cast %246 : vector<8xf32> to vector<8x1xf32>
    %248 = tpu.reciprocal %247 {approx = true} : vector<8x1xf32> -> vector<8x1xf32>
    %249 = vector.broadcast %248 : vector<8x1xf32> to vector<8x16xf32>
    %250 = arith.mulf %245, %249 : vector<8x16xf32>
    %251 = arith.truncf %250 : vector<8x16xf32> to vector<8x16xbf16>
    %cst_112 = arith.constant dense<0.000000e+00> : vector<8x32xf32>
    %252 = tpu.matmul %251, %235, %cst_112 {dimension_numbers = #tpu.dot_dimension_numbers<[1], [0], [0], [1], [0, 0, 1, 1], [], []>} : vector<8x16xbf16>, vector<16x32xbf16>, vector<8x32xf32> -> vector<8x32xf32>
    %253 = vector.extract_strided_slice %177 {offsets = [0, 96], sizes = [8, 32], strides = [1, 1]} : vector<8x128xf32> to vector<8x32xf32>
    %254 = arith.truncf %253 : vector<8x32xf32> to vector<8x32xbf16>
    %255 = vector.extract_strided_slice %182 {offsets = [0, 96], sizes = [16, 32], strides = [1, 1]} : vector<16x128xf32> to vector<16x32xf32>
    %256 = arith.truncf %255 : vector<16x32xf32> to vector<16x32xbf16>
    %257 = vector.extract_strided_slice %183 {offsets = [0, 96], sizes = [16, 32], strides = [1, 1]} : vector<16x128xf32> to vector<16x32xf32>
    %258 = arith.truncf %257 : vector<16x32xf32> to vector<16x32xbf16>
    "tpu.trace_start"() <{level = 10 : i32, message = "qd,kd->qk"}> : () -> ()
    %cst_113 = arith.constant dense<0.000000e+00> : vector<8x16xf32>
    %259 = tpu.matmul %254, %256, %cst_113 {dimension_numbers = #tpu.dot_dimension_numbers<[1], [1], [0], [0], [0, 0, 1, 0], [], []>} : vector<8x32xbf16>, vector<16x32xbf16>, vector<8x16xf32> -> vector<8x16xf32>
    "tpu.trace_stop"() : () -> ()
    %cst_114 = arith.constant 0.176776692 : f32
    %260 = vector.broadcast %cst_114 : f32 to vector<8x16xf32>
    %261 = arith.mulf %259, %260 : vector<8x16xf32>
    %262 = vector.broadcast %8 : vector<1x16xf32> to vector<8x16xf32>
    %263 = arith.addf %261, %262 : vector<8x16xf32>
    %cst_115 = arith.constant dense<0xFF800000> : vector<8xf32>
    %264 = vector.multi_reduction <maximumf>, %263, %cst_115 [1] : vector<8x16xf32> to vector<8xf32>
    %265 = vector.shape_cast %264 : vector<8xf32> to vector<8x1xf32>
    %266 = vector.broadcast %265 : vector<8x1xf32> to vector<8x16xf32>
    %267 = arith.subf %263, %266 : vector<8x16xf32>
    %268 = math.exp %267 : vector<8x16xf32>
    %cst_116 = arith.constant dense<0.000000e+00> : vector<8xf32>
    %269 = vector.multi_reduction <add>, %268, %cst_116 [1] : vector<8x16xf32> to vector<8xf32>
    %270 = vector.shape_cast %269 : vector<8xf32> to vector<8x1xf32>
    %271 = tpu.reciprocal %270 {approx = true} : vector<8x1xf32> -> vector<8x1xf32>
    %272 = vector.broadcast %271 : vector<8x1xf32> to vector<8x16xf32>
    %273 = arith.mulf %268, %272 : vector<8x16xf32>
    %274 = arith.truncf %273 : vector<8x16xf32> to vector<8x16xbf16>
    %cst_117 = arith.constant dense<0.000000e+00> : vector<8x32xf32>
    %275 = tpu.matmul %274, %258, %cst_117 {dimension_numbers = #tpu.dot_dimension_numbers<[1], [0], [0], [1], [0, 0, 1, 1], [], []>} : vector<8x16xbf16>, vector<16x32xbf16>, vector<8x32xf32> -> vector<8x32xf32>
    %276 = tpu.concatenate %206, %229, %252, %275 in 1 : vector<8x32xf32>, vector<8x32xf32>, vector<8x32xf32>, vector<8x32xf32> -> vector<8x128xf32>
    %277 = arith.truncf %276 : vector<8x128xf32> to vector<8x128xbf16>
    %cst_118 = arith.constant dense<0.000000e+00> : vector<8x128xf32>
    %278 = tpu.matmul %277, %26, %cst_118 {dimension_numbers = #tpu.dot_dimension_numbers<[1], [0], [0], [1], [0, 0, 1, 1], [], []>} : vector<8x128xbf16>, vector<128x128xbf16>, vector<8x128xf32> -> vector<8x128xf32>
    %279 = vector.broadcast %28 : vector<1x128xf32> to vector<8x128xf32>
    %280 = arith.addf %278, %279 : vector<8x128xf32>
    %281 = arith.addf %280, %173 : vector<8x128xf32>
    %cst_119 = arith.constant dense<0.000000e+00> : vector<8xf32>
    %282 = vector.multi_reduction <add>, %281, %cst_119 [1] : vector<8x128xf32> to vector<8xf32>
    %283 = vector.shape_cast %282 : vector<8xf32> to vector<8x1xf32>
    %cst_120 = arith.constant 1.280000e+02 : f32
    %284 = vector.broadcast %cst_120 : f32 to vector<8x1xf32>
    %285 = arith.divf %283, %284 : vector<8x1xf32>
    %286 = vector.broadcast %285 : vector<8x1xf32> to vector<8x128xf32>
    %287 = arith.subf %281, %286 : vector<8x128xf32>
    %288 = vector.broadcast %285 : vector<8x1xf32> to vector<8x128xf32>
    %289 = arith.subf %281, %288 : vector<8x128xf32>
    %290 = arith.mulf %287, %289 : vector<8x128xf32>
    %cst_121 = arith.constant dense<0.000000e+00> : vector<8xf32>
    %291 = vector.multi_reduction <add>, %290, %cst_121 [1] : vector<8x128xf32> to vector<8xf32>
    %292 = vector.shape_cast %291 : vector<8xf32> to vector<8x1xf32>
    %cst_122 = arith.constant 1.280000e+02 : f32
    %293 = vector.broadcast %cst_122 : f32 to vector<8x1xf32>
    %294 = arith.divf %292, %293 : vector<8x1xf32>
    %295 = vector.broadcast %285 : vector<8x1xf32> to vector<8x128xf32>
    %296 = arith.subf %281, %295 : vector<8x128xf32>
    %cst_123 = arith.constant 9.99999974E-6 : f32
    %297 = vector.broadcast %cst_123 : f32 to vector<8x1xf32>
    %298 = arith.addf %294, %297 : vector<8x1xf32>
    %299 = math.rsqrt %298 : vector<8x1xf32>
    %300 = vector.broadcast %299 : vector<8x1xf32> to vector<8x128xf32>
    %301 = arith.mulf %296, %300 : vector<8x128xf32>
    %302 = vector.broadcast %42 : vector<1x128xf32> to vector<8x128xf32>
    %303 = arith.mulf %301, %302 : vector<8x128xf32>
    %304 = vector.broadcast %44 : vector<1x128xf32> to vector<8x128xf32>
    %305 = arith.addf %303, %304 : vector<8x128xf32>
    %306 = arith.truncf %305 : vector<8x128xf32> to vector<8x128xbf16>
    %cst_124 = arith.constant dense<0.000000e+00> : vector<8x512xf32>
    %307 = tpu.matmul %306, %30, %cst_124 {dimension_numbers = #tpu.dot_dimension_numbers<[1], [0], [0], [1], [0, 0, 1, 1], [], []>} : vector<8x128xbf16>, vector<128x512xbf16>, vector<8x512xf32> -> vector<8x512xf32>
    %308 = vector.broadcast %32 : vector<1x512xf32> to vector<8x512xf32>
    %309 = arith.addf %307, %308 : vector<8x512xf32>
    %cst_125 = arith.constant 0.000000e+00 : f32
    %310 = vector.broadcast %cst_125 : f32 to vector<8x512xf32>
    %311 = arith.maximumf %309, %310 : vector<8x512xf32>
    %312 = arith.truncf %311 : vector<8x512xf32> to vector<8x512xbf16>
    %cst_126 = arith.constant dense<0.000000e+00> : vector<8x128xf32>
    %313 = tpu.matmul %312, %34, %cst_126 {dimension_numbers = #tpu.dot_dimension_numbers<[1], [0], [0], [1], [0, 0, 1, 1], [], []>} : vector<8x512xbf16>, vector<512x128xbf16>, vector<8x128xf32> -> vector<8x128xf32>
    %314 = vector.broadcast %36 : vector<1x128xf32> to vector<8x128xf32>
    %315 = arith.addf %313, %314 : vector<8x128xf32>
    %316 = arith.addf %315, %305 : vector<8x128xf32>
    %cst_127 = arith.constant dense<0.000000e+00> : vector<8xf32>
    %317 = vector.multi_reduction <add>, %316, %cst_127 [1] : vector<8x128xf32> to vector<8xf32>
    %318 = vector.shape_cast %317 : vector<8xf32> to vector<8x1xf32>
    %cst_128 = arith.constant 1.280000e+02 : f32
    %319 = vector.broadcast %cst_128 : f32 to vector<8x1xf32>
    %320 = arith.divf %318, %319 : vector<8x1xf32>
    %321 = vector.broadcast %320 : vector<8x1xf32> to vector<8x128xf32>
    %322 = arith.subf %316, %321 : vector<8x128xf32>
    %323 = vector.broadcast %320 : vector<8x1xf32> to vector<8x128xf32>
    %324 = arith.subf %316, %323 : vector<8x128xf32>
    %325 = arith.mulf %322, %324 : vector<8x128xf32>
    %cst_129 = arith.constant dense<0.000000e+00> : vector<8xf32>
    %326 = vector.multi_reduction <add>, %325, %cst_129 [1] : vector<8x128xf32> to vector<8xf32>
    %327 = vector.shape_cast %326 : vector<8xf32> to vector<8x1xf32>
    %cst_130 = arith.constant 1.280000e+02 : f32
    %328 = vector.broadcast %cst_130 : f32 to vector<8x1xf32>
    %329 = arith.divf %327, %328 : vector<8x1xf32>
    %330 = vector.broadcast %320 : vector<8x1xf32> to vector<8x128xf32>
    %331 = arith.subf %316, %330 : vector<8x128xf32>
    %cst_131 = arith.constant 9.99999974E-6 : f32
    %332 = vector.broadcast %cst_131 : f32 to vector<8x1xf32>
    %333 = arith.addf %329, %332 : vector<8x1xf32>
    %334 = math.rsqrt %333 : vector<8x1xf32>
    %335 = vector.broadcast %334 : vector<8x1xf32> to vector<8x128xf32>
    %336 = arith.mulf %331, %335 : vector<8x128xf32>
    %337 = vector.broadcast %46 : vector<1x128xf32> to vector<8x128xf32>
    %338 = arith.mulf %336, %337 : vector<8x128xf32>
    %339 = vector.broadcast %48 : vector<1x128xf32> to vector<8x128xf32>
    %340 = arith.addf %338, %339 : vector<8x128xf32>
    %c0_132 = arith.constant 0 : index
    %c0_133 = arith.constant 0 : index
    %341 = vector.load %arg27[%c0_132, %c0_133] : memref<8x128xf32, #tpu.memory_space<vmem>>, vector<8x128xf32>
    tpu.vector_store %arg27[%c0_132, %c0_133], %340 {strides = array<i32>} : memref<8x128xf32, #tpu.memory_space<vmem>>, vector<8x128xf32>,
    %c0_134 = arith.constant 0 : index
    %c0_135 = arith.constant 0 : index
    %c0_136 = arith.constant 0 : index
    %342 = vector.load %arg26[%c0_134, %c0_135, %c0_136] : memref<1x8x128xf32, #tpu.memory_space<vmem>>, vector<1x8x128xf32>
    %343 = vector.shape_cast %342 : vector<1x8x128xf32> to vector<8x128xf32>
    %344 = vector.shape_cast %340 : vector<8x128xf32> to vector<1x8x128xf32>
    tpu.vector_store %arg26[%c0_134, %c0_135, %c0_136], %344 {strides = array<i32>} : memref<1x8x128xf32, #tpu.memory_space<vmem>>, vector<1x8x128xf32>,
    return
  }
  func.func @transform_0(%arg0: i32, %arg1: i32) -> (i32, i32, i32) {
    %c0_i32 = arith.constant 0 : i32
    %c0_i32_0 = arith.constant 0 : i32
    %c0_i32_1 = arith.constant 0 : i32
    return %arg0, %c0_i32, %c0_i32_0 : i32, i32, i32
  }
  func.func @transform_1(%arg0: i32, %arg1: i32) -> (i32, i32, i32) {
    %c0_i32 = arith.constant 0 : i32
    %c0_i32_0 = arith.constant 0 : i32
    %c0_i32_1 = arith.constant 0 : i32
    return %arg0, %c0_i32, %c0_i32_0 : i32, i32, i32
  }
  func.func @transform_2(%arg0: i32, %arg1: i32) -> (i32, i32) {
    %c0_i32 = arith.constant 0 : i32
    %c0_i32_0 = arith.constant 0 : i32
    %c0_i32_1 = arith.constant 0 : i32
    return %c0_i32, %c0_i32_0 : i32, i32
  }
  func.func @transform_3(%arg0: i32, %arg1: i32) -> (i32, i32, i32) {
    %c0_i32 = arith.constant 0 : i32
    %c0_i32_0 = arith.constant 0 : i32
    %c0_i32_1 = arith.constant 0 : i32
    return %arg0, %c0_i32, %c0_i32_0 : i32, i32, i32
  }
  func.func @transform_4(%arg0: i32, %arg1: i32) -> (i32, i32, i32) {
    %c0_i32 = arith.constant 0 : i32
    %c0_i32_0 = arith.constant 0 : i32
    %c0_i32_1 = arith.constant 0 : i32
    return %arg1, %c0_i32, %c0_i32_0 : i32, i32, i32
  }
  func.func @transform_5(%arg0: i32, %arg1: i32) -> (i32, i32, i32) {
    %c0_i32 = arith.constant 0 : i32
    %c0_i32_0 = arith.constant 0 : i32
    %c0_i32_1 = arith.constant 0 : i32
    return %arg1, %c0_i32, %c0_i32_0 : i32, i32, i32
  }
  func.func @transform_6(%arg0: i32, %arg1: i32) -> (i32, i32, i32) {
    %c0_i32 = arith.constant 0 : i32
    %c0_i32_0 = arith.constant 0 : i32
    %c0_i32_1 = arith.constant 0 : i32
    return %arg1, %c0_i32, %c0_i32_0 : i32, i32, i32
  }
  func.func @transform_7(%arg0: i32, %arg1: i32) -> (i32, i32, i32) {
    %c0_i32 = arith.constant 0 : i32
    %c0_i32_0 = arith.constant 0 : i32
    %c0_i32_1 = arith.constant 0 : i32
    return %arg1, %c0_i32, %c0_i32_0 : i32, i32, i32
  }
  func.func @transform_8(%arg0: i32, %arg1: i32) -> (i32, i32, i32) {
    %c0_i32 = arith.constant 0 : i32
    %c0_i32_0 = arith.constant 0 : i32
    %c0_i32_1 = arith.constant 0 : i32
    return %arg1, %c0_i32, %c0_i32_0 : i32, i32, i32
  }
  func.func @transform_9(%arg0: i32, %arg1: i32) -> (i32, i32, i32) {
    %c0_i32 = arith.constant 0 : i32
    %c0_i32_0 = arith.constant 0 : i32
    %c0_i32_1 = arith.constant 0 : i32
    return %arg1, %c0_i32, %c0_i32_0 : i32, i32, i32
  }
  func.func @transform_10(%arg0: i32, %arg1: i32) -> (i32, i32, i32) {
    %c0_i32 = arith.constant 0 : i32
    %c0_i32_0 = arith.constant 0 : i32
    %c0_i32_1 = arith.constant 0 : i32
    return %arg1, %c0_i32, %c0_i32_0 : i32, i32, i32
  }
  func.func @transform_11(%arg0: i32, %arg1: i32) -> (i32, i32, i32) {
    %c0_i32 = arith.constant 0 : i32
    %c0_i32_0 = arith.constant 0 : i32
    %c0_i32_1 = arith.constant 0 : i32
    return %arg1, %c0_i32, %c0_i32_0 : i32, i32, i32
  }
  func.func @transform_12(%arg0: i32, %arg1: i32) -> (i32, i32, i32) {
    %c0_i32 = arith.constant 0 : i32
    %c0_i32_0 = arith.constant 0 : i32
    %c0_i32_1 = arith.constant 0 : i32
    return %arg1, %c0_i32, %c0_i32_0 : i32, i32, i32
  }
  func.func @transform_13(%arg0: i32, %arg1: i32) -> (i32, i32, i32) {
    %c0_i32 = arith.constant 0 : i32
    %c0_i32_0 = arith.constant 0 : i32
    %c0_i32_1 = arith.constant 0 : i32
    return %arg1, %c0_i32, %c0_i32_0 : i32, i32, i32
  }
  func.func @transform_14(%arg0: i32, %arg1: i32) -> (i32, i32, i32) {
    %c0_i32 = arith.constant 0 : i32
    %c0_i32_0 = arith.constant 0 : i32
    %c0_i32_1 = arith.constant 0 : i32
    return %arg1, %c0_i32, %c0_i32_0 : i32, i32, i32
  }
  func.func @transform_15(%arg0: i32, %arg1: i32) -> (i32, i32, i32) {
    %c0_i32 = arith.constant 0 : i32
    %c0_i32_0 = arith.constant 0 : i32
    %c0_i32_1 = arith.constant 0 : i32
    return %arg1, %c0_i32, %c0_i32_0 : i32, i32, i32
  }
  func.func @transform_16(%arg0: i32, %arg1: i32) -> (i32, i32, i32) {
    %c0_i32 = arith.constant 0 : i32
    %c0_i32_0 = arith.constant 0 : i32
    %c0_i32_1 = arith.constant 0 : i32
    return %arg1, %c0_i32, %c0_i32_0 : i32, i32, i32
  }
  func.func @transform_17(%arg0: i32, %arg1: i32) -> (i32, i32, i32) {
    %c0_i32 = arith.constant 0 : i32
    %c0_i32_0 = arith.constant 0 : i32
    %c0_i32_1 = arith.constant 0 : i32
    return %arg1, %c0_i32, %c0_i32_0 : i32, i32, i32
  }
  func.func @transform_18(%arg0: i32, %arg1: i32) -> (i32, i32, i32) {
    %c0_i32 = arith.constant 0 : i32
    %c0_i32_0 = arith.constant 0 : i32
    %c0_i32_1 = arith.constant 0 : i32
    return %arg1, %c0_i32, %c0_i32_0 : i32, i32, i32
  }
  func.func @transform_19(%arg0: i32, %arg1: i32) -> (i32, i32, i32) {
    %c0_i32 = arith.constant 0 : i32
    %c0_i32_0 = arith.constant 0 : i32
    %c0_i32_1 = arith.constant 0 : i32
    return %arg1, %c0_i32, %c0_i32_0 : i32, i32, i32
  }
  func.func @transform_20(%arg0: i32, %arg1: i32) -> (i32, i32, i32) {
    %c0_i32 = arith.constant 0 : i32
    %c0_i32_0 = arith.constant 0 : i32
    %c0_i32_1 = arith.constant 0 : i32
    return %arg1, %c0_i32, %c0_i32_0 : i32, i32, i32
  }
  func.func @transform_21(%arg0: i32, %arg1: i32) -> (i32, i32, i32) {
    %c0_i32 = arith.constant 0 : i32
    %c0_i32_0 = arith.constant 0 : i32
    %c0_i32_1 = arith.constant 0 : i32
    return %arg1, %c0_i32, %c0_i32_0 : i32, i32, i32
  }
  func.func @transform_22(%arg0: i32, %arg1: i32) -> (i32, i32, i32) {
    %c0_i32 = arith.constant 0 : i32
    %c0_i32_0 = arith.constant 0 : i32
    %c0_i32_1 = arith.constant 0 : i32
    return %arg1, %c0_i32, %c0_i32_0 : i32, i32, i32
  }
  func.func @transform_23(%arg0: i32, %arg1: i32) -> (i32, i32, i32) {
    %c0_i32 = arith.constant 0 : i32
    %c0_i32_0 = arith.constant 0 : i32
    %c0_i32_1 = arith.constant 0 : i32
    return %arg1, %c0_i32, %c0_i32_0 : i32, i32, i32
  }
  func.func @transform_24(%arg0: i32, %arg1: i32) -> (i32, i32, i32) {
    %c0_i32 = arith.constant 0 : i32
    %c0_i32_0 = arith.constant 0 : i32
    %c0_i32_1 = arith.constant 0 : i32
    return %arg0, %c0_i32, %c0_i32_0 : i32, i32, i32
  }
}

</mosaic_0001>

<bundles_post_ra>
// kernel: tpu_custom_call.1
= control target key start
LH: loop header
LB: loop body
LE: loop exit
PB: predicated region body
PF: predicated region fallthrough
CT: control target
= control target key end

     0   :  { %s6819_s0 = inlined_call_operand.hbm [shape: f32[2,8,128], index: 0, kind: input, shape index: {}]   ;;  %s6820_s1 = inlined_call_operand.hbm [shape: f32[2,16,128], index: 1, kind: input, shape index: {}]   ;;  %s6821_s2 = inlined_call_operand.hbm [shape: f32[8,8], index: 2, kind: input, shape index: {}]   ;;  %s6822_s3 = inlined_call_operand.hbm [shape: f32[2,1,16], index: 3, kind: input, shape index: {}]   ;;  %s6823_s4 = inlined_call_operand.hbm [shape: bf16[2,128,384], index: 4, kind: input, shape index: {}]   ;;  %s6824_s5 = inlined_call_operand.vmem [shape: f32[2,1,384], index: 5, kind: input, shape index: {}]   ;;  %s6825_s6 = inlined_call_operand.hbm [shape: bf16[2,128,128], index: 6, kind: input, shape index: {}]   ;;  %s6826_s7 = inlined_call_operand.vmem [shape: f32[2,1,128], index: 7, kind: input, shape index: {}]   ;;  %s6827_s8 = inlined_call_operand.hbm [shape: bf16[2,128,128], index: 8, kind: input, shape index: {}]   ;;  %s6828_s9 = inlined_call_operand.vmem [shape: f32[2,1,128], index: 9, kind: input, shape index: {}]   ;;  %s6829_s10 = inlined_call_operand.hbm [shape: bf16[2,128,256], index: 10, kind: input, shape index: {}]   ;;  %s6830_s11 = inlined_call_operand.vmem [shape: f32[2,1,256], index: 11, kind: input, shape index: {}]   ;;  %s6831_s12 = inlined_call_operand.hbm [shape: bf16[2,128,128], index: 12, kind: input, shape index: {}]   ;;  %s6832_s13 = inlined_call_operand.vmem [shape: f32[2,1,128], index: 13, kind: input, shape index: {}]   ;;  %s6833_s14 = inlined_call_operand.hbm [shape: bf16[2,128,512], index: 14, kind: input, shape index: {}]   ;;  %s6834_s15 = inlined_call_operand.vmem [shape: f32[2,1,512], index: 15, kind: input, shape index: {}]   ;;  %s6835_s16 = inlined_call_operand.hbm [shape: bf16[2,512,128], index: 16, kind: input, shape index: {}]   ;;  %s6836_s17 = inlined_call_operand.vmem [shape: f32[2,1,128], index: 17, kind: input, shape index: {}]   ;;  %s6837_s18 = inlined_call_operand.vmem [shape: f32[2,1,128], index: 18, kind: input, shape index: {}]   ;;  %s6838_s19 = inlined_call_operand.vmem [shape: f32[2,1,128], index: 19, kind: input, shape index: {}]   ;;  %s6839_s20 = inlined_call_operand.vmem [shape: f32[2,1,128], index: 20, kind: input, shape index: {}]   ;;  %s6840_s21 = inlined_call_operand.vmem [shape: f32[2,1,128], index: 21, kind: input, shape index: {}]   ;;  %s6841_s22 = inlined_call_operand.vmem [shape: f32[2,1,128], index: 22, kind: input, shape index: {}]   ;;  %s6842_s23 = inlined_call_operand.vmem [shape: f32[2,1,128], index: 23, kind: input, shape index: {}]   ;;  %s6843_s24 = inlined_call_operand.hbm [shape: f32[2,8,128], index: 24, kind: output, shape index: {}]  }
   0x1   :  { %6909 = sst [smem:[#allocation57_spill]] %s6819_s0 }
   0x2   :  { %6910 = sst [smem:[#allocation58_spill]] %s6820_s1 }
   0x3   :  { %6911 = sst [smem:[#allocation59_spill]] %s6821_s2 }
   0x4   :  { %6912 = sst [smem:[#allocation60_spill]] %s6822_s3 }
   0x5   :  { %6913 = sst [smem:[#allocation61_spill]] %s6823_s4 }
   0x6   :  { %6914 = sst [smem:[#allocation62_spill]] %s6824_s5 }
   0x7   :  { %6915 = sst [smem:[#allocation63_spill]] %s6825_s6 }
   0x8   :  { %6916 = sst [smem:[#allocation64_spill]] %s6826_s7 }
   0x9   :  { %6917 = sst [smem:[#allocation65_spill]] %s6827_s8 }
   0xa   :  { %6918 = sst [smem:[#allocation66_spill]] %s6828_s9 }
   0xb   :  { %6919 = sst [smem:[#allocation67_spill]] %s6829_s10 }
   0xc   :  { %6920 = sst [smem:[#allocation68_spill]] %s6830_s11 }
   0xd   :  { %6921 = sst [smem:[#allocation69_spill]] %s6831_s12 }
   0xe   :  { %6922 = sst [smem:[#allocation70_spill]] %s6832_s13 }
   0xf   :  { %6923 = sst [smem:[#allocation71_spill]] %s6833_s14 }
  0x10   :  { %6924 = sst [smem:[#allocation72_spill]] %s6834_s15 }
  0x11   :  { %6925 = sst [smem:[#allocation73_spill]] %s6835_s16 }
  0x12   :  { %6926 = sst [smem:[#allocation74_spill]] %s6836_s17 }
  0x13   :  { %6927 = sst [smem:[#allocation75_spill]] %s6837_s18 }
  0x14   :  { %6928 = sst [smem:[#allocation76_spill]] %s6838_s19 }
  0x15   :  { %6929 = sst [smem:[#allocation77_spill]] %s6839_s20 }
  0x16   :  { %6930 = sst [smem:[#allocation78_spill]] %s6840_s21 }
  0x17   :  { %6931 = sst [smem:[#allocation79_spill]] %s6841_s22 }
  0x18   :  { %6932 = sst [smem:[#allocation80_spill]] %s6842_s23 }
  0x19   :  { %6933 = sst [smem:[#allocation81_spill]] %s6843_s24 }
  0x1a   :  { %29 = vsyncpa [#allocation4], 0 }
  0x1b   :  { %31 = vsyncpa [#allocation4 + $0x1], 0 }
  0x1c   :  { %32 = vsyncpa [#allocation7], 0 }
  0x1d   :  { %34 = vsyncpa [#allocation7 + $0x1], 0 }
  0x1e   :  { %35 = vsyncpa [#allocation10], 0 }
  0x1f   :  { %37 = vsyncpa [#allocation10 + $0x1], 0 }
  0x20   :  { %38 = vsyncpa [#allocation13], 0 }
  0x21   :  { %40 = vsyncpa [#allocation13 + $0x1], 0 }
  0x22   :  { %41 = vsyncpa [#allocation16], 0 }
  0x23   :  { %43 = vsyncpa [#allocation16 + $0x1], 0 }
  0x24   :  { %44 = vsyncpa [#allocation19], 0 }
  0x25   :  { %46 = vsyncpa [#allocation19 + $0x1], 0 }
  0x26   :  { %47 = vsyncpa [#allocation5], 0 }
  0x27   :  { %49 = vsyncpa [#allocation5 + $0x1], 0  ;;  %s5658_s5 = smov 0   ;;  %s5660_s26 = smov 0  }
  0x28   :  { %s5662_s27 = smov 0   ;;  %s5664_s28 = smov 0  }
  0x29   :  { %s5666_s6 = smov 0   ;;  %s5668_s2 = smov 0  }
  0x2a   :  { %s5670_s29 = smov 0   ;;  %s5672_s0 = smov 0  }
  0x2b   :  { %s5674_s7 = smov 0   ;;  %s5676_s30 = smov 0  }
  0x2c   :  { %s5678_s3 = smov 0  }
  0x2d LB: > { %6934 = sst [smem:[#allocation31_spill]] %s5469_s26  ;;  %s5712_s25 = sadd.s32 4294967295, %s5505_s3   ;;  %s5505_s3 = sphi %s5678_s3, %s55_s3   ;;  %s5501_s30 = sphi %s5676_s30, %s7065_s30   ;;  %s5497_s7 = sphi %s5674_s7, %s7064_s7   ;;  %s5493_s0 = sphi %s5672_s0, %s7063_s0   ;;  %s5489_s29 = sphi %s5670_s29, %s7062_s29   ;;  %s5485_s2 = sphi %s5668_s2, %s7061_s2   ;;  %s5481_s6 = sphi %s5666_s6, %s7060_s6   ;;  %s5477_s28 = sphi %s5664_s28, %s7059_s28   ;;  %s5473_s27 = sphi %s5662_s27, %s7058_s27   ;;  %s5469_s26 = sphi %s5660_s26, %s7057_s26   ;;  %s5465_s5 = sphi %s5658_s5, %s7056_s5  }
  0x2e   : > { %6935 = sst [smem:[#allocation32_spill]] %s5473_s27  ;;  %s4156_s8 = sadd.s32 4294967294, %s5505_s3  }
  0x2f   : > { %6936 = sst [smem:[#allocation33_spill]] %s5477_s28  ;;  %p87_p0 = scmp.ne.s32.totalorder %s5481_s6, %s5477_s28 }
  0x30   : > { %6937 = sst [smem:[#allocation34_spill]] %s5481_s6  ;;  %p6854_p1 = scmp.eq.s32.totalorder %s5712_s25, 0 }
  0x31   : > { %6938 = sst [smem:[#allocation35_spill]] %s5485_s2  ;;  %p186_p3 = scmp.ne.s32.totalorder %s5469_s26, %s5465_s5 }
  0x32   : > { %6939 = sst [smem:[#allocation36_spill]] %s5489_s29  ;;  %p5721_p2 = por %p6854_p1, %p87_p0 }
  0x33   : > { %6940 = sst [smem:[#allocation37_spill]] %s5493_s0  ;;  %p710_p5 = scmp.eq.s32.totalorder %s4156_s8, 3 }
  0x34   : > { %6941 = sst [smem:[#allocation38_spill]] %s5497_s7  ;;  %p5730_p6 = por %p186_p3, %p6854_p1 }
  0x35   : > { %6942 = sst [smem:[#allocation39_spill]] %s5501_s30  ;;  %p4157_p7 = scmp.ge.s32.totalorder %s5505_s3, 1 }
  0x36   : > { %6943 = sst [smem:[#allocation40_spill]] %s5505_s3  ;;  %p5735_p8 = por %p710_p5, %p87_p0 }
  0x37   : > { %6944 = sst [smem:[#allocation41_spill]] %s5712_s25  ;;  %p717_p9 = scmp.lt.s32.totalorder %s5505_s3, 5 }
  0x38   : > { %s6945_s1 = scalar_select %p5721_p2, 1, 0 }
  0x39   : > { %s6947_s24 = scalar_select %p5730_p6, 1, 0 }
  0x3a   : > { %6946 = sst [smem:[#allocation42_spill]] %s6945_s1  ;;  %p5740_p10 = pnand %p4157_p7, %p717_p9 }
  0x3b   : > { %6948 = sst [smem:[#allocation43_spill]] %s6947_s24  ;;  %s5507_s0 = smov [#allocation8]  }
  0x3c   : > { %s6949_s28 = scalar_select %p5735_p8, 1, 0 }
  0x3d   : > { %s6951_s4 = scalar_select %p5740_p10, 1, 0 }
  0x3e   : > { %6950 = sst [smem:[#allocation44_spill]] %s6949_s28  ;;  %s730_s5 = sshll.u32 %s5507_s0, 4  ;;  %s731_s5 = int_to_ptr.vmem [resolvable:$true] %s730_s5 }
  0x3f   : > { %6952 = sst [smem:[#allocation45_spill]] %s6951_s4  ;;  %p4683_p11 = pneg %p5740_p10 }
  0x40   : > { %s64_s23 = sadd.s32 1, %s5497_s7  ;;  %s6954_s21 = sld [smem:[#allocation59_spill]] }
  0x41   : > { %p5748_p12 = pnand %p4683_p11, %p6854_p1 }
  0x43   : > { %p5029_p0 = pneg %p5748_p12 }
  0x46   : > { %s5027_s20 = scalar_lea.hbm %s6954_s21, 128 }
  0x47   : > { %p5028_p13 = scmp.ne.s32.totalorder %s6954_s21, %s5027_s20  ;;  %p5034_p7 = scmp.lt.u32.totalorder %s5027_s20, %s6954_s21 }
  0x49   : > { %p5030_p3 = pnand %p5029_p0, %p5028_p13 }
  0x4b   : > { %p5031_p5 = pneg %p5030_p3 }
  0x4d   : > { %p5036_p9 = pnand %p5034_p7, %p5031_p5 }
  0x4f   : > { %5039 = shalt.err (!%p5036_p9)
}
  0x50   : > { %s5040_s15 = scalar_lea.vmem %s731_s5, 128  ;;  %p5048_p8 = scmp.lt.s32.totalorder %s731_s5, %s731_s5 }
  0x51   : > { %p5041_p11 = scmp.ne.s32.totalorder %s731_s5, %s5040_s15  ;;  %p5049_p6 = scmp.lt.s32.totalorder %s5040_s15, %s5040_s15 }
  0x53   : > { %p5043_p1 = pnand %p5041_p11, %p5029_p0  ;;  %p5050_p2 = por %p5049_p6, %p5048_p8 }
  0x55   : > { %p5044_p4 = pneg %p5043_p1 }
  0x57   : > { %p5051_p10 = pnand %p5050_p2, %p5044_p4 }
  0x59   : > { %5054 = shalt.err (!%p5051_p10)
}
  0x5a   : > { %4686 = dma.hbm_to_vmem [thread:$0]  (!%p5748_p12), %s6954_s21, 128, %s731_s5, [#allocation7]  }
  0x5b   : > { %p65_p1 = scmp.ge.s32.totalorder %s64_s23, 2  ;;  %s67_s15 = sadd.s32 1, %s5501_s30 }
  0x5c   : > { %p704_p2 = scmp.eq.s32.totalorder %s5712_s25, 3  ;;  %p81_p4 = scmp.ne.s32.totalorder %s5485_s2, %s5481_s6 }
  0x5d   : > { %s7067_s23 = smov (%p65_p1, %s64_s23), 0  ;;  %s7069_s15 = smov (!%p65_p1, %s67_s15), %s5501_s30 }
  0x5e   : > { %6955 = sst [smem:[#allocation46_spill]] %s7067_s23  ;;  %p82_p6 = scmp.eq.s32.totalorder %s5505_s3, 0 }
  0x5f   : > { %s170_s17 = ssub.s32 %s5497_s7, %s7067_s23  ;;  %p69_p8 = scmp.ge.s32.totalorder %s7069_s15, 2 }
  0x60   : > { %p171_p10 = scmp.eq.s32.totalorder %s170_s17, 0  ;;  %s74_s20 = sadd.s32 1, %s5485_s2 }
  0x61   : > { %p83_p12 = por %p82_p6, %p81_p4  ;;  %s7071_s15 = smov (%p69_p8, %s7069_s15), 0 }
  0x62   : > { %6956 = sst [smem:[#allocation47_spill]] %s7071_s15  ;;  %s6957_s22 = sadd.s32 1, %s5473_s27 }
  0x63   : > { %s5787_s28 = scalar_select %p171_p10, %s5473_s27, %s6957_s22  }
  0x64   : > { %s71_s5 = ssub.s32 %s5501_s30, %s7071_s15  ;;  %p5793_p13 = por %p704_p2, %p81_p4 }
  0x65   : > { %6958 = sst [smem:[#allocation48_spill]] %s5787_s28  ;;  %p72_p0 = scmp.eq.s32.totalorder %s71_s5, 0 }
  0x66   : > { %s6959_s8 = scalar_select %p5793_p13, 1, 0 }
  0x67   : > { %p4723_p3 = scmp.lt.s32.totalorder %s5505_s3, 4  ;;  %s5799_s0 = sand.u32 1, %s5485_s2  }
  0x68   : > { %6960 = sst [smem:[#allocation49_spill]] %s6959_s8  ;;  %s5802_s18 = sand.u32 1, %s5505_s3  }
  0x69   : > { %s5805_s19 = scalar_select %p72_p0, %s5485_s2, %s74_s20  }
  0x6a   : > { %p6962_p5 = scmp.ne.s32.totalorder %s5473_s27, %s5469_s26  ;;  %p5812_p9 = pnand %p4723_p3, %p83_p12 }
  0x6b   : > { %6961 = sst [smem:[#allocation50_spill]] %s5805_s19  ;;  %s4165_s22 = sshll.u32 %s5501_s30, 4 }
  0x6c   : > { %p182_p7 = por %p6962_p5, %p82_p6  ;;  %s6964_s15 = sld [smem:[#allocation60_spill]] }
  0x6d   : > { %s6963_s17 = scalar_select %p5812_p9, 1, 0 }
  0x6e   : > { %s783_s20 = scalar_lea.vmem [#allocation9], %s5799_s0  ;;  %p5825_p11 = pnand %p4723_p3, %p182_p7 }
  0x6f   : > { %s790_s19 = sshll.u32 %s783_s20, 4  ;;  %p5834_p2 = pneg %p5812_p9  ;;  %s5823_s19 = int_to_ptr.vmem [resolvable:$true] %s790_s19 }
  0x70   : > { %s6965_s2 = scalar_select %p5825_p11, 1, 0 }
  0x71   : > { %s6966_s21 = scalar_select %p5834_p2, 1, 0 }
  0x72   : > { %s5820_s23 = scalar_lea.hbm %s6964_s15, %s4165_s22  ;;  %s5060_s20 = scalar_lea.hbm %s6964_s15, 32 }
  0x73   : > { %s5055_s3 = scalar_lea.hbm %s5820_s23, 16  ;;  %p5061_p8 = scmp.lt.u32.totalorder %s5820_s23, %s6964_s15 }
  0x74   : > { %p5056_p1 = scmp.ne.s32.totalorder %s5820_s23, %s5055_s3  ;;  %p5062_p10 = scmp.lt.u32.totalorder %s5060_s20, %s5055_s3 }
  0x75   : > { %p5064_p0 = scmp.lt.u32.totalorder %s5055_s3, %s5820_s23 }
  0x76   : > { %p5058_p4 = pnand %p5834_p2, %p5056_p1  ;;  %p5063_p12 = por %p5062_p10, %p5061_p8 }
  0x78   : > { %p5059_p6 = pneg %p5058_p4  ;;  %p5065_p3 = por %p5064_p0, %p5063_p12 }
  0x7a   : > { %p5066_p5 = pnand %p5065_p3, %p5059_p6 }
  0x7c   : > { %5069 = shalt.err (!%p5066_p5)
}
  0x7d   : > { %s5070_s28 = scalar_lea.vmem %s5823_s19, 16  ;;  %s5508_s22 = smov [#allocation9]  }
  0x7e   : > { %p5071_p7 = scmp.ne.s32.totalorder %s5823_s19, %s5070_s28  ;;  %s5075_s5 = sshll.u32 %s5508_s22, 4  ;;  %s5076_s5 = int_to_ptr.vmem [resolvable:$false] %s5075_s5 }
  0x7f   : > { %s5077_s13 = scalar_lea.vmem %s5076_s5, 32  ;;  %p5078_p13 = scmp.lt.s32.totalorder %s5823_s19, %s5076_s5 }
  0x80   : > { %p5073_p1 = pnand %p5071_p7, %p5834_p2  ;;  %p5079_p11 = scmp.lt.s32.totalorder %s5077_s13, %s5070_s28 }
  0x82   : > { %p5074_p4 = pneg %p5073_p1  ;;  %p5080_p8 = por %p5079_p11, %p5078_p13 }
  0x84   : > { %p5081_p10 = pnand %p5080_p8, %p5074_p4 }
  0x86   : > { %5084 = shalt.err (!%p5081_p10)
}
  0x87   : > { %s6967_s3 = scalar_lea.sflag [#allocation10], %s5802_s18  ;;  %s5860_s8 = sand.u32 1, %s5473_s27  }
  0x88   : > { %4696 = dma.hbm_to_vmem [thread:$0]  (!%p5812_p9), %s5820_s23, 16, %s5823_s19, %s6967_s3  }
  0x89   : > { %s5863_s20 = sshll.u32 %s5860_s8, 6  ;;  %s5866_s28 = sshll.u32 %s5497_s7, 10 }
  0x8a   : > { %s6968_s13 = sld [smem:[#allocation63_spill]]  ;;  %s829_s11 = scalar_lea.vmem [#allocation12], %s5863_s20 }
  0x8b   : > { %s836_s23 = sshll.u32 %s829_s11, 4  ;;  %p6969_p11 = scmp.ne.s32.totalorder %s6965_s2, 0  ;;  %s5875_s23 = int_to_ptr.vmem [resolvable:$true] %s836_s23 }
  0x8d   : > { %p5882_p6 = pneg %p6969_p11 }
  0x8f   : > { %s6970_s27 = scalar_select %p5882_p6, 1, 0 }
  0x90   : > { %s5872_s15 = scalar_lea.hbm %s6968_s13, %s5866_s28  ;;  %s5090_s9 = scalar_lea.hbm %s6968_s13, 2048 }
  0x91   : > { %s5085_s3 = scalar_lea.hbm %s5872_s15, 1024  ;;  %p5091_p3 = scmp.lt.u32.totalorder %s5872_s15, %s6968_s13 }
  0x92   : > { %p5086_p13 = scmp.ne.s32.totalorder %s5872_s15, %s5085_s3  ;;  %p5092_p5 = scmp.lt.u32.totalorder %s5090_s9, %s5085_s3 }
  0x93   : > { %p5094_p1 = scmp.lt.u32.totalorder %s5085_s3, %s5872_s15 }
  0x94   : > { %p5088_p12 = pnand %p5882_p6, %p5086_p13  ;;  %p5093_p7 = por %p5092_p5, %p5091_p3 }
  0x96   : > { %p5089_p0 = pneg %p5088_p12  ;;  %p5095_p4 = por %p5094_p1, %p5093_p7 }
  0x98   : > { %p5096_p8 = pnand %p5095_p4, %p5089_p0 }
  0x9a   : > { %5099 = shalt.err (!%p5096_p8)
}
  0x9b   : > { %s5100_s19 = scalar_lea.vmem %s5875_s23, 1024  ;;  %s5509_s22 = smov [#allocation12]  }
  0x9c   : > { %p5101_p10 = scmp.ne.s32.totalorder %s5875_s23, %s5100_s19  ;;  %s5105_s5 = sshll.u32 %s5509_s22, 4  ;;  %s5106_s5 = int_to_ptr.vmem [resolvable:$false] %s5105_s5 }
  0x9d   : > { %s5107_s29 = scalar_lea.vmem %s5106_s5, 2048  ;;  %p5108_p9 = scmp.lt.s32.totalorder %s5875_s23, %s5106_s5 }
  0x9e   : > { %p5103_p13 = pnand %p5101_p10, %p5882_p6  ;;  %p5109_p2 = scmp.lt.s32.totalorder %s5107_s29, %s5100_s19 }
  0xa0   : > { %p5104_p12 = pneg %p5103_p13  ;;  %p5110_p3 = por %p5109_p2, %p5108_p9 }
  0xa2   : > { %p5111_p5 = pnand %p5110_p3, %p5104_p12 }
  0xa4   : > { %5114 = shalt.err (!%p5111_p5)
}
  0xa5   : > { %s6884_s9 = smov 64   ;;  %s6887_s3 = smov 4  }
  0xa6   : > { %s6971_s11 = scalar_lea.sflag [#allocation13], %s5802_s18  ;;  %s4173_s19 = sshll.u32 %s5860_s8, 7 }
  0xa7   : > { %4702 = dma.hbm_to_vmem [thread:$0]  (!%p6969_p11), %s5872_s15, 1024, %s5875_s23, %s6971_s11, %s6884_s9, %s6884_s9, %s6887_s3  }
  0xa8   : > { %s4361_s22 = sshll.u32 %s5497_s7, 11  ;;  %s6972_s10 = sld [smem:[#allocation67_spill]] }
  0xa9   : > { %s883_s24 = scalar_lea.vmem [#allocation15], %s4173_s19  ;;  %s4179_s25 = sshll.u32 %s5860_s8, 8 }
  0xaa   : > { %s890_s26 = sshll.u32 %s883_s24, 4  ;;  %s6886_s1 = scalar_lea.sflag [#allocation16], %s5802_s18  ;;  %s5917_s26 = int_to_ptr.vmem [resolvable:$true] %s890_s26 }
  0xae   : > { %s5915_s13 = scalar_lea.hbm %s6972_s10, %s4361_s22  ;;  %s5120_s11 = scalar_lea.hbm %s6972_s10, 4096 }
  0xaf   : > { %s5115_s6 = scalar_lea.hbm %s5915_s13, 2048  ;;  %p5121_p7 = scmp.lt.u32.totalorder %s5915_s13, %s6972_s10 }
  0xb0   : > { %p5116_p9 = scmp.ne.s32.totalorder %s5915_s13, %s5115_s6  ;;  %p5122_p1 = scmp.lt.u32.totalorder %s5120_s11, %s5115_s6 }
  0xb1   : > { %p5124_p8 = scmp.lt.u32.totalorder %s5115_s6, %s5915_s13 }
  0xb2   : > { %p5118_p2 = pnand %p5116_p9, %p5882_p6  ;;  %p5123_p4 = por %p5122_p1, %p5121_p7 }
  0xb4   : > { %p5119_p0 = pneg %p5118_p2  ;;  %p5125_p10 = por %p5124_p8, %p5123_p4 }
  0xb6   : > { %p5126_p13 = pnand %p5125_p10, %p5119_p0 }
  0xb8   : > { %5129 = shalt.err (!%p5126_p13)
}
  0xb9   : > { %s5130_s24 = scalar_lea.vmem %s5917_s26, 2048  ;;  %s5512_s19 = smov [#allocation15]  }
  0xba   : > { %p5131_p12 = scmp.ne.s32.totalorder %s5917_s26, %s5130_s24  ;;  %s5135_s29 = sshll.u32 %s5512_s19, 4  ;;  %s5136_s29 = int_to_ptr.vmem [resolvable:$false] %s5135_s29 }
  0xbb   : > { %s5137_s15 = scalar_lea.vmem %s5136_s29, 4096  ;;  %p5138_p9 = scmp.lt.s32.totalorder %s5917_s26, %s5136_s29 }
  0xbc   : > { %p5133_p3 = pnand %p5131_p12, %p5882_p6  ;;  %p5139_p2 = scmp.lt.s32.totalorder %s5137_s15, %s5130_s24 }
  0xbe   : > { %p5134_p5 = pneg %p5133_p3  ;;  %p5140_p7 = por %p5139_p2, %p5138_p9 }
  0xc0   : > { %p5141_p1 = pnand %p5140_p7, %p5134_p5 }
  0xc2   : > { %5144 = shalt.err (!%p5141_p1)
}
  0xc3   : > { %s6889_s6 = smov 128   ;;  %s6890_s23 = smov 8  }
  0xc4   : > { %4708 = dma.hbm_to_vmem [thread:$0]  (!%p6969_p11), %s5915_s13, 2048, %s5917_s26, %s6886_s1, %s6889_s6, %s6889_s6, %s6890_s23  }
  0xc5   : > { %s4363_s11 = sshll.u32 %s5497_s7, 12  ;;  %s6973_s14 = sld [smem:[#allocation71_spill]] }
  0xc6   : > { %s938_s19 = scalar_lea.vmem [#allocation18], %s4179_s25  ;;  %s6896_s15 = scalar_lea.sflag [#allocation19], %s5802_s18 }
  0xc7   : > { %s945_s29 = sshll.u32 %s938_s19, 4  ;;  %s5957_s29 = int_to_ptr.vmem [resolvable:$true] %s945_s29 }
  0xcb   : > { %s5953_s24 = scalar_lea.hbm %s6973_s14, %s4363_s11  ;;  %s5150_s22 = scalar_lea.hbm %s6973_s14, 8192 }
  0xcc   : > { %s5145_s9 = scalar_lea.hbm %s5953_s24, 4096  ;;  %p5151_p10 = scmp.lt.u32.totalorder %s5953_s24, %s6973_s14 }
  0xcd   : > { %p5146_p0 = scmp.ne.s32.totalorder %s5953_s24, %s5145_s9  ;;  %p5152_p13 = scmp.lt.u32.totalorder %s5150_s22, %s5145_s9 }
  0xce   : > { %p5154_p3 = scmp.lt.u32.totalorder %s5145_s9, %s5953_s24 }
  0xcf   : > { %p5148_p4 = pnand %p5146_p0, %p5882_p6  ;;  %p5153_p12 = por %p5152_p13, %p5151_p10 }
  0xd1   : > { %p5149_p8 = pneg %p5148_p4  ;;  %p5155_p5 = por %p5154_p3, %p5153_p12 }
  0xd3   : > { %p5156_p9 = pnand %p5155_p5, %p5149_p8 }
  0xd5   : > { %5159 = shalt.err (!%p5156_p9)
}
  0xd6   : > { %s5160_s19 = scalar_lea.vmem %s5957_s29, 4096  ;;  %s5515_s26 = smov [#allocation18]  }
  0xd7   : > { %p5161_p2 = scmp.ne.s32.totalorder %s5957_s29, %s5160_s19  ;;  %s5165_s13 = sshll.u32 %s5515_s26, 4  ;;  %s5166_s13 = int_to_ptr.vmem [resolvable:$false] %s5165_s13 }
  0xd8   : > { %s5167_s1 = scalar_lea.vmem %s5166_s13, 8192  ;;  %p5168_p0 = scmp.lt.s32.totalorder %s5957_s29, %s5166_s13 }
  0xd9   : > { %p5163_p7 = pnand %p5161_p2, %p5882_p6  ;;  %p5169_p4 = scmp.lt.s32.totalorder %s5167_s1, %s5160_s19 }
  0xdb   : > { %p5164_p1 = pneg %p5163_p7  ;;  %p5170_p10 = por %p5169_p4, %p5168_p0 }
  0xdd   : > { %p5171_p13 = pnand %p5170_p10, %p5164_p1 }
  0xdf   : > { %5174 = shalt.err (!%p5171_p13)
}
  0xe0   : > { %s5516_s9 = smov 256   ;;  %s5517_s22 = smov 16  }
  0xe1   : > { %4714 = dma.hbm_to_vmem [thread:$0]  (!%p6969_p11), %s5953_s24, 4096, %s5957_s29, %s6896_s15, %s5516_s9, %s5516_s9, %s5517_s22  }
  0xe2   : > { %s4162_s5 = sshll.u32 %s5799_s0, 4  ;;  %s6974_s16 = sld [smem:[#allocation73_spill]] }
  0xe3   : > { %s5993_s1 = scalar_lea.vmem [#allocation20], %s4179_s25  ;;  %s4160_s6 = sshll.u32 %s5799_s0, 3 }
  0xe4   : > { %s4161_s23 = sshll.u32 %s5501_s30, 7  ;;  %s6975_s4 = sld [smem:[#allocation57_spill]] }
  0xe5   : > { %s745_s24 = scalar_lea.vmem [#allocation3], %s4160_s6  ;;  %p6976_p12 = scmp.ne.s32.totalorder %s6966_s21, 0 }
  0xe6   : > { %s752_s29 = sshll.u32 %s745_s24, 4  ;;  %s753_s29 = int_to_ptr.vmem [resolvable:$true] %s752_s29 }
  0xe8   : > { %s5989_s13 = scalar_lea.hbm %s6974_s16, %s4363_s11  ;;  %s742_s11 = scalar_lea.sflag [#allocation4], %s5799_s0 }
  0xea   : > { %s6001_s12 = scalar_lea.hbm %s6975_s4, %s4161_s23  ;;  %s5180_s19 = scalar_lea.hbm %s6975_s4, 256 }
  0xeb   : > { %s5175_s9 = scalar_lea.hbm %s6001_s12, 128  ;;  %p5181_p9 = scmp.lt.u32.totalorder %s6001_s12, %s6975_s4 }
  0xec   : > { %p5176_p8 = scmp.ne.s32.totalorder %s6001_s12, %s5175_s9  ;;  %p5182_p2 = scmp.lt.u32.totalorder %s5180_s19, %s5175_s9 }
  0xed   : > { %p5184_p1 = scmp.lt.u32.totalorder %s5175_s9, %s6001_s12 }
  0xee   : > { %p5178_p3 = pnand %p5176_p8, %p6976_p12  ;;  %p5183_p7 = por %p5182_p2, %p5181_p9 }
  0xf0   : > { %p5179_p5 = pneg %p5178_p3  ;;  %p5185_p0 = por %p5184_p1, %p5183_p7 }
  0xf2   : > { %p5186_p4 = pnand %p5185_p0, %p5179_p5 }
  0xf4   : > { %5189 = shalt.err (!%p5186_p4)
}
  0xf5   : > { %s5190_s6 = scalar_lea.vmem %s753_s29, 128  ;;  %s5518_s23 = smov [#allocation3]  }
  0xf6   : > { %p5191_p10 = scmp.ne.s32.totalorder %s753_s29, %s5190_s6  ;;  %s5195_s26 = sshll.u32 %s5518_s23, 4  ;;  %s5196_s26 = int_to_ptr.vmem [resolvable:$false] %s5195_s26 }
  0xf7   : > { %s5197_s24 = scalar_lea.vmem %s5196_s26, 256  ;;  %p5198_p3 = scmp.lt.s32.totalorder %s753_s29, %s5196_s26 }
  0xf8   : > { %p5193_p13 = pnand %p5191_p10, %p6976_p12  ;;  %p5199_p11 = scmp.lt.s32.totalorder %s5197_s24, %s5190_s6 }
  0xfa   : > { %p5194_p8 = pneg %p5193_p13  ;;  %p5200_p6 = por %p5199_p11, %p5198_p3 }
  0xfc   : > { %p5201_p2 = pnand %p5200_p6, %p5194_p8 }
  0xfe   : > { %5204 = shalt.err (!%p5201_p2)
}
  0xff   : > { %p6977_p9 = scmp.ne.s32.totalorder %s6963_s17, 0  ;;  %s4358_s9 = sshll.u32 %s5501_s30, 8 }
 0x100   : > { %s763_s25 = scalar_lea.vmem [#allocation6], %s4162_s5  ;;  %s6978_s14 = sld [smem:[#allocation58_spill]] }
 0x101   : > { %4690 = dma.hbm_to_vmem [thread:$0]  (!%p6977_p9), %s6001_s12, 128, %s753_s29, %s742_s11  }
 0x102   : > { %s770_s22 = sshll.u32 %s763_s25, 4  ;;  %s760_s6 = scalar_lea.sflag [#allocation7], %s5802_s18  ;;  %s6029_s22 = int_to_ptr.vmem [resolvable:$true] %s770_s22 }
 0x106   : > { %s6027_s23 = scalar_lea.hbm %s6978_s14, %s4358_s9  ;;  %s5210_s5 = scalar_lea.hbm %s6978_s14, 512 }
 0x107   : > { %s5205_s26 = scalar_lea.hbm %s6027_s23, 256  ;;  %p5211_p7 = scmp.lt.u32.totalorder %s6027_s23, %s6978_s14 }
 0x108   : > { %p5206_p11 = scmp.ne.s32.totalorder %s6027_s23, %s5205_s26  ;;  %p5212_p1 = scmp.lt.u32.totalorder %s5210_s5, %s5205_s26 }
 0x109   : > { %p5214_p4 = scmp.lt.u32.totalorder %s5205_s26, %s6027_s23 }
 0x10a   : > { %p5208_p6 = pnand %p5206_p11, %p6976_p12  ;;  %p5213_p0 = por %p5212_p1, %p5211_p7 }
 0x10c   : > { %p5209_p5 = pneg %p5208_p6  ;;  %p5215_p10 = por %p5214_p4, %p5213_p0 }
 0x10e   : > { %p5216_p13 = pnand %p5215_p10, %p5209_p5 }
 0x110   : > { %5219 = shalt.err (!%p5216_p13)
}
 0x111   : > { %s5220_s24 = scalar_lea.vmem %s6029_s22, 256  ;;  %s5519_s9 = smov [#allocation6]  }
 0x112   : > { %p5221_p8 = scmp.ne.s32.totalorder %s6029_s22, %s5220_s24  ;;  %s5225_s25 = sshll.u32 %s5519_s9, 4  ;;  %s5226_s25 = int_to_ptr.vmem [resolvable:$false] %s5225_s25 }
 0x113   : > { %s5227_s19 = scalar_lea.vmem %s5226_s25, 512  ;;  %p5228_p11 = scmp.lt.s32.totalorder %s6029_s22, %s5226_s25 }
 0x114   : > { %p5223_p3 = pnand %p5221_p8, %p6976_p12  ;;  %p5229_p6 = scmp.lt.s32.totalorder %s5227_s19, %s5220_s24 }
 0x116   : > { %p5224_p2 = pneg %p5223_p3  ;;  %p5230_p7 = por %p5229_p6, %p5228_p11 }
 0x118   : > { %p5231_p1 = pnand %p5230_p7, %p5224_p2 }
 0x11a   : > { %5234 = shalt.err (!%p5231_p1)
}
 0x11b   : > { %s6979_s10 = smov 8   ;;  %s6980_s26 = smov 128  }
 0x11c   : > { %4693 = dma.hbm_to_vmem [thread:$0]  (!%p6977_p9), %s6027_s23, 256, %s6029_s22, %s760_s6, %s6980_s26, %s6980_s26, %s6979_s10  }
 0x11d   : > { %s4653_s21 = smul.u32 192, %s5860_s8  ;;  %s6981_s29 = sld [smem:[#allocation61_spill]] }
 0x11e   : > { %s4654_s12 = smul.u32 3072, %s5497_s7  ;;  %s6983_s15 = sld [smem:[#allocation65_spill]] }
 0x11f   : > { %s801_s17 = scalar_lea.vmem [#allocation11], %s4653_s21  ;;  %p6984_p9 = scmp.ne.s32.totalorder %s6970_s27, 0 }
 0x120   : > { %s808_s9 = sshll.u32 %s801_s17, 4  ;;  %s6065_s9 = int_to_ptr.vmem [resolvable:$true] %s808_s9 }
 0x123   : > { %s6982_s11 = smov %s6981_s29  ;;  %s6063_s24 = scalar_lea.hbm %s6981_s29, %s4654_s12 }
 0x124   : > { %s6071_s3 = scalar_lea.hbm %s6983_s15, %s5866_s28  ;;  %s5235_s8 = scalar_lea.hbm %s6063_s24, 3072 }
 0x125   : > { %p5236_p12 = scmp.ne.s32.totalorder %s6063_s24, %s5235_s8  ;;  %s5240_s6 = scalar_lea.hbm %s6982_s11, 6144 }
 0x126   : > { %p5241_p4 = scmp.lt.u32.totalorder %s6063_s24, %s6982_s11  ;;  %p5242_p10 = scmp.lt.u32.totalorder %s5240_s6, %s5235_s8 }
 0x127   : > { %p5238_p5 = pnand %p5236_p12, %p6984_p9  ;;  %p5244_p8 = scmp.lt.u32.totalorder %s5235_s8, %s6063_s24 }
 0x128   : > { %p5243_p13 = por %p5242_p10, %p5241_p4 }
 0x129   : > { %p5239_p0 = pneg %p5238_p5 }
 0x12a   : > { %p5245_p3 = por %p5244_p8, %p5243_p13 }
 0x12c   : > { %p5246_p2 = pnand %p5245_p3, %p5239_p0 }
 0x12e   : > { %5249 = shalt.err (!%p5246_p2)
}
 0x12f   : > { %s5250_s21 = scalar_lea.vmem %s6065_s9, 3072  ;;  %s5520_s12 = smov [#allocation11]  }
 0x130   : > { %p5251_p11 = scmp.ne.s32.totalorder %s6065_s9, %s5250_s21  ;;  %s5255_s0 = sshll.u32 %s5520_s12, 4  ;;  %s5256_s0 = int_to_ptr.vmem [resolvable:$false] %s5255_s0 }
 0x131   : > { %s5257_s5 = scalar_lea.vmem %s5256_s0, 6144  ;;  %p5258_p1 = scmp.lt.s32.totalorder %s6065_s9, %s5256_s0 }
 0x132   : > { %p5253_p6 = pnand %p5251_p11, %p6984_p9  ;;  %p5259_p12 = scmp.lt.s32.totalorder %s5257_s5, %s5250_s21 }
 0x134   : > { %p5254_p7 = pneg %p5253_p6  ;;  %p5260_p5 = por %p5259_p12, %p5258_p1 }
 0x136   : > { %p5261_p4 = pnand %p5260_p5, %p5254_p7 }
 0x138   : > { %5264 = shalt.err (!%p5261_p4)
}
 0x139   : > { %s5521_s29 = smov 192   ;;  %s5522_s17 = smov 12  }
 0x13a   : > { %p6985_p0 = scmp.ne.s32.totalorder %s6965_s2, 0  ;;  %s6986_s25 = scalar_lea.sflag [#allocation10], %s5802_s18 }
 0x13b   : > { %s856_s19 = scalar_lea.vmem [#allocation14], %s5863_s20  ;;  %s6987_s6 = sld [smem:[#allocation69_spill]] }
 0x13c   : > { %4699 = dma.hbm_to_vmem [thread:$0]  (!%p6985_p0), %s6063_s24, 3072, %s6065_s9, %s6986_s25, %s5521_s29, %s5521_s29, %s5522_s17  }
 0x13d   : > { %s863_s8 = sshll.u32 %s856_s19, 4  ;;  %s5265_s21 = scalar_lea.hbm %s6071_s3, 1024  ;;  %s6097_s8 = int_to_ptr.vmem [resolvable:$true] %s863_s8 }
 0x13e   : > { %p5266_p10 = scmp.ne.s32.totalorder %s6071_s3, %s5265_s21  ;;  %s5270_s5 = scalar_lea.hbm %s6983_s15, 2048 }
 0x13f   : > { %p5271_p3 = scmp.lt.u32.totalorder %s6071_s3, %s6983_s15  ;;  %p5272_p2 = scmp.lt.u32.totalorder %s5270_s5, %s5265_s21 }
 0x140   : > { %p5268_p13 = pnand %p5266_p10, %p6984_p9  ;;  %p5274_p6 = scmp.lt.u32.totalorder %s5265_s21, %s6071_s3 }
 0x141   : > { %s6988_s10 = smov %s6987_s6  ;;  %s6103_s26 = scalar_lea.hbm %s6987_s6, %s5866_s28 }
 0x142   : > { %p5269_p8 = pneg %p5268_p13  ;;  %p5273_p11 = por %p5272_p2, %p5271_p3 }
 0x144   : > { %p5275_p7 = por %p5274_p6, %p5273_p11 }
 0x146   : > { %p5276_p1 = pnand %p5275_p7, %p5269_p8 }
 0x148   : > { %5279 = shalt.err (!%p5276_p1)
}
 0x149   : > { %s5280_s28 = scalar_lea.vmem %s6097_s8, 1024  ;;  %s5523_s9 = smov [#allocation14]  }
 0x14a   : > { %p5281_p12 = scmp.ne.s32.totalorder %s6097_s8, %s5280_s28  ;;  %s5285_s29 = sshll.u32 %s5523_s9, 4  ;;  %s5286_s29 = int_to_ptr.vmem [resolvable:$false] %s5285_s29 }
 0x14b   : > { %s5287_s4 = scalar_lea.vmem %s5286_s29, 2048  ;;  %p5288_p10 = scmp.lt.s32.totalorder %s6097_s8, %s5286_s29 }
 0x14c   : > { %p5283_p5 = pnand %p5281_p12, %p6984_p9  ;;  %p5289_p13 = scmp.lt.s32.totalorder %s5287_s4, %s5280_s28 }
 0x14e   : > { %p5284_p4 = pneg %p5283_p5  ;;  %p5290_p3 = por %p5289_p13, %p5288_p10 }
 0x150   : > { %p5291_p2 = pnand %p5290_p3, %p5284_p4 }
 0x152   : > { %5294 = shalt.err (!%p5291_p2)
}
 0x153   : > { %s6989_s17 = smov 4   ;;  %s6990_s25 = smov 64  }
 0x154   : > { %s6991_s19 = scalar_lea.sflag [#allocation13], %s5802_s18  ;;  %s6992_s22 = sshll.u32 %s5993_s1, 4  ;;  %s6133_s22 = int_to_ptr.vmem [resolvable:$true] %s6992_s22 }
 0x155   : > { %4705 = dma.hbm_to_vmem [thread:$0]  (!%p6985_p0), %s6071_s3, 1024, %s6097_s8, %s6991_s19, %s6990_s25, %s6990_s25, %s6989_s17  }
 0x156   : > { %s911_s23 = scalar_lea.vmem [#allocation17], %s5863_s20  ;;  %s5295_s21 = scalar_lea.hbm %s6103_s26, 1024 }
 0x157   : > { %s918_s6 = sshll.u32 %s911_s23, 4  ;;  %p5296_p8 = scmp.ne.s32.totalorder %s6103_s26, %s5295_s21  ;;  %s6136_s6 = int_to_ptr.vmem [resolvable:$true] %s918_s6 }
 0x158   : > { %s5300_s5 = scalar_lea.hbm %s6988_s10, 2048  ;;  %p5301_p7 = scmp.lt.u32.totalorder %s6103_s26, %s6988_s10 }
 0x159   : > { %p5298_p11 = pnand %p5296_p8, %p6984_p9  ;;  %p5302_p1 = scmp.lt.u32.totalorder %s5300_s5, %s5295_s21 }
 0x15a   : > { %p5304_p5 = scmp.lt.u32.totalorder %s5295_s21, %s6103_s26 }
 0x15b   : > { %p5299_p6 = pneg %p5298_p11  ;;  %p5303_p12 = por %p5302_p1, %p5301_p7 }
 0x15d   : > { %p5305_p4 = por %p5304_p5, %p5303_p12 }
 0x15f   : > { %p5306_p10 = pnand %p5305_p4, %p5299_p6 }
 0x161   : > { %5309 = shalt.err (!%p5306_p10)
}
 0x162   : > { %s5310_s20 = scalar_lea.vmem %s6136_s6, 1024  ;;  %s5524_s3 = smov [#allocation17]  }
 0x163   : > { %p5311_p13 = scmp.ne.s32.totalorder %s6136_s6, %s5310_s20  ;;  %s5315_s1 = sshll.u32 %s5524_s3, 4  ;;  %s5316_s1 = int_to_ptr.vmem [resolvable:$false] %s5315_s1 }
 0x164   : > { %s5317_s8 = scalar_lea.vmem %s5316_s1, 2048  ;;  %p5318_p8 = scmp.lt.s32.totalorder %s6136_s6, %s5316_s1 }
 0x165   : > { %p5313_p3 = pnand %p5311_p13, %p6984_p9  ;;  %p5319_p11 = scmp.lt.s32.totalorder %s5317_s8, %s5310_s20 }
 0x167   : > { %p5314_p2 = pneg %p5313_p3  ;;  %p5320_p7 = por %p5319_p11, %p5318_p8 }
 0x169   : > { %p5321_p1 = pnand %p5320_p7, %p5314_p2 }
 0x16b   : > { %5324 = shalt.err (!%p5321_p1)
}
 0x16c   : > { %s6993_s9 = scalar_lea.sflag [#allocation16], %s5802_s18  ;;  %s5325_s29 = scalar_lea.hbm %s5989_s13, 4096 }
 0x16d   : > { %4711 = dma.hbm_to_vmem [thread:$0]  (!%p6985_p0), %s6103_s26, 1024, %s6136_s6, %s6993_s9, %s6990_s25, %s6990_s25, %s6989_s17  }
 0x16e   : > { %p5326_p6 = scmp.ne.s32.totalorder %s5989_s13, %s5325_s29  ;;  %s5330_s23 = scalar_lea.hbm %s6974_s16, 8192 }
 0x16f   : > { %p5331_p4 = scmp.lt.u32.totalorder %s5989_s13, %s6974_s16  ;;  %p5332_p10 = scmp.lt.u32.totalorder %s5330_s23, %s5325_s29 }
 0x170   : > { %p5328_p12 = pnand %p5326_p6, %p6984_p9  ;;  %p5334_p3 = scmp.lt.u32.totalorder %s5325_s29, %s5989_s13 }
 0x171   : > { %p5333_p13 = por %p5332_p10, %p5331_p4 }
 0x172   : > { %p5329_p5 = pneg %p5328_p12 }
 0x173   : > { %p5335_p2 = por %p5334_p3, %p5333_p13 }
 0x175   : > { %p5336_p8 = pnand %p5335_p2, %p5329_p5 }
 0x177   : > { %5339 = shalt.err (!%p5336_p8)
}
 0x178   : > { %s5340_s26 = scalar_lea.vmem %s6133_s22, 4096  ;;  %s5525_s6 = smov [#allocation20]  }
 0x179   : > { %p5341_p11 = scmp.ne.s32.totalorder %s6133_s22, %s5340_s26  ;;  %s5345_s0 = sshll.u32 %s5525_s6, 4  ;;  %s5346_s0 = int_to_ptr.vmem [resolvable:$false] %s5345_s0 }
 0x17a   : > { %s5347_s5 = scalar_lea.vmem %s5346_s0, 8192  ;;  %p5348_p6 = scmp.lt.s32.totalorder %s6133_s22, %s5346_s0 }
 0x17b   : > { %p5343_p7 = pnand %p5341_p11, %p6984_p9  ;;  %p5349_p12 = scmp.lt.s32.totalorder %s5347_s5, %s5340_s26 }
 0x17d   : > { %p5344_p1 = pneg %p5343_p7  ;;  %p5350_p4 = por %p5349_p12, %p5348_p6 }
 0x17f   : > { %p5351_p10 = pnand %p5350_p4, %p5344_p1 }
 0x181   : > { %5354 = shalt.err (!%p5351_p10)
}
 0x182   : > { %s6994_s24 = scalar_lea.sflag [#allocation19], %s5802_s18  ;;  %s6995_s27 = sld [smem:[#allocation45_spill]] }
 0x183   : > { %4717 = dma.hbm_to_vmem [thread:$0]  (!%p6985_p0), %s5989_s13, 4096, %s6133_s22, %s6994_s24, %s6990_s25, %s6990_s25, %s6989_s17  }
 0x188   : > { %p6996_p9 = scmp.ne.s32.totalorder %s6995_s27, 0 }
 0x18a   : > { %1027 = sbr.rel (%p6996_p9) target bundleno = 5622 (0x15f6), region = 116 }
 0x191   : > { %s6997_s28 = sld [smem:[#allocation34_spill]]  ;;  %s6998_s20 = sld [smem:[#allocation42_spill]] }
 0x197   : > { %s6193_s3 = sand.u32 1, %s6997_s28   ;;  %p6999_p5 = scmp.ne.s32.totalorder %s6998_s20, 0 }
 0x198   : > { %s6898_s1 = sshll.u32 %s6193_s3, 3  ;;  %s1030_s2 = scalar_lea.sflag [#allocation4], %s6193_s3 }
 0x199   : > { %s6199_s8 = scalar_lea.vmem [#allocation3], %s6898_s1 }
 0x19a   : > { %5428 = dma.done.wait (%p6999_p5), %s1030_s2, 128  }
 0x19b   : > { %5430 = vsyncadd (%p6999_p5), %s1030_s2, 4294967168  ;;  %s7000_s18 = sld [smem:[#allocation41_spill]]  ;;  %s4187_s17 = sshll.u32 %s6193_s3, 4 }
 0x19c   : > { %s6210_s22 = scalar_lea.vmem [#allocation6], %s4187_s17 }
 0x19d   : > { %7001 = sst [smem:[#allocation51_spill]] %s6210_s22 }
 0x1a1   : > { %s6206_s13 = sand.u32 1, %s7000_s18  }
 0x1a2   : > { %s1039_s25 = scalar_lea.sflag [#allocation7], %s6206_s13 }
 0x1a3   : > { %5432 = dma.done.wait (%p6999_p5), %s1039_s25, 256  }
 0x1a4   : > { %5434 = vsyncadd (%p6999_p5), %s1039_s25, 4294967040  ;;  %p7002_p0 = scmp.eq.s32.totalorder %s7000_s18, 0 }
 0x1a6   : > { %5436 = dma.done.wait (%p7002_p0), [#allocation7], 128   ;;  %p7003_p13 = pmov %p7002_p0 }
 0x1a7   : > { %s1052_s9 = scalar_lea.sflag [#allocation10], %s6206_s13 }
 0x1a8   : > { %5438 = vsyncadd (%p7003_p13), [#allocation7], 4294967168 }
 0x1a9   : > { %5440 = dma.done.wait (%p6999_p5), %s1052_s9, 16  }
 0x1aa   : > { %5442 = vsyncadd (%p6999_p5), %s1052_s9, 4294967280  ;;  %s7004_s4 = sld [smem:[#allocation31_spill]] }
 0x1ab   : > { %s7005_s19 = sld [smem:[#allocation43_spill]] }
 0x1b0   : > { %s6227_s23 = sand.u32 1, %s7004_s4  }
 0x1b1   : > { %s4655_s21 = smul.u32 192, %s6227_s23  ;;  %p7006_p3 = scmp.ne.s32.totalorder %s7005_s19, 0 }
 0x1b3   : > { %s6230_s12 = scalar_lea.vmem [#allocation11], %s4655_s21 }
 0x1b4   : > { %5444 = dma.done.wait (%p7006_p3), %s1052_s9, 3072  }
 0x1b5   : > { %5446 = vsyncadd (%p7006_p3), %s1052_s9, 4294964224  ;;  %s4189_s26 = sshll.u32 %s6227_s23, 6  ;;  %s1069_s6 = scalar_lea.sflag [#allocation13], %s6206_s13 }
 0x1b6   : > { %s6238_s0 = scalar_lea.vmem [#allocation12], %s4189_s26 }
 0x1b7   : > { %5448 = dma.done.wait (%p7006_p3), %s1069_s6, 2048  }
 0x1b8   : > { %5450 = vsyncadd (%p7006_p3), %s1069_s6, 4294965248  ;;  %s4191_s5 = sshll.u32 %s6227_s23, 7  ;;  %s6245_s24 = scalar_lea.vmem [#allocation14], %s4189_s26 }
 0x1b9   : > { %7007 = sst [smem:[#allocation52_spill]] %s6245_s24  ;;  %s1087_s27 = scalar_lea.sflag [#allocation16], %s6206_s13 }
 0x1ba   : > { %s6248_s28 = scalar_lea.vmem [#allocation15], %s4191_s5 }
 0x1bb   : > { %5452 = dma.done.wait (%p7006_p3), %s1087_s27, 3072  }
 0x1bc   : > { %5454 = vsyncadd (%p7006_p3), %s1087_s27, 4294964224  ;;  %s4193_s20 = sshll.u32 %s6227_s23, 8  ;;  %s6255_s2 = scalar_lea.vmem [#allocation17], %s4189_s26 }
 0x1bd   : > { %7008 = sst [smem:[#allocation53_spill]] %s6255_s2  ;;  %s1105_s18 = scalar_lea.sflag [#allocation19], %s6206_s13 }
 0x1be   : > { %s6258_s17 = scalar_lea.vmem [#allocation18], %s4193_s20 }
 0x1bf   : > { %7009 = sst [smem:[#allocation54_spill]] %s6258_s17 }
 0x1c0   : > { %5456 = dma.done.wait (%p7006_p3), %s1105_s18, 8192  }
 0x1c1   : > { %5458 = vsyncadd (%p7006_p3), %s1105_s18, 4294959104  ;;  %s7010_s25 = sld [smem:[#allocation36_spill]]  ;;  %s7013_s10 = sld [smem:[#allocation62_spill]] }
 0x1c2   : > { %s7014_s16 = sld [smem:[#allocation68_spill]]  ;;  %s7017_s6 = sld [smem:[#allocation72_spill]] }
 0x1c3   : > { %s7020_s22 = sld [smem:[#allocation75_spill]]  ;;  %s7022_s4 = sld [smem:[#allocation77_spill]] }
 0x1c4   : > { %s7024_s2 = sld [smem:[#allocation79_spill]]  ;;  %s7025_s29 = sld [smem:[#allocation80_spill]] }
 0x1c7   : > { %p1268_p2 = scmp.lt.s32.totalorder %s7010_s25, 1  ;;  %p4198_p8 = scmp.ne.s32.totalorder %s7010_s25, 0 }
 0x1c8   : > { %v1315_v0 = vld [vmem:[%s6199_s8] sm:$0xff] (!%p4198_p8) }
 0x1c9   : > { %s6266_s9 = scalar_select %p1268_p2, %s7010_s25, 1 }
 0x1ca   : > { %1316 = vst [vmem:[#allocation2] sm:$0xff] (!%p4198_p8), %v1315_v0 }
 0x1cb   : > { %s4656_s13 = smul.u32 3, %s6266_s9  ;;  %s4196_s18 = sshll.u32 %s6266_s9, 1 }
 0x1cc   : > { %s6286_s30 = scalar_lea.vmem %s7014_s16, %s4196_s18  ;;  %s4197_s23 = sshll.u32 %s6266_s9, 2 }
 0x1cd   : > { %s6281_s11 = scalar_lea.vmem %s7013_s10, %s4656_s13  ;;  %7015 = sst [smem:[#allocation55_spill]] %s6286_s30 }
 0x1ce   : > { %s6296_s5 = scalar_lea.vmem %s7017_s6, %s4197_s23  ;;  %s1294_s15 = scalar_lea.vmem %s7020_s22, %s6266_s9 }
 0x1cf   : > { %7018 = sst [smem:[#allocation56_spill]] %s6296_s5  ;;  %s7021_s18 = sld [smem:[#allocation76_spill]] }
 0x1d0   : > { %s1300_s19 = scalar_lea.vmem %s7022_s4, %s6266_s9  ;;  %s7023_s23 = sld [smem:[#allocation78_spill]] }
 0x1d1   : > { %s1306_s27 = scalar_lea.vmem %s7024_s2, %s6266_s9  ;;  %s1309_s22 = scalar_lea.vmem %s7025_s29, %s6266_s9 }
 0x1d2   : > { %s6326_s13 = scalar_lea.vmem [#allocation20], %s4193_s20  ;;  %s7026_s16 = sshll.u32 %s6193_s3, 3 }
 0x1d3   : > { %s6330_s14 = scalar_lea.vmem [#allocation21], %s7026_s16  ;;  %1314 = sbr.rel (%p4198_p8) target bundleno = 474 (0x1da), region = 164 }
 0x1d5   : > { %s1297_s30 = scalar_lea.vmem %s7021_s18, %s6266_s9 }
 0x1d6   : > { %s1303_s26 = scalar_lea.vmem %s7023_s23, %s6266_s9 }
 0x1da PF: > { %v4829_v1 = vld [vmem:[%s6230_s12 + $0x4] ss:$12 sps:$4 sm:$0xff]   ;;  %v4831_v2 = vld [vmem:[%s6230_s12] ss:$12 sps:$4 sm:$0xff]   ;;  %v5526_v3 = vmov 0   ;;  %v5527_v4 = vmov 0.0   ;;  %v1529_v29 = vlaneseq }
 0x1db   : > { %1704 = vmatprep.mubr.bf16.mxu0 %v5526_v3  ;;  %4477 = vmatprep.subr.bf16.mxu1 %v5527_v4  ;;  %v4832_v5 = vld [vmem:[%s6230_s12 + $0x1c] ss:$12 sps:$4 sm:$0xff]   ;;  %v4834_v6 = vld [vmem:[%s6230_s12 + $0x18] ss:$12 sps:$4 sm:$0xff]   ;;  %v4835_v7 = vld [vmem:[%s6230_s12 + $0x34] ss:$12 sps:$4 sm:$0xff]  }
 0x1dc   : > { %1672 = vmatprep.subr.bf16.mxu0 %v4829_v1  ;;  %v4837_v8 = vld [vmem:[%s6230_s12 + $0x30] ss:$12 sps:$4 sm:$0xff]   ;;  %v4838_v9 = vld [vmem:[%s6230_s12 + $0x4c] ss:$12 sps:$4 sm:$0xff]   ;;  %v4840_v10 = vld [vmem:[%s6230_s12 + $0x48] ss:$12 sps:$4 sm:$0xff]  }
 0x1dd   : > { %1673 = vmatpush1.bf16.msra.mxu0 %v4831_v2  ;;  %v4853_v11 = vld [vmem:[%s6230_s12 + $0x8] ss:$12 sps:$4 sm:$0xff]   ;;  %v4841_v12 = vld [vmem:[%s6230_s12 + $0x64] ss:$12 sps:$4 sm:$0xff]   ;;  %v4854_v13 = vld [vmem:[%s6230_s12 + $0x20] ss:$12 sps:$4 sm:$0xff]  }
 0x1de   : > { %1674 = vmatprep.subr.bf16.mxu0 %v4832_v5  ;;  %4478 = vmatpush3.bf16.msra.mxu1 %v4853_v11  ;;  %v4843_v14 = vld [vmem:[%s6230_s12 + $0x60] ss:$12 sps:$4 sm:$0xff]   ;;  %v4844_v15 = vld [vmem:[%s6230_s12 + $0x7c] ss:$12 sps:$4 sm:$0xff]   ;;  %v4846_v16 = vld [vmem:[%s6230_s12 + $0x78] ss:$12 sps:$4 sm:$0xff]  }
 0x1df   : > { %4479 = vmatprep.subr.bf16.mxu1 %v5527_v4  ;;  %v4855_v17 = vld [vmem:[%s6230_s12 + $0x38] ss:$12 sps:$4 sm:$0xff]   ;;  %v4847_v18 = vld [vmem:[%s6230_s12 + $0x94] ss:$12 sps:$4 sm:$0xff]   ;;  %v4856_v19 = vld [vmem:[%s6230_s12 + $0x50] ss:$12 sps:$4 sm:$0xff]  }
 0x1e0   : > { %v4849_v20 = vld [vmem:[%s6230_s12 + $0x90] ss:$12 sps:$4 sm:$0xff]   ;;  %v4850_v21 = vld [vmem:[%s6230_s12 + $0xac] ss:$12 sps:$4 sm:$0xff]   ;;  %v4857_v22 = vld [vmem:[%s6230_s12 + $0x68] ss:$12 sps:$4 sm:$0xff]  }
 0x1e1   : > { %1675 = vmatpush1.bf16.msra.mxu0 %v4834_v6  ;;  %v4852_v23 = vld [vmem:[%s6230_s12 + $0xa8] ss:$12 sps:$4 sm:$0xff]   ;;  %v6360_v24 = vld [vmem:[#allocation2] sm:$0xff]  ;;  %vm5528_vm0 = vmmov 0   ;;  %v6379_v30 = vshrl.u32 %v1529_v29, 7  ;;  %vm1756_vm1 = vcmask 261120  }
 0x1e2   : > { %1676 = vmatprep.subr.bf16.mxu0 %v4835_v7  ;;  %4480 = vmatpush3.bf16.msra.mxu1 %v4854_v13  ;;  %v4858_v25 = vld [vmem:[%s6230_s12 + $0x80] ss:$12 sps:$4 sm:$0xff]   ;;  %v1527_v26 = vpack.c.bf16 %v6360_v24, %v6360_v24  ;;  %v4859_v27 = vld [vmem:[%s6230_s12 + $0x98] ss:$12 sps:$4 sm:$0xff]   ;;  %v4860_v28 = vld [vmem:[%s6230_s12 + $0xb0] ss:$12 sps:$4 sm:$0xff]  }
 0x1e3   : > { %4481 = vmatprep.subr.bf16.mxu1 %v5527_v4  ;;  %4493 = vmatprep.mubr.msk.bf16.mxu1 %vm5528_vm0, %v5527_v4  ;;  %v6382_v31 = vsub.s32 1, %v6379_v30  ;;  %v1354_v32 = vld [vmem:[%s6281_s11] sm:$0x7]  ;;  %v6386_v33 = vsub.s32 0, %v6379_v30  ;;  %s5529_s8 = smov 96   ;;  %s5530_s11 = smov 64  }
 0x1e4   : > { %s5531_s12 = smov 32   ;;  %v1539_v45 = vsub.s32 2, %v6379_v30  ;;  %vm1821_vm2 = vcmask 1043456   ;;  %v6408_v55 = vld [vmem:[#allocation8] sm:$0xff]  ;;  %vm1805_vm3 = vcmask 64512   ;;  %vm2217_vm4 = vcmask 523264  }
 0x1e5   : > { %1677 = vmatpush1.bf16.msra.mxu0 %v4837_v8  ;;  %v1536_v34 = vrot.slane %v1354_v32, %v6382_v31  ;;  %v1532_v35 = vrot.slane %v1354_v32, %v6386_v33  ;;  %vm2219_vm5 = vcmask 785408   ;;  %s7028_s25 = sld [smem:[#allocation64_spill]]  ;;  %s7030_s10 = sld [smem:[#allocation51_spill]]  ;;  %vm2630_vm6 = vcmask 130048  }
 0x1e6   : > { %1678 = vmatprep.subr.bf16.mxu0 %v4838_v9  ;;  %4482 = vmatpush3.bf16.msra.mxu1 %v4855_v17  ;;  %v1540_v46 = vrot.slane %v1354_v32, %v1539_v45  ;;  %s7034_s6 = sld [smem:[#allocation66_spill]]  ;;  %s7036_s1 = scalar_lea.vmem [#allocation9], %s6193_s3 }
 0x1e7   : > { %4483 = vmatprep.subr.bf16.mxu1 %v5527_v4  ;;  %s7037_s29 = sld [smem:[#allocation53_spill]]  ;;  %s7038_s16 = sld [smem:[#allocation54_spill]] }
 0x1e8   : > { %s7044_s18 = sld [smem:[#allocation74_spill]]  ;;  %s7046_s17 = sld [smem:[#allocation37_spill]] }
 0x1e9   : > { %1679 = vmatpush1.bf16.msra.mxu0 %v4840_v10  ;;  %s7047_s4 = sld [smem:[#allocation49_spill]] }
 0x1ea   : > { %1680 = vmatprep.subr.bf16.mxu0 %v4841_v12  ;;  %4484 = vmatpush3.bf16.msra.mxu1 %v4856_v19 }
 0x1eb   : > { %4485 = vmatprep.subr.bf16.mxu1 %v5527_v4  ;;  %s7029_s5 = scalar_lea.vmem %s7028_s25, %s6266_s9 }
 0x1ec   : > { %s7035_s2 = scalar_lea.vmem %s7034_s6, %s6266_s9 }
 0x1ed   : > { %1681 = vmatpush1.bf16.msra.mxu0 %v4843_v14 }
 0x1ee   : > { %1682 = vmatprep.subr.bf16.mxu0 %v4844_v15  ;;  %4486 = vmatpush3.bf16.msra.mxu1 %v4857_v22  ;;  %s7045_s7 = scalar_lea.vmem %s7044_s18, %s6266_s9 }
 0x1ef   : > { %4487 = vmatprep.subr.bf16.mxu1 %v5527_v4  ;;  %p7051_p7 = scmp.ne.s32.totalorder %s7047_s4, 0 }
 0x1f1   : > { %1683 = vmatpush1.bf16.msra.mxu0 %v4846_v16 }
 0x1f2   : > { %1684 = vmatprep.subr.bf16.mxu0 %v4847_v18  ;;  %4488 = vmatpush3.bf16.msra.mxu1 %v4858_v25 }
 0x1f3   : > { %4489 = vmatprep.subr.bf16.mxu1 %v5527_v4 }
 0x1f5   : > { %1685 = vmatpush1.bf16.msra.mxu0 %v4849_v20 }
 0x1f6   : > { %1686 = vmatprep.subr.bf16.mxu0 %v4850_v21  ;;  %4490 = vmatpush3.bf16.msra.mxu1 %v4859_v27 }
 0x1f7   : > { %4491 = vmatprep.subr.bf16.mxu1 %v5527_v4 }
 0x1f9   : > { %1687 = vmatpush1.bf16.msra.mxu0 %v4852_v23 }
 0x1fa   : > { %4521 = vmatprep.subr.bf16.mxu0 %v5527_v4  ;;  %4492 = vmatpush3.bf16.msra.mxu1 %v4860_v28 }
 0x1fb   : > { %4497 = vmatprep.subr.bf16.mxu1 %v5527_v4 }
 0x1fc   : > { %1705 = vmatmul.mubr.bf16.vlgmr.msra.gmra.mrb[0].mxu0 %v1527_v26 }
 0x1fd   : > { %4523 = vmatprep.mubr.msk.bf16.mxu0 %vm5528_vm0, %v5527_v4  ;;  %4494 = vmatmul.mubr.bf16.vlgmr.msra.gmra.mrb[0].mxu1 %v1527_v26 }
 0x1fe   : > { %4499 = vmatprep.mubr.msk.bf16.mxu1 %vm5528_vm0, %v5527_v4 }
 0x2cf   : > { %v1706_v36 = vpop.f32.mrb[0].mxu0 }
 0x2d0   : > { %v1708_v37 = vpop.f32.mrb[1].mxu0  ;;  %v1707_v41 = vadd.f32 %v1706_v36, %v1532_v35  ;;  %v1747_v47 = vpop.f32.mrb[0].mxu1 }
 0x2d1   : > { %v1709_v38 = vadd.f32 %v1708_v37, %v1536_v34  ;;  %v1710_v39 = vpop.f32.mrb[2].mxu0  ;;  %v1748_v48 = vadd.f32 %v1747_v47, %v1540_v46  ;;  %v4495_v49 = vpop.f32.mrb[1].mxu1 }
 0x2d2   : > { %v1711_v40 = vpop.f32.mrb[3].mxu0  ;;  %v1753_v44 = vpack.c.bf16 %v1707_v41, %v1707_v41  ;;  %v1750_v50 = vpop.f32.mrb[2].mxu1 }
 0x2d3   : > { %v1754_v42 = vpack.c.bf16 %v1709_v38, %v1709_v38  ;;  %v6403_v51 = vpack.c.bf16 %v1748_v48, %v1748_v48  ;;  %v4496_v52 = vpop.f32.mrb[3].mxu1 }
 0x2d5   : > { %1869 = vrot.lane.b32.xlu1 %v1754_v42, %s5529_s8  ;;  %v1761_v43 = vsel %vm1756_vm1, %v1754_v42, 0  ;;  %v1823_v53 = vsel %vm1821_vm2, %v6403_v51, 0 }
 0x2d6   : > { %4498 = vmatpush3.bf16.xpose.msra.mxu1 %v1761_v43 }
 0x2d7   : > { %4503 = vmatprep.subr.bf16.mxu1 %v5527_v4 }
 0x2d9   : > { %1866 = vrot.lane.b32.xlu1 %v1753_v44, %s5529_s8 }
 0x2dd   : > { %1980 = vrot.lane.b32.xlu1 %v1753_v44, %s5530_s11  ;;  %4500 = vmatmul.mubr.msk.bf16.vlgmr.msra.gmra.mrb[4].mxu1 %vm1756_vm1, %v1753_v44 }
 0x2de   : > { %4505 = vmatprep.mubr.msk.bf16.mxu1 %vm5528_vm0, %v5527_v4  ;;  %4504 = vmatpush3.bf16.msra.mxu1 %v1823_v53 }
 0x2df   : > { %4509 = vmatprep.subr.bf16.mxu1 %v5527_v4 }
 0x2e1   : > { %2094 = vrot.lane.b32.xlu1 %v1754_v42, %s5531_s12 }
 0x2e5   : > { %2092 = vrot.lane.b32.xlu1 %v1753_v44, %s5531_s12 }
 0x347   : > { %v1870_v5 = vpop.permute.xlu1 %1869 }
 0x348   : > { %v1875_v16 = vsel %vm1756_vm1, %v1870_v5, 0 }
 0x34b   : > { %v1867_v6 = vpop.permute.xlu1 %1866 }
 0x34f   : > { %v1981_v8 = vpop.permute.xlu1 %1980 }
 0x353   : > { %v2095_v11 = vpop.permute.xlu1 %2094 }
 0x354   : > { %v2100_v14 = vsel %vm1756_vm1, %v2095_v11, 0 }
 0x357   : > { %v2093_v17 = vpop.permute.xlu1 %2092 }
 0x3b0   : > { %v1797_v54 = vpop.f32.mrb[4].mxu1 }
 0x3b1   : > { %v1803_v56 = vmul.f32 0.17677669, %v1797_v54  ;;  %v4501_v57 = vpop.f32.mrb[5].mxu1 }
 0x3b2   : > { %v1800_v58 = vpop.f32.mrb[6].mxu1 }
 0x3b3   : > { %v4502_v59 = vpop.f32.mrb[7].mxu1  ;;  %v1804_v60 = vadd.f32 %v1803_v56, %v6408_v55 }
 0x3b5   : > { %v1806_v61 = vsel %vm1805_vm3, %v1804_v60, -inf }
 0x3b6   : > { %1807 = vmax.xlane.f32.xlu0 %v1806_v61 }
 0x443   : > { %v1808_v62 = vpop.xlane.xlu0 %1807 }
 0x444   : > { %v1809_v63 = vsub.f32 %v1804_v60, %v1808_v62 }
 0x446   : > { %v1810_v0 = vmul.f32 1.442695, %v1809_v63 }
 0x448   : > { %4989 = vpow2.f32 %v1810_v0 }
 0x452   : > { %v4990_v1 = vpop.eup %4989 }
 0x453   : > { %v1812_v2 = vsel %vm1805_vm3, %v4990_v1, 0.0 }
 0x454   : > { %1813 = vadd.xlane.f32.xlu0 %v1812_v2 }
 0x46a   : > { %1982 = vrot.lane.b32.xlu0 %v1754_v42, %s5530_s11 }
 0x4e1   : > { %v1814_v7 = vpop.xlane.xlu0 %1813 }
 0x4e2   : > { %4991 = vrcp.f32 %v1814_v7 }
 0x4e5   : > { %v1983_v9 = vpop.permute.xlu0 %1982 }
 0x4e6   : > { %v1988_v10 = vsel %vm1756_vm1, %v1983_v9, 0 }
 0x4e7   : > { %4522 = vmatpush3.bf16.xpose.msra.mxu0 %v1988_v10 }
 0x4e8   : > { %4533 = vmatprep.subr.bf16.mxu0 %v5527_v4 }
 0x4ec   : > { %v4992_v12 = vpop.eup %4991 }
 0x4ed   : > { %v1816_v13 = vmul.f32 %v4992_v12, %v4990_v1 }
 0x4ee   : > { %4524 = vmatmul.mubr.msk.bf16.vlgmr.msra.gmra.mrb[4].mxu0 %vm1756_vm1, %v1981_v8 }
 0x4ef   : > { %4534 = vmatpush3.bf16.xpose.msra.mxu0 %v2100_v14  ;;  %v1817_v15 = vpack.c.bf16 %v1816_v13, %v1816_v13  ;;  %4535 = vmatprep.mubr.msk.bf16.mxu0 %vm5528_vm0, %v5527_v4 }
 0x4f0   : > { %4545 = vmatprep.subr.bf16.mxu0 %v5527_v4 }
 0x4f1   : > { %4506 = vmatmul.mubr.msk.bf16.vlgmr.msra.gmra.mrb[8].mxu1 %vm1805_vm3, %v1817_v15 }
 0x4f2   : > { %4510 = vmatpush3.bf16.xpose.msra.mxu1 %v1875_v16  ;;  %4511 = vmatprep.mubr.msk.bf16.mxu1 %vm5528_vm0, %v5527_v4 }
 0x4f3   : > { %4515 = vmatprep.subr.bf16.mxu1 %v5527_v4 }
 0x4f6   : > { %4536 = vmatmul.mubr.msk.bf16.vlgmr.msra.gmra.mrb[8].mxu0 %vm1756_vm1, %v2093_v17 }
 0x4f7   : > { %4561 = vmatprep.mubr.msk.bf16.mxu0 %vm5528_vm0, %v5527_v4 }
 0x4f9   : > { %4512 = vmatmul.mubr.msk.bf16.vlgmr.msra.gmra.mrb[12].mxu1 %vm1756_vm1, %v1867_v6 }
 0x4fa   : > { %4517 = vmatprep.mubr.msk.bf16.mxu1 %vm5528_vm0, %v5527_v4 }
 0x5c1   : > { %v2024_v18 = vpop.f32.mrb[4].mxu0 }
 0x5c2   : > { %v2030_v19 = vmul.f32 0.17677669, %v2024_v18  ;;  %v4525_v20 = vpop.f32.mrb[5].mxu0 }
 0x5c3   : > { %v2027_v21 = vpop.f32.mrb[6].mxu0  ;;  %v4862_v20 = vld [vmem:[%s6238_s0 + $0x8] sm:$0xff]  }
 0x5c4   : > { %v6432_v22 = vpop.f32.mrb[8].mxu1  ;;  %v4526_v23 = vpop.f32.mrb[7].mxu0  ;;  %v2031_v25 = vadd.f32 %v2030_v19, %v6408_v55  ;;  %v4861_v19 = vld [vmem:[%s6238_s0] sm:$0xff]   ;;  %v4863_v21 = vld [vmem:[%s6238_s0 + $0x10] sm:$0xff]  }
 0x5c5   : > { %v4507_v26 = vpop.f32.mrb[9].mxu1  ;;  %4546 = vmatpush3.bf16.msra.mxu0 %v4861_v19  ;;  %v4864_v23 = vld [vmem:[%s6238_s0 + $0x18] sm:$0xff]  }
 0x5c6   : > { %v1862_v27 = vpop.f32.mrb[10].mxu1  ;;  %v2032_v28 = vsel %vm1805_vm3, %v2031_v25, -inf  ;;  %4547 = vmatprep.subr.bf16.mxu0 %v5527_v4  ;;  %v4866_v26 = vld [vmem:[%s6238_s0 + $0x28] sm:$0xff]  }
 0x5c7   : > { %2033 = vmax.xlane.f32.xlu0 %v2032_v28  ;;  %v4508_v29 = vpop.f32.mrb[11].mxu1  ;;  %v4867_v27 = vld [vmem:[%s6238_s0 + $0x30] sm:$0xff]  }
 0x5c9   : > { %v2136_v32 = vpop.f32.mrb[8].mxu0  ;;  %4548 = vmatpush3.bf16.msra.mxu0 %v4862_v20  ;;  %v1318_v20 = vld [vmem:[%s7030_s10] sm:$0xff] }
 0x5ca   : > { %v4537_v34 = vpop.f32.mrb[9].mxu0  ;;  %v2142_v38 = vmul.f32 0.17677669, %v2136_v32  ;;  %4549 = vmatprep.subr.bf16.mxu0 %v5527_v4 }
 0x5cb   : > { %v2139_v35 = vpop.f32.mrb[10].mxu0 }
 0x5cc   : > { %v1911_v36 = vpop.f32.mrb[12].mxu1  ;;  %v4538_v37 = vpop.f32.mrb[11].mxu0  ;;  %v2143_v46 = vadd.f32 %v2142_v38, %v6408_v55  ;;  %v4868_v35 = vld [vmem:[%s6238_s0 + $0x38] sm:$0xff]  }
 0x5cd   : > { %v1917_v39 = vmul.f32 0.17677669, %v1911_v36  ;;  %v4513_v40 = vpop.f32.mrb[13].mxu1  ;;  %4550 = vmatpush3.bf16.msra.mxu0 %v4863_v21  ;;  %v1319_v21 = vld [vmem:[%s7030_s10 + $0x8] sm:$0xff] }
 0x5ce   : > { %v1914_v41 = vpop.f32.mrb[14].mxu1  ;;  %v2144_v47 = vsel %vm1805_vm3, %v2143_v46, -inf  ;;  %4551 = vmatprep.subr.bf16.mxu0 %v5527_v4 }
 0x5cf   : > { %v4514_v42 = vpop.f32.mrb[15].mxu1  ;;  %v1918_v43 = vadd.f32 %v1917_v39, %v6408_v55 }
 0x5d1   : > { %v1919_v44 = vsel %vm1805_vm3, %v1918_v43, -inf  ;;  %4552 = vmatpush3.bf16.msra.mxu0 %v4864_v23  ;;  %v2438_v23 = vpack.c.bf16 %v1319_v21, %v1318_v20 }
 0x5d2   : > { %1920 = vmax.xlane.f32.xlu1 %v1919_v44  ;;  %4553 = vmatprep.subr.bf16.mxu0 %v5527_v4 }
 0x5d6   : > { %2145 = vmax.xlane.f32.xlu1 %v2144_v47 }
 0x654   : > { %v2034_v48 = vpop.xlane.xlu0 %2033 }
 0x655   : > { %v2035_v49 = vsub.f32 %v2031_v25, %v2034_v48  ;;  %v4865_v25 = vld [vmem:[%s6238_s0 + $0x20] sm:$0xff]   ;;  %s7027_s0 = sld [smem:[#allocation52_spill]] }
 0x656   : > { %4554 = vmatpush3.bf16.msra.mxu0 %v4865_v25 }
 0x657   : > { %v2036_v50 = vmul.f32 1.442695, %v2035_v49  ;;  %4555 = vmatprep.subr.bf16.mxu0 %v5527_v4 }
 0x659   : > { %4993 = vpow2.f32 %v2036_v50 }
 0x65a   : > { %4556 = vmatpush3.bf16.msra.mxu0 %v4866_v26 }
 0x65b   : > { %4557 = vmatprep.subr.bf16.mxu0 %v5527_v4  ;;  %v4897_v19 = vld [vmem:[%s7027_s0 + $0x20] sm:$0xff]   ;;  %v4898_v25 = vld [vmem:[%s7027_s0 + $0x28] sm:$0xff]   ;;  %v4899_v26 = vld [vmem:[%s7027_s0 + $0x30] sm:$0xff]  }
 0x65e   : > { %4558 = vmatpush3.bf16.msra.mxu0 %v4867_v27  ;;  %v4900_v27 = vld [vmem:[%s7027_s0 + $0x38] sm:$0xff]  }
 0x65f   : > { %v1921_v52 = vpop.xlane.xlu1 %1920  ;;  %4559 = vmatprep.subr.bf16.mxu0 %v5527_v4 }
 0x660   : > { %v1922_v53 = vsub.f32 %v1918_v43, %v1921_v52 }
 0x662   : > { %v1923_v59 = vmul.f32 1.442695, %v1922_v53  ;;  %4560 = vmatpush3.bf16.msra.mxu0 %v4868_v35  ;;  %v4231_v53 = vld [vmem:[%s7029_s5] ss:$0 sm:$0xff] }
 0x663   : > { %v4994_v54 = vpop.eup %4993  ;;  %v2146_v56 = vpop.xlane.xlu1 %2145  ;;  %v4240_v35 = vld [vmem:[%s1294_s15] ss:$0 sm:$0xff] }
 0x664   : > { %v2147_v57 = vsub.f32 %v2143_v46, %v2146_v56  ;;  %v2038_v58 = vsel %vm1805_vm3, %v4994_v54, 0.0 }
 0x665   : > { %2039 = vadd.xlane.f32.xlu0 %v2038_v58 }
 0x666   : > { %v2148_v60 = vmul.f32 1.442695, %v2147_v57 }
 0x668   : > { %4995 = vpow2.f32 %v2148_v60  ;;  %v4869_v60 = vld [vmem:[%s6248_s28] ss:$8 sps:$4 sm:$0xff]  }
 0x669   : > { %4997 = vpow2.f32 %v1923_v59 }
 0x672   : > { %v4996_v55 = vpop.eup %4995 }
 0x673   : > { %v2150_v61 = vsel %vm1805_vm3, %v4996_v55, 0.0  ;;  %v4998_v62 = vpop.eup %4997 }
 0x674   : > { %2151 = vadd.xlane.f32.xlu1 %v2150_v61  ;;  %v1925_v63 = vsel %vm1805_vm3, %v4998_v62, 0.0  ;;  %v4874_v61 = vld [vmem:[%s6248_s28 + $0x14] ss:$8 sps:$4 sm:$0xff]  }
 0x678   : > { %1926 = vadd.xlane.f32.xlu1 %v1925_v63  ;;  %v4872_v63 = vld [vmem:[%s6248_s28 + $0x10] ss:$8 sps:$4 sm:$0xff]  }
 0x67b   : > { %1932 = vrot.lane.b32.xlu0 %v6403_v51, %s5529_s8 }
 0x689   : > { %2044 = vrot.lane.b32.xlu1 %v6403_v51, %s5530_s11 }
 0x68d   : > { %2156 = vrot.lane.b32.xlu1 %v6403_v51, %s5531_s12 }
 0x6f2   : > { %v2040_v0 = vpop.xlane.xlu0 %2039 }
 0x6f6   : > { %v1933_v1 = vpop.permute.xlu0 %1932 }
 0x6f7   : > { %v1938_v2 = vsel %vm1821_vm2, %v1933_v1, 0  ;;  %v4885_v1 = vld [vmem:[%s7027_s0 + $0x8] sm:$0xff]  }
 0x6f8   : > { %4516 = vmatpush3.bf16.msra.mxu1 %v1938_v2  ;;  %v4880_v2 = vld [vmem:[%s6248_s28 + $0x34] ss:$8 sps:$4 sm:$0xff]  }
 0x6f9   : > { %4527 = vmatprep.subr.bf16.mxu1 %v5527_v4 }
 0x701   : > { %v2152_v5 = vpop.xlane.xlu1 %2151 }
 0x705   : > { %v1927_v6 = vpop.xlane.xlu1 %1926 }
 0x706   : > { %4999 = vrcp.f32 %v1927_v6  ;;  %v4884_v6 = vld [vmem:[%s6248_s28 + $0x44] ss:$8 sps:$4 sm:$0xff]  }
 0x707   : > { %5001 = vrcp.f32 %v2040_v0  ;;  %v4877_v0 = vld [vmem:[%s6248_s28 + $0x24] ss:$8 sps:$4 sm:$0xff]  }
 0x708   : > { %5003 = vrcp.f32 %v2152_v5  ;;  %v4878_v5 = vld [vmem:[%s6248_s28 + $0x30] ss:$8 sps:$4 sm:$0xff]  }
 0x709   : > { %v2045_v9 = vpop.permute.xlu1 %2044 }
 0x70a   : > { %v2050_v12 = vsel %vm1821_vm2, %v2045_v9, 0  ;;  %v4886_v9 = vld [vmem:[%s6248_s28 + $0x50] ss:$8 sps:$4 sm:$0xff]  }
 0x70d   : > { %v2157_v13 = vpop.permute.xlu1 %2156 }
 0x70e   : > { %v2162_v16 = vsel %vm1821_vm2, %v2157_v13, 0  ;;  %v4889_v13 = vld [vmem:[%s7027_s0 + $0x10] sm:$0xff]  }
 0x710   : > { %v5000_v7 = vpop.eup %4999 }
 0x711   : > { %v1929_v8 = vmul.f32 %v5000_v7, %v4998_v62  ;;  %v5002_v11 = vpop.eup %5001  ;;  %v4881_v62 = vld [vmem:[%s7027_s0] sm:$0xff]  }
 0x712   : > { %v2042_v51 = vmul.f32 %v5002_v11, %v4994_v54  ;;  %v5004_v15 = vpop.eup %5003  ;;  %v4882_v7 = vld [vmem:[%s6248_s28 + $0x40] ss:$8 sps:$4 sm:$0xff]  }
 0x713   : > { %v1930_v10 = vpack.c.bf16 %v1929_v8, %v1929_v8  ;;  %v2154_v17 = vmul.f32 %v5004_v15, %v4996_v55  ;;  %v4871_v55 = vld [vmem:[%s6248_s28 + $0x4] ss:$8 sps:$4 sm:$0xff]   ;;  %v4888_v8 = vld [vmem:[%s6248_s28 + $0x54] ss:$8 sps:$4 sm:$0xff]   ;;  %v4890_v15 = vld [vmem:[%s6248_s28 + $0x60] ss:$8 sps:$4 sm:$0xff]  }
 0x714   : > { %v2043_v14 = vpack.c.bf16 %v2042_v51, %v2042_v51  ;;  %2530 = vmatprep.subr.bf16.mxu0 %v4871_v55 }
 0x715   : > { %4518 = vmatmul.mubr.msk.bf16.vlgmr.msra.gmra.mrb[16].mxu1 %vm1805_vm3, %v1930_v10  ;;  %v2155_v18 = vpack.c.bf16 %v2154_v17, %v2154_v17  ;;  %v4896_v17 = vld [vmem:[%s6248_s28 + $0x74] ss:$8 sps:$4 sm:$0xff]  }
 0x716   : > { %4528 = vmatpush3.bf16.msra.mxu1 %v2050_v12  ;;  %4529 = vmatprep.mubr.msk.bf16.mxu1 %vm5528_vm0, %v5527_v4 }
 0x717   : > { %4539 = vmatprep.subr.bf16.mxu1 %v5527_v4 }
 0x71d   : > { %4530 = vmatmul.mubr.msk.bf16.vlgmr.msra.gmra.mrb[20].mxu1 %vm1805_vm3, %v2043_v14  ;;  %v4892_v14 = vld [vmem:[%s6248_s28 + $0x64] ss:$8 sps:$4 sm:$0xff]  }
 0x71e   : > { %4540 = vmatpush3.bf16.msra.mxu1 %v2162_v16  ;;  %4541 = vmatprep.mubr.msk.bf16.mxu1 %vm5528_vm0, %v5527_v4  ;;  %v4893_v16 = vld [vmem:[%s7027_s0 + $0x18] sm:$0xff]  }
 0x71f   : > { %4565 = vmatprep.subr.bf16.mxu1 %v5527_v4 }
 0x725   : > { %4542 = vmatmul.mubr.msk.bf16.vlgmr.msra.gmra.mrb[24].mxu1 %vm1805_vm3, %v2155_v18  ;;  %v4894_v18 = vld [vmem:[%s6248_s28 + $0x70] ss:$8 sps:$4 sm:$0xff]  }
 0x726   : > { %4581 = vmatprep.mubr.msk.bf16.mxu1 %vm5528_vm0, %v5527_v4  ;;  %4566 = vmatpush3.bf16.msra.mxu1 %v4881_v62 }
 0x727   : > { %4567 = vmatprep.subr.bf16.mxu1 %v5527_v4 }
 0x72a   : > { %4568 = vmatpush3.bf16.msra.mxu1 %v4885_v1 }
 0x72b   : > { %4569 = vmatprep.subr.bf16.mxu1 %v5527_v4 }
 0x72e   : > { %4570 = vmatpush3.bf16.msra.mxu1 %v4889_v13 }
 0x72f   : > { %4571 = vmatprep.subr.bf16.mxu1 %v5527_v4 }
 0x732   : > { %4572 = vmatpush3.bf16.msra.mxu1 %v4893_v16 }
 0x733   : > { %4573 = vmatprep.subr.bf16.mxu1 %v5527_v4 }
 0x736   : > { %4574 = vmatpush3.bf16.msra.mxu1 %v4897_v19 }
 0x737   : > { %4575 = vmatprep.subr.bf16.mxu1 %v5527_v4 }
 0x73a   : > { %4576 = vmatpush3.bf16.msra.mxu1 %v4898_v25 }
 0x73b   : > { %4577 = vmatprep.subr.bf16.mxu1 %v5527_v4 }
 0x73e   : > { %4578 = vmatpush3.bf16.msra.mxu1 %v4899_v26 }
 0x73f   : > { %4579 = vmatprep.subr.bf16.mxu1 %v5527_v4 }
 0x742   : > { %4580 = vmatpush3.bf16.msra.mxu1 %v4900_v27 }
 0x743   : > { %4585 = vmatprep.subr.bf16.mxu1 %v5527_v4 }
 0x7e8   : > { %v1974_v28 = vpop.f32.mrb[16].mxu1 }
 0x7e9   : > { %2205 = vrot.lane.b32.xlu0 %v1974_v28, %s5531_s12  ;;  %v4519_v29 = vpop.f32.mrb[17].mxu1 }
 0x7ea   : > { %v1977_v32 = vpop.f32.mrb[18].mxu1 }
 0x7eb   : > { %v4520_v34 = vpop.f32.mrb[19].mxu1 }
 0x7f0   : > { %v2086_v36 = vpop.f32.mrb[20].mxu1 }
 0x7f1   : > { %2209 = vrot.lane.b32.xlu1 %v2086_v36, %s5530_s11  ;;  %v4531_v37 = vpop.f32.mrb[21].mxu1 }
 0x7f2   : > { %v2089_v38 = vpop.f32.mrb[22].mxu1  ;;  %v4241_v37 = vld [vmem:[%s1297_s30] ss:$0 sm:$0xff] }
 0x7f3   : > { %v4532_v39 = vpop.f32.mrb[23].mxu1 }
 0x7f8   : > { %v2198_v40 = vpop.f32.mrb[24].mxu1 }
 0x7f9   : > { %2213 = vrot.lane.b32.xlu0 %v2198_v40, %s5529_s8  ;;  %v4543_v41 = vpop.f32.mrb[25].mxu1 }
 0x7fa   : > { %v2201_v42 = vpop.f32.mrb[26].mxu1 }
 0x7fb   : > { %v4544_v43 = vpop.f32.mrb[27].mxu1 }
 0x85b   : > { %v2206_v44 = vpop.permute.xlu0 %2205 }
 0x85c   : > { %v2216_v47 = vsel %vm1756_vm1, %v6432_v22, %v2206_v44 }
 0x863   : > { %v2210_v46 = vpop.permute.xlu1 %2209 }
 0x864   : > { %v2218_v48 = vsel %vm2217_vm4, %v2216_v47, %v2210_v46 }
 0x86b   : > { %v2214_v49 = vpop.permute.xlu0 %2213 }
 0x86c   : > { %v2220_v50 = vsel %vm2219_vm5, %v2218_v48, %v2214_v49 }
 0x86d   : > { %v2221_v52 = vpack.c.bf16 %v2220_v50, %v2220_v50 }
 0x86f   : > { %4562 = vmatmul.mubr.bf16.vlgmr.msra.gmra.mrb[12].mxu0 %v2221_v52 }
 0x870   : > { %2562 = vmatprep.mubr.bf16.mxu0 %v5526_v3  ;;  %2531 = vmatpush1.bf16.msra.mxu0 %v4869_v60 }
 0x871   : > { %2532 = vmatprep.subr.bf16.mxu0 %v4874_v61 }
 0x874   : > { %2533 = vmatpush1.bf16.msra.mxu0 %v4872_v63 }
 0x875   : > { %2534 = vmatprep.subr.bf16.mxu0 %v4877_v0  ;;  %v6565_v0 = vld [vmem:[%s7036_s1] ss:$0 sm:$0xff]  ;;  %s4355_s1 = sshll.u32 %s7046_s17, 7 }
 0x942   : > { %v2310_v22 = vpop.f32.mrb[12].mxu0 }
 0x943   : > { %v2311_v54 = vadd.f32 %v4231_v53, %v2310_v22  ;;  %v4563_v56 = vpop.f32.mrb[13].mxu0 }
 0x944   : > { %v2313_v57 = vpop.f32.mrb[14].mxu0 }
 0x945   : > { %v4564_v58 = vpop.f32.mrb[15].mxu0  ;;  %v2316_v59 = vadd.f32 %v2311_v54, %v6360_v24  ;;  %v4875_v24 = vld [vmem:[%s6248_s28 + $0x20] ss:$8 sps:$4 sm:$0xff]   ;;  %s7031_s28 = sld [smem:[#allocation55_spill]]  ;;  %v4242_v57 = vld [vmem:[%s7035_s2] ss:$0 sm:$0xff] }
 0x946   : > { %2535 = vmatpush1.bf16.msra.mxu0 %v4875_v24 }
 0x947   : > { %2317 = vadd.xlane.f32.xlu1 %v2316_v59  ;;  %2536 = vmatprep.subr.bf16.mxu0 %v4880_v2 }
 0x94a   : > { %2537 = vmatpush1.bf16.msra.mxu0 %v4878_v5 }
 0x94b   : > { %2538 = vmatprep.subr.bf16.mxu0 %v4884_v6  ;;  %v1405_v41 = vld [vmem:[%s7031_s28] sm:$0x3] }
 0x94c   : > { %v2443_v42 = vrot.slane %v1405_v41, %v6386_v33  ;;  %v2447_v43 = vrot.slane %v1405_v41, %v6382_v31 }
 0x94e   : > { %2539 = vmatpush1.bf16.msra.mxu0 %v4882_v7 }
 0x94f   : > { %2540 = vmatprep.subr.bf16.mxu0 %v4888_v8 }
 0x952   : > { %2541 = vmatpush1.bf16.msra.mxu0 %v4886_v9 }
 0x953   : > { %2542 = vmatprep.subr.bf16.mxu0 %v4892_v14 }
 0x956   : > { %2543 = vmatpush1.bf16.msra.mxu0 %v4890_v15 }
 0x957   : > { %2544 = vmatprep.subr.bf16.mxu0 %v4896_v17 }
 0x95a   : > { %2545 = vmatpush1.bf16.msra.mxu0 %v4894_v18 }
 0x95b   : > { %4609 = vmatprep.subr.bf16.mxu0 %v5527_v4 }
 0x95d   : > { %2563 = vmatmul.mubr.bf16.vlgmr.msra.gmra.mrb[16].mxu0 %v2438_v23 }
 0x95e   : > { %4611 = vmatprep.mubr.msk.bf16.mxu0 %vm5528_vm0, %v5527_v4 }
 0x9d4   : > { %v2318_v10 = vpop.xlane.xlu1 %2317 }
 0x9d5   : > { %v2320_v11 = vmul.f32 0.0078125, %v2318_v10 }
 0x9d7   : > { %v2321_v12 = vsub.f32 %v2316_v59, %v2320_v11 }
 0x9d9   : > { %v2322_v51 = vmul.f32 %v2321_v12, %v2321_v12 }
 0x9db   : > { %2323 = vadd.xlane.f32.xlu0 %v2322_v51 }
 0xa30   : > { %v2564_v44 = vpop.f32.mrb[16].mxu0 }
 0xa31   : > { %v2565_v46 = vadd.f32 %v2564_v44, %v2443_v42  ;;  %v2566_v47 = vpop.f32.mrb[17].mxu0 }
 0xa32   : > { %v2567_v48 = vadd.f32 %v2566_v47, %v2447_v43  ;;  %v2568_v49 = vpop.f32.mrb[18].mxu0 }
 0xa33   : > { %v2569_v50 = vadd.f32 %v2568_v49, %v2443_v42  ;;  %v2570_v52 = vpop.f32.mrb[19].mxu0 }
 0xa34   : > { %v2571_v53 = vadd.f32 %v2570_v52, %v2447_v43 }
 0xa35   : > { %v2574_v22 = vpack.c.bf16 %v2569_v50, %v2565_v46 }
 0xa36   : > { %v6549_v54 = vpack.c.bf16 %v2571_v53, %v2567_v48 }
 0xa37   : > { %v2580_v56 = vsel %vm1756_vm1, %v2574_v22, 0 }
 0xa68   : > { %v2324_v28 = vpop.xlane.xlu0 %2323 }
 0xa69   : > { %v2325_v29 = vmul.f32 0.0078125, %v2324_v28 }
 0xa6b   : > { %v2326_v32 = vadd.f32 1e-05, %v2325_v29 }
 0xa6d   : > { %5005 = vrsqrt.f32 %v2326_v32 }
 0xa77   : > { %v5006_v34 = vpop.eup %5005 }
 0xa78   : > { %v2328_v36 = vmul.f32 %v5006_v34, %v2321_v12 }
 0xa7a   : > { %v2335_v38 = vmul.f32 %v4240_v35, %v2328_v36 }
 0xa7c   : > { %v6540_v39 = vadd.f32 %v4241_v37, %v2335_v38 }
 0xa7e   : > { %v2343_v40 = vpack.c.bf16 %v6540_v39, %v6540_v39 }
 0xa80   : > { %4582 = vmatmul.mubr.bf16.vlgmr.msra.gmra.mrb[28].mxu1 %v2343_v40 }
 0xa81   : > { %4587 = vmatprep.mubr.msk.bf16.mxu1 %vm5528_vm0, %v5527_v4  ;;  %4586 = vmatpush3.bf16.xpose.msra.mxu1 %v2580_v56 }
 0xa82   : > { %4591 = vmatprep.subr.bf16.mxu1 %v5527_v4 }
 0xb53   : > { %v2432_v58 = vpop.f32.mrb[28].mxu1 }
 0xb54   : > { %v2433_v59 = vadd.f32 %v4242_v57, %v2432_v58  ;;  %v4583_v60 = vpop.f32.mrb[29].mxu1 }
 0xb55   : > { %v2435_v55 = vpop.f32.mrb[30].mxu1 }
 0xb56   : > { %v2573_v61 = vpack.c.bf16 %v2433_v59, %v2433_v59  ;;  %v4584_v62 = vpop.f32.mrb[31].mxu1 }
 0xb58   : > { %4588 = vmatmul.mubr.msk.bf16.vlgmr.msra.gmra.mrb[32].mxu1 %vm1756_vm1, %v2573_v61 }
 0xb59   : > { %4592 = vmatpush3.bf16.msra.mxu1 %v6549_v54  ;;  %4593 = vmatprep.mubr.msk.bf16.mxu1 %vm5528_vm0, %v5527_v4 }
 0xb5a   : > { %4597 = vmatprep.subr.bf16.mxu1 %v5527_v4 }
 0xc2b   : > { %v2616_v63 = vpop.f32.mrb[32].mxu1 }
 0xc2c   : > { %v2622_v1 = vmul.f32 0.17677669, %v2616_v63  ;;  %v4589_v24 = vpop.f32.mrb[33].mxu1 }
 0xc2d   : > { %v2619_v2 = vpop.f32.mrb[34].mxu1 }
 0xc2e   : > { %v4590_v5 = vpop.f32.mrb[35].mxu1  ;;  %v2629_v6 = vadd.f32 %v6565_v0, %v2622_v1 }
 0xc30   : > { %v2631_v7 = vsel %vm2630_vm6, %v2629_v6, -inf }
 0xc31   : > { %2632 = vmax.xlane.f32.xlu0 %v2631_v7 }
 0xc47   : > { %2690 = vrot.lane.b32.xlu0 %v2574_v22, %s5529_s8 }
 0xc4b   : > { %2799 = vrot.lane.b32.xlu0 %v2573_v61, %s5530_s11 }
 0xc4f   : > { %2909 = vrot.lane.b32.xlu0 %v2573_v61, %s5531_s12 }
 0xcbe   : > { %v2633_v8 = vpop.xlane.xlu0 %2632 }
 0xcbf   : > { %v2634_v9 = vsub.f32 %v2629_v6, %v2633_v8 }
 0xcc1   : > { %v2635_v10 = vmul.f32 1.442695, %v2634_v9 }
 0xcc2   : > { %v2691_v16 = vpop.permute.xlu0 %2690 }
 0xcc3   : > { %5007 = vpow2.f32 %v2635_v10  ;;  %v2696_v21 = vsel %vm1756_vm1, %v2691_v16, 0 }
 0xcc6   : > { %v2800_v23 = vpop.permute.xlu0 %2799 }
 0xcca   : > { %v2910_v26 = vpop.permute.xlu0 %2909 }
 0xccd   : > { %v5008_v11 = vpop.eup %5007 }
 0xcce   : > { %v2637_v12 = vsel %vm2630_vm6, %v5008_v11, 0.0 }
 0xccf   : > { %2638 = vadd.xlane.f32.xlu1 %v2637_v12 }
 0xce0   : > { %2687 = vrot.lane.b32.xlu1 %v2573_v61, %s5529_s8 }
 0xce4   : > { %2801 = vrot.lane.b32.xlu1 %v2574_v22, %s5530_s11 }
 0xce8   : > { %2911 = vrot.lane.b32.xlu1 %v2574_v22, %s5531_s12 }
 0xd5c   : > { %v2639_v51 = vpop.xlane.xlu1 %2638 }
 0xd5d   : > { %5009 = vrcp.f32 %v2639_v51 }
 0xd60   : > { %v2688_v13 = vpop.permute.xlu1 %2687 }
 0xd64   : > { %v2802_v14 = vpop.permute.xlu1 %2801 }
 0xd65   : > { %v2807_v15 = vsel %vm1756_vm1, %v2802_v14, 0 }
 0xd66   : > { %4610 = vmatpush3.bf16.xpose.msra.mxu0 %v2807_v15 }
 0xd67   : > { %v5010_v17 = vpop.eup %5009  ;;  %4621 = vmatprep.subr.bf16.mxu0 %v5527_v4 }
 0xd68   : > { %v2641_v18 = vmul.f32 %v5010_v17, %v5008_v11  ;;  %v2912_v19 = vpop.permute.xlu1 %2911 }
 0xd69   : > { %v2917_v25 = vsel %vm1756_vm1, %v2912_v19, 0 }
 0xd6a   : > { %v2642_v20 = vpack.c.bf16 %v2641_v18, %v2641_v18 }
 0xd6c   : > { %4594 = vmatmul.mubr.msk.bf16.vlgmr.msra.gmra.mrb[36].mxu1 %vm2630_vm6, %v2642_v20 }
 0xd6d   : > { %4598 = vmatpush3.bf16.xpose.msra.mxu1 %v2696_v21  ;;  %4612 = vmatmul.mubr.msk.bf16.vlgmr.msra.gmra.mrb[20].mxu0 %vm1756_vm1, %v2800_v23 }
 0xd6e   : > { %4622 = vmatpush3.bf16.xpose.msra.mxu0 %v2917_v25  ;;  %4599 = vmatprep.mubr.msk.bf16.mxu1 %vm5528_vm0, %v5527_v4  ;;  %v4901_v25 = vld [vmem:[%s7037_s29] sm:$0xff]  }
 0xd6f   : > { %4623 = vmatprep.mubr.msk.bf16.mxu0 %vm5528_vm0, %v5527_v4  ;;  %4603 = vmatprep.subr.bf16.mxu1 %v5527_v4 }
 0xd70   : > { %4633 = vmatprep.subr.bf16.mxu0 %v5527_v4 }
 0xd74   : > { %4600 = vmatmul.mubr.msk.bf16.vlgmr.msra.gmra.mrb[40].mxu1 %vm1756_vm1, %v2688_v13 }
 0xd75   : > { %4624 = vmatmul.mubr.msk.bf16.vlgmr.msra.gmra.mrb[24].mxu0 %vm1756_vm1, %v2910_v26  ;;  %4605 = vmatprep.mubr.msk.bf16.mxu1 %vm5528_vm0, %v5527_v4  ;;  %v4902_v26 = vld [vmem:[%s7037_s29 + $0x8] sm:$0xff]  }
 0xd76   : > { %4649 = vmatprep.mubr.msk.bf16.mxu0 %vm5528_vm0, %v5527_v4  ;;  %4634 = vmatpush3.bf16.msra.mxu0 %v4901_v25  ;;  %v4939_v25 = vld [vmem:[%s7038_s16 + $0xa0] ss:$16 sps:$4 sm:$0xff]  }
 0xd77   : > { %4635 = vmatprep.subr.bf16.mxu0 %v5527_v4 }
 0xd7a   : > { %4636 = vmatpush3.bf16.msra.mxu0 %v4902_v26  ;;  %v4942_v26 = vld [vmem:[%s7038_s16 + $0xa8] ss:$16 sps:$4 sm:$0xff]  }
 0xd7b   : > { %4637 = vmatprep.subr.bf16.mxu0 %v5527_v4 }
 0xe3f   : > { %v6594_v27 = vpop.f32.mrb[36].mxu1 }
 0xe40   : > { %v4595_v28 = vpop.f32.mrb[37].mxu1  ;;  %v2843_v29 = vpop.f32.mrb[20].mxu0 }
 0xe41   : > { %v2849_v32 = vmul.f32 0.17677669, %v2843_v29  ;;  %v2683_v34 = vpop.f32.mrb[38].mxu1  ;;  %v4613_v35 = vpop.f32.mrb[21].mxu0  ;;  %v4903_v28 = vld [vmem:[%s7037_s29 + $0x10] sm:$0xff]   ;;  %v4904_v29 = vld [vmem:[%s7037_s29 + $0x18] sm:$0xff]  }
 0xe42   : > { %v4596_v36 = vpop.f32.mrb[39].mxu1  ;;  %v2846_v37 = vpop.f32.mrb[22].mxu0  ;;  %4638 = vmatpush3.bf16.msra.mxu0 %v4903_v28  ;;  %v4906_v34 = vld [vmem:[%s7037_s29 + $0x28] sm:$0xff]   ;;  %v4907_v35 = vld [vmem:[%s7037_s29 + $0x30] sm:$0xff]  }
 0xe43   : > { %v4614_v38 = vpop.f32.mrb[23].mxu0  ;;  %v2850_v40 = vadd.f32 %v6565_v0, %v2849_v32  ;;  %4639 = vmatprep.subr.bf16.mxu0 %v5527_v4  ;;  %v4905_v32 = vld [vmem:[%s7037_s29 + $0x20] sm:$0xff]  }
 0xe44   : > { %v4947_v28 = vld [vmem:[%s7038_s16 + $0xc4] ss:$16 sps:$4 sm:$0xff]  }
 0xe45   : > { %v2851_v41 = vsel %vm2630_vm6, %v2850_v40, -inf }
 0xe46   : > { %2852 = vmax.xlane.f32.xlu0 %v2851_v41  ;;  %4640 = vmatpush3.bf16.msra.mxu0 %v4904_v29  ;;  %v4908_v41 = vld [vmem:[%s7037_s29 + $0x38] sm:$0xff]   ;;  %s3747_s29 = sshll.u32 %s6330_s14, 4  ;;  %s6757_s29 = int_to_ptr.vmem [resolvable:$true] %s3747_s29 }
 0xe47   : > { %v2732_v42 = vpop.f32.mrb[40].mxu1  ;;  %4641 = vmatprep.subr.bf16.mxu0 %v5527_v4  ;;  %v4950_v29 = vld [vmem:[%s7038_s16 + $0xcc] ss:$16 sps:$4 sm:$0xff]  }
 0xe48   : > { %v2738_v43 = vmul.f32 0.17677669, %v2732_v42  ;;  %v4601_v44 = vpop.f32.mrb[41].mxu1  ;;  %v2953_v46 = vpop.f32.mrb[24].mxu0 }
 0xe49   : > { %v2959_v47 = vmul.f32 0.17677669, %v2953_v46  ;;  %v2735_v48 = vpop.f32.mrb[42].mxu1  ;;  %v4625_v49 = vpop.f32.mrb[25].mxu0 }
 0xe4a   : > { %v4602_v50 = vpop.f32.mrb[43].mxu1  ;;  %v2956_v52 = vpop.f32.mrb[26].mxu0  ;;  %v2739_v53 = vadd.f32 %v6565_v0, %v2738_v43  ;;  %4642 = vmatpush3.bf16.msra.mxu0 %v4905_v32  ;;  %v4945_v32 = vld [vmem:[%s7038_s16 + $0xc0] ss:$16 sps:$4 sm:$0xff]  }
 0xe4b   : > { %v4626_v22 = vpop.f32.mrb[27].mxu0  ;;  %v2960_v56 = vadd.f32 %v6565_v0, %v2959_v47  ;;  %4643 = vmatprep.subr.bf16.mxu0 %v5527_v4 }
 0xe4c   : > { %v2740_v57 = vsel %vm2630_vm6, %v2739_v53, -inf }
 0xe4d   : > { %2741 = vmax.xlane.f32.xlu1 %v2740_v57  ;;  %v2961_v58 = vsel %vm2630_vm6, %v2960_v56, -inf }
 0xe4e   : > { %2962 = vmax.xlane.f32.xlu0 %v2961_v58  ;;  %4644 = vmatpush3.bf16.msra.mxu0 %v4906_v34  ;;  %v4948_v34 = vld [vmem:[%s7038_s16 + $0xc8] ss:$16 sps:$4 sm:$0xff]  }
 0xe4f   : > { %4645 = vmatprep.subr.bf16.mxu0 %v5527_v4 }
 0xe52   : > { %4646 = vmatpush3.bf16.msra.mxu0 %v4907_v35  ;;  %v4953_v35 = vld [vmem:[%s7038_s16 + $0xe4] ss:$16 sps:$4 sm:$0xff]  }
 0xe53   : > { %4647 = vmatprep.subr.bf16.mxu0 %v5527_v4 }
 0xe56   : > { %4648 = vmatpush3.bf16.msra.mxu0 %v4908_v41  ;;  %v4958_v41 = vld [vmem:[%s6326_s13 + $0xc0] sm:$0xff]  }
 0xed3   : > { %v2853_v59 = vpop.xlane.xlu0 %2852 }
 0xed4   : > { %v2854_v60 = vsub.f32 %v2850_v40, %v2853_v59 }
 0xed6   : > { %v2855_v55 = vmul.f32 1.442695, %v2854_v60 }
 0xed8   : > { %5011 = vpow2.f32 %v2855_v55 }
 0xeda   : > { %v2742_v61 = vpop.xlane.xlu1 %2741 }
 0xedb   : > { %v2743_v62 = vsub.f32 %v2739_v53, %v2742_v61  ;;  %v2963_v63 = vpop.xlane.xlu0 %2962 }
 0xedc   : > { %v2964_v1 = vsub.f32 %v2960_v56, %v2963_v63 }
 0xedd   : > { %v2744_v24 = vmul.f32 1.442695, %v2743_v62 }
 0xede   : > { %v2965_v2 = vmul.f32 1.442695, %v2964_v1  ;;  %v4909_v1 = vld [vmem:[%s7038_s16] ss:$16 sps:$4 sm:$0xff]  }
 0xee0   : > { %5013 = vpow2.f32 %v2965_v2  ;;  %v4914_v2 = vld [vmem:[%s7038_s16 + $0xc] ss:$16 sps:$4 sm:$0xff]  }
 0xee1   : > { %5015 = vpow2.f32 %v2744_v24  ;;  %v4911_v24 = vld [vmem:[%s7038_s16 + $0x4] ss:$16 sps:$4 sm:$0xff]   ;;  %3378 = vmatprep.subr.bf16.mxu0 %v4914_v2 }
 0xee2   : > { %v5012_v5 = vpop.eup %5011  ;;  %v4974_v2 = vld [vmem:[%s6326_s13 + $0xe0] sm:$0xff]  }
 0xee3   : > { %v2857_v0 = vsel %vm2630_vm6, %v5012_v5, 0.0 }
 0xee4   : > { %2858 = vadd.xlane.f32.xlu0 %v2857_v0  ;;  %v4920_v0 = vld [vmem:[%s7038_s16 + $0x2c] ss:$16 sps:$4 sm:$0xff]  }
 0xeea   : > { %v5014_v6 = vpop.eup %5013 }
 0xeeb   : > { %v2967_v7 = vsel %vm2630_vm6, %v5014_v6, 0.0  ;;  %v5016_v8 = vpop.eup %5015 }
 0xeec   : > { %2968 = vadd.xlane.f32.xlu1 %v2967_v7  ;;  %v2746_v9 = vsel %vm2630_vm6, %v5016_v8, 0.0  ;;  %v4918_v7 = vld [vmem:[%s7038_s16 + $0x28] ss:$16 sps:$4 sm:$0xff]  }
 0xef0   : > { %2747 = vadd.xlane.f32.xlu1 %v2746_v9  ;;  %v4921_v9 = vld [vmem:[%s7038_s16 + $0x40] ss:$16 sps:$4 sm:$0xff]  }
 0xefa   : > { %2753 = vrot.lane.b32.xlu0 %v6549_v54, %s5529_s8 }
 0xf01   : > { %2863 = vrot.lane.b32.xlu1 %v6549_v54, %s5530_s11 }
 0xf05   : > { %2973 = vrot.lane.b32.xlu1 %v6549_v54, %s5531_s12 }
 0xf71   : > { %v2859_v10 = vpop.xlane.xlu0 %2858 }
 0xf75   : > { %v2754_v11 = vpop.permute.xlu0 %2753 }
 0xf76   : > { %4604 = vmatpush3.bf16.msra.mxu1 %v2754_v11 }
 0xf77   : > { %4615 = vmatprep.subr.bf16.mxu1 %v5527_v4 }
 0xf79   : > { %v2969_v12 = vpop.xlane.xlu1 %2968 }
 0xf7d   : > { %v2748_v51 = vpop.xlane.xlu1 %2747 }
 0xf7e   : > { %5017 = vrcp.f32 %v2748_v51 }
 0xf7f   : > { %5019 = vrcp.f32 %v2859_v10  ;;  %v4924_v10 = vld [vmem:[%s7038_s16 + $0x48] ss:$16 sps:$4 sm:$0xff]  }
 0xf80   : > { %5021 = vrcp.f32 %v2969_v12 }
 0xf81   : > { %v2864_v17 = vpop.permute.xlu1 %2863 }
 0xf85   : > { %v2974_v20 = vpop.permute.xlu1 %2973 }
 0xf88   : > { %v5018_v13 = vpop.eup %5017 }
 0xf89   : > { %v2750_v14 = vmul.f32 %v5018_v13, %v5016_v8  ;;  %v5020_v16 = vpop.eup %5019  ;;  %v4923_v8 = vld [vmem:[%s7038_s16 + $0x44] ss:$16 sps:$4 sm:$0xff]  }
 0xf8a   : > { %v2861_v54 = vmul.f32 %v5020_v16, %v5012_v5  ;;  %v5022_v19 = vpop.eup %5021  ;;  %v4917_v5 = vld [vmem:[%s7038_s16 + $0x24] ss:$16 sps:$4 sm:$0xff]   ;;  %v4927_v16 = vld [vmem:[%s7038_s16 + $0x60] ss:$16 sps:$4 sm:$0xff]  }
 0xf8b   : > { %v2751_v15 = vpack.c.bf16 %v2750_v14, %v2750_v14  ;;  %v2971_v21 = vmul.f32 %v5022_v19, %v5014_v6  ;;  %v4915_v6 = vld [vmem:[%s7038_s16 + $0x20] ss:$16 sps:$4 sm:$0xff]   ;;  %v4929_v14 = vld [vmem:[%s7038_s16 + $0x64] ss:$16 sps:$4 sm:$0xff]  }
 0xf8c   : > { %v2862_v18 = vpack.c.bf16 %v2861_v54, %v2861_v54  ;;  %v4935_v54 = vld [vmem:[%s7038_s16 + $0x84] ss:$16 sps:$4 sm:$0xff]   ;;  %v4933_v19 = vld [vmem:[%s7038_s16 + $0x80] ss:$16 sps:$4 sm:$0xff]  }
 0xf8d   : > { %4606 = vmatmul.mubr.msk.bf16.vlgmr.msra.gmra.mrb[44].mxu1 %vm2630_vm6, %v2751_v15  ;;  %v2972_v23 = vpack.c.bf16 %v2971_v21, %v2971_v21  ;;  %v4932_v15 = vld [vmem:[%s7038_s16 + $0x6c] ss:$16 sps:$4 sm:$0xff]   ;;  %v4941_v21 = vld [vmem:[%s7038_s16 + $0xa4] ss:$16 sps:$4 sm:$0xff]  }
 0xf8e   : > { %4616 = vmatpush3.bf16.msra.mxu1 %v2864_v17  ;;  %4617 = vmatprep.mubr.msk.bf16.mxu1 %vm5528_vm0, %v5527_v4  ;;  %v4930_v17 = vld [vmem:[%s7038_s16 + $0x68] ss:$16 sps:$4 sm:$0xff]  }
 0xf8f   : > { %4627 = vmatprep.subr.bf16.mxu1 %v5527_v4 }
 0xf95   : > { %4618 = vmatmul.mubr.msk.bf16.vlgmr.msra.gmra.mrb[48].mxu1 %vm2630_vm6, %v2862_v18  ;;  %v4938_v18 = vld [vmem:[%s7038_s16 + $0x8c] ss:$16 sps:$4 sm:$0xff]  }
 0xf96   : > { %4628 = vmatpush3.bf16.msra.mxu1 %v2974_v20  ;;  %4629 = vmatprep.mubr.msk.bf16.mxu1 %vm5528_vm0, %v5527_v4  ;;  %v4936_v20 = vld [vmem:[%s7038_s16 + $0x88] ss:$16 sps:$4 sm:$0xff]  }
 0xf97   : > { %3337 = vmatprep.subr.bf16.mxu1 %v4911_v24  ;;  %v4972_v24 = vld [vmem:[%s6326_s13 + $0x98] sm:$0xff]  }
 0xf9d   : > { %4630 = vmatmul.mubr.msk.bf16.vlgmr.msra.gmra.mrb[52].mxu1 %vm2630_vm6, %v2972_v23  ;;  %v4944_v23 = vld [vmem:[%s7038_s16 + $0xac] ss:$16 sps:$4 sm:$0xff]  }
 0xf9e   : > { %3369 = vmatprep.mubr.bf16.mxu1 %v5526_v3  ;;  %3338 = vmatpush1.bf16.msra.mxu1 %v4909_v1  ;;  %v4971_v1 = vld [vmem:[%s6326_s13 + $0x18] sm:$0xff]  }
 0xf9f   : > { %3339 = vmatprep.subr.bf16.mxu1 %v4917_v5  ;;  %v4975_v5 = vld [vmem:[%s6326_s13 + $0x20] sm:$0xff]  }
 0xfa2   : > { %3340 = vmatpush1.bf16.msra.mxu1 %v4915_v6  ;;  %v4977_v6 = vld [vmem:[%s6326_s13 + $0x68] sm:$0xff]  }
 0xfa3   : > { %3341 = vmatprep.subr.bf16.mxu1 %v4923_v8  ;;  %v4979_v8 = vld [vmem:[%s6326_s13 + $0x28] sm:$0xff]  }
 0xfa6   : > { %3342 = vmatpush1.bf16.msra.mxu1 %v4921_v9  ;;  %v4981_v9 = vld [vmem:[%s6326_s13 + $0x70] sm:$0xff]  }
 0xfa7   : > { %3343 = vmatprep.subr.bf16.mxu1 %v4929_v14  ;;  %v4987_v14 = vld [vmem:[%s6326_s13 + $0x38] sm:$0xff]  }
 0xfaa   : > { %3344 = vmatpush1.bf16.msra.mxu1 %v4927_v16 }
 0xfab   : > { %3345 = vmatprep.subr.bf16.mxu1 %v4935_v54 }
 0xfae   : > { %3346 = vmatpush1.bf16.msra.mxu1 %v4933_v19 }
 0xfaf   : > { %3347 = vmatprep.subr.bf16.mxu1 %v4941_v21 }
 0xfb2   : > { %3348 = vmatpush1.bf16.msra.mxu1 %v4939_v25 }
 0xfb3   : > { %3349 = vmatprep.subr.bf16.mxu1 %v4947_v28 }
 0xfb6   : > { %3350 = vmatpush1.bf16.msra.mxu1 %v4945_v32 }
 0xfb7   : > { %3351 = vmatprep.subr.bf16.mxu1 %v4953_v35 }
0x1060   : > { %v2793_v36 = vpop.f32.mrb[44].mxu1 }
0x1061   : > { %3020 = vrot.lane.b32.xlu0 %v2793_v36, %s5531_s12  ;;  %v4607_v37 = vpop.f32.mrb[45].mxu1  ;;  %s7039_s12 = sld [smem:[#allocation70_spill]]  ;;  %v4956_v36 = vld [vmem:[%s7038_s16 + $0xec] ss:$16 sps:$4 sm:$0xff]  }
0x1062   : > { %v2796_v38 = vpop.f32.mrb[46].mxu1  ;;  %v4951_v37 = vld [vmem:[%s7038_s16 + $0xe0] ss:$16 sps:$4 sm:$0xff]  }
0x1063   : > { %v4608_v40 = vpop.f32.mrb[47].mxu1  ;;  %v4954_v38 = vld [vmem:[%s7038_s16 + $0xe8] ss:$16 sps:$4 sm:$0xff]   ;;  %3352 = vmatpush1.bf16.msra.mxu1 %v4951_v37 }
0x1064   : > { %v4957_v40 = vld [vmem:[%s6326_s13 + $0x40] sm:$0xff]  }
0x1065   : > { %4433 = vmatprep.subr.bf16.mxu1 %v4957_v40 }
0x1067   : > { %s7040_s0 = scalar_lea.vmem %s7039_s12, %s6266_s9  ;;  %s5532_s9 = smov [#allocation21]  }
0x1068   : > { %v2903_v42 = vpop.f32.mrb[48].mxu1  ;;  %v4276_v59 = vld [vmem:[%s7040_s0] ss:$0 sm:$0xff]  ;;  %s5355_s0 = scalar_lea.vmem %s6757_s29, 128 }
0x1069   : > { %3024 = vrot.lane.b32.xlu1 %v2903_v42, %s5530_s11  ;;  %v4619_v43 = vpop.f32.mrb[49].mxu1  ;;  %s7050_s11 = sld [smem:[#allocation81_spill]]  ;;  %p5356_p11 = scmp.ne.s32.totalorder %s6757_s29, %s5355_s0 }
0x106a   : > { %v2906_v44 = vpop.f32.mrb[50].mxu1 }
0x106b   : > { %v4620_v46 = vpop.f32.mrb[51].mxu1  ;;  %p5357_p1 = pnand %p5356_p11, %p7051_p7 }
0x106d   : > { %p5358_p6 = pneg %p5357_p1 }
0x106f   : > { %s6755_s12 = scalar_lea.hbm %s7050_s11, %s4355_s1 }
0x1070   : > { %v3013_v47 = vpop.f32.mrb[52].mxu1 }
0x1071   : > { %3028 = vrot.lane.b32.xlu0 %v3013_v47, %s5529_s8  ;;  %v4631_v48 = vpop.f32.mrb[53].mxu1  ;;  %v4285_v47 = vld [vmem:[%s1300_s19] ss:$0 sm:$0xff]  ;;  %s7043_s19 = sld [smem:[#allocation56_spill]] }
0x1072   : > { %v3016_v49 = vpop.f32.mrb[54].mxu1 }
0x1073   : > { %v4632_v50 = vpop.f32.mrb[55].mxu1  ;;  %v4286_v49 = vld [vmem:[%s1303_s26] ss:$0 sm:$0xff] }
0x1077   : > { %v1455_v16 = vld [vmem:[%s7043_s19] sm:$0xf] }
0x1078   : > { %v3160_v54 = vrot.slane %v1455_v16, %v6386_v33  ;;  %v3164_v19 = vrot.slane %v1455_v16, %v6382_v31 }
0x10d3   : > { %v3021_v52 = vpop.permute.xlu0 %3020 }
0x10d4   : > { %v3031_v4 = vsel %vm1756_vm1, %v6594_v27, %v3021_v52 }
0x10db   : > { %v3025_v53 = vpop.permute.xlu1 %3024 }
0x10dc   : > { %v3032_v22 = vsel %vm2217_vm4, %v3031_v4, %v3025_v53  ;;  %v4959_v53 = vld [vmem:[%s6326_s13] sm:$0xff]  }
0x10dd   : > { %v4960_v4 = vld [vmem:[%s6326_s13 + $0x80] sm:$0xff]  }
0x10e3   : > { %v3029_v56 = vpop.permute.xlu0 %3028 }
0x10e4   : > { %v3033_v57 = vsel %vm2219_vm5, %v3032_v22, %v3029_v56  ;;  %v4961_v56 = vld [vmem:[%s6326_s13 + $0x48] sm:$0xff]  }
0x10e5   : > { %v3034_v58 = vpack.c.bf16 %v3033_v57, %v3033_v57  ;;  %v4962_v57 = vld [vmem:[%s6326_s13 + $0xc8] sm:$0xff]  }
0x10e7   : > { %4650 = vmatmul.mubr.bf16.vlgmr.msra.gmra.mrb[28].mxu0 %v3034_v58  ;;  %v4963_v58 = vld [vmem:[%s6326_s13 + $0x8] sm:$0xff]  }
0x10e8   : > { %3410 = vmatprep.mubr.bf16.mxu0 %v5526_v3  ;;  %v4912_v3 = vld [vmem:[%s7038_s16 + $0x8] ss:$16 sps:$4 sm:$0xff]  }
0x10e9   : > { %3379 = vmatpush1.bf16.msra.mxu0 %v4912_v3  ;;  %v4973_v3 = vld [vmem:[%s6326_s13 + $0x60] sm:$0xff]  }
0x10ea   : > { %3380 = vmatprep.subr.bf16.mxu0 %v4920_v0  ;;  %v4976_v0 = vld [vmem:[%s6326_s13 + $0xa0] sm:$0xff]  }
0x10ed   : > { %3381 = vmatpush1.bf16.msra.mxu0 %v4918_v7  ;;  %v4978_v7 = vld [vmem:[%s6326_s13 + $0xe8] sm:$0xff]  }
0x11ba   : > { %v3123_v27 = vpop.f32.mrb[28].mxu0 }
0x11bb   : > { %v3124_v60 = vadd.f32 %v4276_v59, %v3123_v27  ;;  %v4651_v55 = vpop.f32.mrb[29].mxu0  ;;  %v4964_v59 = vld [vmem:[%s6326_s13 + $0x88] sm:$0xff]   ;;  %v4965_v27 = vld [vmem:[%s6326_s13 + $0x50] sm:$0xff]  }
0x11bc   : > { %v3126_v61 = vpop.f32.mrb[30].mxu0  ;;  %v4967_v55 = vld [vmem:[%s6326_s13 + $0x10] sm:$0xff]  }
0x11bd   : > { %v4652_v62 = vpop.f32.mrb[31].mxu0  ;;  %v3129_v63 = vadd.f32 %v3124_v60, %v6540_v39  ;;  %v4926_v39 = vld [vmem:[%s7038_s16 + $0x4c] ss:$16 sps:$4 sm:$0xff]   ;;  %v4966_v60 = vld [vmem:[%s6326_s13 + $0xd0] sm:$0xff]  }
0x11be   : > { %3382 = vmatprep.subr.bf16.mxu0 %v4926_v39  ;;  %v4968_v61 = vld [vmem:[%s6326_s13 + $0x90] sm:$0xff]   ;;  %v4969_v62 = vld [vmem:[%s6326_s13 + $0x58] sm:$0xff]   ;;  %v4980_v39 = vld [vmem:[%s6326_s13 + $0xa8] sm:$0xff]  }
0x11bf   : > { %3130 = vadd.xlane.f32.xlu1 %v3129_v63  ;;  %3383 = vmatpush1.bf16.msra.mxu0 %v4924_v10  ;;  %v4982_v10 = vld [vmem:[%s6326_s13 + $0xf0] sm:$0xff]  }
0x11c0   : > { %3384 = vmatprep.subr.bf16.mxu0 %v4932_v15  ;;  %v4988_v15 = vld [vmem:[%s6326_s13 + $0xb8] sm:$0xff]  }
0x11c3   : > { %3385 = vmatpush1.bf16.msra.mxu0 %v4930_v17  ;;  %v3171_v17 = vsub.s32 3, %v6379_v30 }
0x11c4   : > { %3386 = vmatprep.subr.bf16.mxu0 %v4938_v18  ;;  %v3168_v18 = vrot.slane %v1455_v16, %v1539_v45 }
0x11c7   : > { %3387 = vmatpush1.bf16.msra.mxu0 %v4936_v20  ;;  %v3172_v20 = vrot.slane %v1455_v16, %v3171_v17 }
0x11c8   : > { %3388 = vmatprep.subr.bf16.mxu0 %v4944_v23 }
0x11cb   : > { %3389 = vmatpush1.bf16.msra.mxu0 %v4942_v26 }
0x11cc   : > { %3390 = vmatprep.subr.bf16.mxu0 %v4950_v29 }
0x11cf   : > { %3391 = vmatpush1.bf16.msra.mxu0 %v4948_v34 }
0x11d0   : > { %3392 = vmatprep.subr.bf16.mxu0 %v4956_v36 }
0x11d3   : > { %3393 = vmatpush1.bf16.msra.mxu0 %v4954_v38 }
0x11d4   : > { %4455 = vmatprep.subr.bf16.mxu0 %v4958_v41 }
0x124c   : > { %v3131_v11 = vpop.xlane.xlu1 %3130 }
0x124d   : > { %v3132_v12 = vmul.f32 0.0078125, %v3131_v11  ;;  %v4983_v11 = vld [vmem:[%s6326_s13 + $0x30] sm:$0xff]  }
0x124f   : > { %v3133_v51 = vsub.f32 %v3129_v63, %v3132_v12  ;;  %v4970_v63 = vld [vmem:[%s6326_s13 + $0xd8] sm:$0xff]   ;;  %v4984_v12 = vld [vmem:[%s6326_s13 + $0xb0] sm:$0xff]  }
0x1251   : > { %v3134_v13 = vmul.f32 %v3133_v51, %v3133_v51 }
0x1253   : > { %3135 = vadd.xlane.f32.xlu0 %v3134_v13  ;;  %v4986_v13 = vld [vmem:[%s6326_s13 + $0xf8] sm:$0xff]  }
0x12e0   : > { %v3136_v42 = vpop.xlane.xlu0 %3135 }
0x12e1   : > { %v3137_v43 = vmul.f32 0.0078125, %v3136_v42 }
0x12e3   : > { %v3138_v44 = vadd.f32 1e-05, %v3137_v43 }
0x12e5   : > { %5023 = vrsqrt.f32 %v3138_v44 }
0x12ef   : > { %v5024_v46 = vpop.eup %5023 }
0x12f0   : > { %v3140_v48 = vmul.f32 %v5024_v46, %v3133_v51  ;;  %v4985_v51 = vld [vmem:[%s6326_s13 + $0x78] sm:$0xff]  }
0x12f2   : > { %v3147_v50 = vmul.f32 %v4285_v47, %v3140_v48  ;;  %v4319_v47 = vld [vmem:[%s7045_s7] ss:$0 sm:$0xff] }
0x12f4   : > { %v6694_v52 = vadd.f32 %v4286_v49, %v3147_v50 }
0x12f6   : > { %v3155_v22 = vpack.c.bf16 %v6694_v52, %v6694_v52 }
0x12f8   : > { %3370 = vmatmul.mubr.bf16.vlgmr.msra.gmra.mrb[56].mxu1 %v3155_v22  ;;  %3411 = vmatmul.mubr.bf16.vlgmr.msra.gmra.mrb[32].mxu0 %v3155_v22 }
0x12f9   : > { %4434 = vmatpush3.bf16.msra.mxu1 %v4959_v53  ;;  %4456 = vmatpush3.bf16.msra.mxu0 %v4960_v4 }
0x12fa   : > { %4435 = vmatprep.subr.bf16.mxu1 %v4961_v56  ;;  %4457 = vmatprep.subr.bf16.mxu0 %v4962_v57 }
0x12fd   : > { %4436 = vmatpush3.bf16.msra.mxu1 %v4963_v58  ;;  %4458 = vmatpush3.bf16.msra.mxu0 %v4964_v59 }
0x12fe   : > { %4437 = vmatprep.subr.bf16.mxu1 %v4965_v27  ;;  %4459 = vmatprep.subr.bf16.mxu0 %v4966_v60 }
0x1301   : > { %4438 = vmatpush3.bf16.msra.mxu1 %v4967_v55  ;;  %4460 = vmatpush3.bf16.msra.mxu0 %v4968_v61 }
0x1302   : > { %4439 = vmatprep.subr.bf16.mxu1 %v4969_v62  ;;  %4461 = vmatprep.subr.bf16.mxu0 %v4970_v63 }
0x1305   : > { %4440 = vmatpush3.bf16.msra.mxu1 %v4971_v1  ;;  %4462 = vmatpush3.bf16.msra.mxu0 %v4972_v24 }
0x1306   : > { %4441 = vmatprep.subr.bf16.mxu1 %v4973_v3  ;;  %4463 = vmatprep.subr.bf16.mxu0 %v4974_v2 }
0x1309   : > { %4442 = vmatpush3.bf16.msra.mxu1 %v4975_v5  ;;  %4464 = vmatpush3.bf16.msra.mxu0 %v4976_v0  ;;  %v4353_v5 = vld [vmem:[%s1309_s22] ss:$0 sm:$0xff]  ;;  %s5359_s22 = sshll.u32 %s5532_s9, 4  ;;  %s5360_s22 = int_to_ptr.vmem [resolvable:$false] %s5359_s22 }
0x130a   : > { %4443 = vmatprep.subr.bf16.mxu1 %v4977_v6  ;;  %4465 = vmatprep.subr.bf16.mxu0 %v4978_v7  ;;  %s5361_s24 = scalar_lea.vmem %s5360_s22, 256  ;;  %p5362_p12 = scmp.lt.s32.totalorder %s6757_s29, %s5360_s22 }
0x130b   : > { %p5363_p4 = scmp.lt.s32.totalorder %s5361_s24, %s5355_s0 }
0x130d   : > { %4444 = vmatpush3.bf16.msra.mxu1 %v4979_v8  ;;  %4466 = vmatpush3.bf16.msra.mxu0 %v4980_v39  ;;  %p5364_p10 = por %p5363_p4, %p5362_p12 }
0x130e   : > { %4445 = vmatprep.subr.bf16.mxu1 %v4981_v9  ;;  %4467 = vmatprep.subr.bf16.mxu0 %v4982_v10 }
0x130f   : > { %p5365_p9 = pnand %p5364_p10, %p5358_p6 }
0x1311   : > { %4446 = vmatpush3.bf16.msra.mxu1 %v4983_v11  ;;  %4468 = vmatpush3.bf16.msra.mxu0 %v4984_v12 }
0x1312   : > { %4447 = vmatprep.subr.bf16.mxu1 %v4985_v51  ;;  %4469 = vmatprep.subr.bf16.mxu0 %v4986_v13 }
0x1315   : > { %4448 = vmatpush3.bf16.msra.mxu1 %v4987_v14  ;;  %4470 = vmatpush3.bf16.msra.mxu0 %v4988_v15 }
0x13cb   : > { %v3371_v21 = vpop.f32.mrb[56].mxu1  ;;  %v3412_v23 = vpop.f32.mrb[32].mxu0 }
0x13cc   : > { %v3372_v25 = vadd.f32 %v3371_v21, %v3160_v54  ;;  %v3413_v26 = vadd.f32 %v3412_v23, %v3168_v18  ;;  %v3373_v28 = vpop.f32.mrb[57].mxu1  ;;  %v3414_v29 = vpop.f32.mrb[33].mxu0 }
0x13cd   : > { %v3374_v32 = vadd.f32 %v3373_v28, %v3164_v19  ;;  %v3415_v34 = vadd.f32 %v3414_v29, %v3172_v20  ;;  %v3375_v35 = vpop.f32.mrb[58].mxu1  ;;  %v3416_v36 = vpop.f32.mrb[34].mxu0 }
0x13ce   : > { %v3419_v37 = vmax.f32 %v3372_v25, 0.0  ;;  %v3421_v38 = vmax.f32 %v3413_v26, 0.0  ;;  %v3376_v33 = vpop.f32.mrb[59].mxu1  ;;  %v3417_v40 = vpop.f32.mrb[35].mxu0 }
0x13cf   : > { %v3420_v30 = vmax.f32 %v3374_v32, 0.0  ;;  %v3422_v45 = vmax.f32 %v3415_v34, 0.0 }
0x13d0   : > { %v3423_v42 = vpack.c.bf16 %v3419_v37, %v3419_v37  ;;  %v3425_v43 = vpack.c.bf16 %v3421_v38, %v3421_v38 }
0x13d1   : > { %v3424_v41 = vpack.c.bf16 %v3420_v30, %v3420_v30  ;;  %v3426_v31 = vpack.c.bf16 %v3422_v45, %v3422_v45 }
0x13d3   : > { %3657 = vmatprep.mubr.bf16.mxu1 %v3424_v41  ;;  %3697 = vmatprep.mubr.bf16.mxu0 %v3426_v31 }
0x13d4   : > { %3658 = vmatmul.mubr.bf16.vlgmr.msra.gmra.mrb[60].mxu1 %v3423_v42  ;;  %3698 = vmatmul.mubr.bf16.vlgmr.msra.gmra.mrb[36].mxu0 %v3425_v43 }
0x14a7   : > { %v4449_v44 = vpop.f32.mrb[60].mxu1  ;;  %v4471_v46 = vpop.f32.mrb[36].mxu0 }
0x14a8   : > { %v4450_v48 = vpop.f32.mrb[61].mxu1  ;;  %v4472_v49 = vpop.f32.mrb[37].mxu0 }
0x14a9   : > { %v4451_v50 = vadd.f32 %v4450_v48, %v4449_v44  ;;  %v4473_v53 = vadd.f32 %v4472_v49, %v4471_v46  ;;  %v4452_v4 = vpop.f32.mrb[62].mxu1  ;;  %v4474_v22 = vpop.f32.mrb[38].mxu0 }
0x14aa   : > { %v4453_v56 = vpop.f32.mrb[63].mxu1  ;;  %v4475_v57 = vpop.f32.mrb[39].mxu0 }
0x14ab   : > { %v3660_v58 = vadd.f32 %v4451_v50, %v4319_v47 }
0x14ad   : > { %v3700_v59 = vadd.f32 %v4473_v53, %v3660_v58 }
0x14af   : > { %v3705_v27 = vadd.f32 %v3700_v59, %v6694_v52  ;;  %v4352_v52 = vld [vmem:[%s1306_s27] ss:$0 sm:$0xff]  ;;  %s3734_s27 = scalar_lea.sflag [#allocation5], %s6193_s3 }
0x14b1   : > { %3706 = vadd.xlane.f32.xlu0 %v3705_v27 }
0x153e   : > { %v3707_v60 = vpop.xlane.xlu0 %3706 }
0x153f   : > { %v3708_v55 = vmul.f32 0.0078125, %v3707_v60 }
0x1541   : > { %v3709_v61 = vsub.f32 %v3705_v27, %v3708_v55 }
0x1543   : > { %v3710_v62 = vmul.f32 %v3709_v61, %v3709_v61 }
0x1545   : > { %3711 = vadd.xlane.f32.xlu1 %v3710_v62 }
0x15d2   : > { %v3712_v63 = vpop.xlane.xlu1 %3711 }
0x15d3   : > { %v3713_v1 = vmul.f32 0.0078125, %v3712_v63 }
0x15d5   : > { %v3714_v24 = vadd.f32 1e-05, %v3713_v1 }
0x15d7   : > { %5025 = vrsqrt.f32 %v3714_v24 }
0x15e1   : > { %v5026_v3 = vpop.eup %5025 }
0x15e2   : > { %v3716_v2 = vmul.f32 %v5026_v3, %v3709_v61 }
0x15e4   : > { %v3723_v0 = vmul.f32 %v4352_v52, %v3716_v2 }
0x15e6   : > { %v3730_v6 = vadd.f32 %v4353_v5, %v3723_v0 }
0x15e8   : > { %3731 = vst [vmem:[#allocation2] sm:$0xff] %v3730_v6  ;;  %3732 = vst [vmem:[%s6330_s14] sm:$0xff] %v3730_v6 }
0x15e9   : > { %5368 = shalt.err (!%p5365_p9)
}
0x15ea   : > { %s5369_s3 = scalar_lea.hbm %s6755_s12, 128  ;;  %s5373_s25 = scalar_lea.hbm %s7050_s11, 256 }
0x15eb   : > { %p5370_p5 = scmp.ne.s32.totalorder %s6755_s12, %s5369_s3  ;;  %p5374_p3 = scmp.lt.u32.totalorder %s6755_s12, %s7050_s11 }
0x15ec   : > { %p5375_p2 = scmp.lt.u32.totalorder %s5373_s25, %s5369_s3  ;;  %p5377_p11 = scmp.lt.u32.totalorder %s5369_s3, %s6755_s12 }
0x15ed   : > { %p5371_p0 = pnand %p5370_p5, %p7051_p7 }
0x15ee   : > { %p5376_p8 = por %p5375_p2, %p5374_p3 }
0x15ef   : > { %p5372_p13 = pneg %p5371_p0 }
0x15f0   : > { %p5378_p1 = por %p5377_p11, %p5376_p8 }
0x15f2   : > { %p5379_p6 = pnand %p5378_p1, %p5372_p13 }
0x15f4   : > { %5382 = shalt.err (!%p5379_p6)
}
0x15f5   : > { %4681 = dma.vmem_to_hbm [thread:$0]  (%p7051_p7), %s6757_s29, 128, %s6755_s12, %s3734_s27  }
0x15f6 PF: > { %s7052_s28 = sld [smem:[#allocation40_spill]]  ;;  %s7053_s19 = sld [smem:[#allocation33_spill]] }
0x15f7   : > { %s7054_s26 = sld [smem:[#allocation44_spill]] }
0x15fc   : > { %p4725_p12 = scmp.ge.s32.totalorder %s7052_s28, 2  ;;  %s3759_s13 = sand.u32 1, %s7053_s19  }
0x15fd   : > { %p7055_p4 = scmp.ne.s32.totalorder %s7054_s26, 0  ;;  %s3760_s18 = scalar_lea.sflag [#allocation5], %s3759_s13 }
0x15ff   : > { %p4719_p10 = pnand %p4725_p12, %p7055_p4 }
0x1601   : > { %5460 = dma.done.wait (!%p4719_p10), %s3760_s18, 128  }
0x1602   : > { %5462 = vsyncadd (!%p4719_p10), %s3760_s18, 4294967168  ;;  %s55_s3 = sadd.s32 1, %s7052_s28   ;;  %s7056_s5 = sld [smem:[#allocation31_spill]] }
0x1603   : > { %p52_p9 = scmp.ge.s32.totalorder %s55_s3, 6   ;;  %s7057_s26 = sld [smem:[#allocation32_spill]] }
0x1604   : > { %s7058_s27 = sld [smem:[#allocation48_spill]]  ;;  %s7059_s28 = sld [smem:[#allocation34_spill]] }
0x1605   : > { %s7060_s6 = sld [smem:[#allocation35_spill]]  ;;  %s7061_s2 = sld [smem:[#allocation50_spill]] }
0x1606   : > { %s7062_s29 = sld [smem:[#allocation38_spill]]  ;;  %s7063_s0 = sld [smem:[#allocation39_spill]] }
0x1607   : > { %s7064_s7 = sld [smem:[#allocation46_spill]]  ;;  %s7065_s30 = sld [smem:[#allocation47_spill]] }
0x1608   :  { %54 = sbr.rel (!%p52_p9) target bundleno = 45 (0x2d), region = 317 }
0x160f   :  { %3765 = vsyncpa [#allocation4], 1 }
0x1610   :  { %3767 = vsyncpa [#allocation4 + $0x1], 1 }
0x1611   :  { %3768 = vsyncpa [#allocation7], 1 }
0x1612   :  { %3770 = vsyncpa [#allocation7 + $0x1], 1 }
0x1613   :  { %3771 = vsyncpa [#allocation10], 1 }
0x1614   :  { %3773 = vsyncpa [#allocation10 + $0x1], 1 }
0x1615   :  { %3774 = vsyncpa [#allocation13], 1 }
0x1616   :  { %3776 = vsyncpa [#allocation13 + $0x1], 1 }
0x1617   :  { %3777 = vsyncpa [#allocation16], 1 }
0x1618   :  { %3779 = vsyncpa [#allocation16 + $0x1], 1 }
0x1619   :  { %3780 = vsyncpa [#allocation19], 1 }
0x161a   :  { %3782 = vsyncpa [#allocation19 + $0x1], 1 }
0x161b   :  { %3783 = vsyncpa [#allocation5], 1 }
0x161c   :  { %3785 = vsyncpa [#allocation5 + $0x1], 1 }

</bundles_post_ra>
